<compile_context>
chip_gen: v7x
topology: tpu7x:2x2x1
jax: 0.10.0
libtpu: 0.0.40
codegen_flags: <defaults>
</compile_context>

<pallas_src>
import functools

import jax
import jax.numpy as jnp
import numpy as np
from jax.experimental import pallas as pl
from jax.experimental.pallas import tpu as pltpu


N_CLASSES = 4
_MAX_TILE_H = 64  # max output rows per grid step for the stride-2 convs


# ----------------------------------------------------------------------------
# Chip-aware scoped-VMEM limit (review: ~cap/2 -> 32 MiB on v7x, 64 MiB v6e/v5e)
# ----------------------------------------------------------------------------
def _pick_vmem_limit():
    try:
        cap = pltpu.get_tpu_info().vmem_capacity_bytes
        return int(min(cap // 2, 96 * 1024 * 1024))
    except Exception:
        return 32 * 1024 * 1024


_VMEM_LIMIT_BYTES = _pick_vmem_limit()


# ----------------------------------------------------------------------------
# Tiny start-up probes: pick the fast code paths only if they lower on this
# jax/Mosaic version; otherwise fall back to the known-good formulations.
# ----------------------------------------------------------------------------
def _run_probe(f, *args):
    try:
        jax.block_until_ready(f(*args))
        return True
    except Exception:
        return False


def _probe_dot3d():
    def k(x_ref, w_ref, o_ref):
        o_ref[...] = jax.lax.dot_general(
            x_ref[...], w_ref[...],
            dimension_numbers=(((2,), (0,)), ((), ())),
            preferred_element_type=jnp.float32)

    f = pl.pallas_call(k, out_shape=jax.ShapeDtypeStruct((8, 8, 16), jnp.float32))
    return _run_probe(f, jnp.zeros((8, 8, 12), jnp.bfloat16),
                      jnp.zeros((12, 16), jnp.bfloat16))


def _probe_plane_gate():
    R, Q, K = 6, 6, 52

    def k(g_ref, o_ref):
        g = g_ref[0]                                            # (R, Q) plane
        lane = jax.lax.broadcasted_iota(jnp.int32, (R, Q, K), 2)
        o_ref[...] = jnp.where(lane < 4, 1.0, g[:, :, None])

    f = pl.pallas_call(k, out_shape=jax.ShapeDtypeStruct((R, Q, K), jnp.float32))
    return _run_probe(f, jnp.ones((1, R, Q), jnp.float32))


_HAS_DOT3D = _probe_dot3d()
_HAS_PLANE_GATE = _probe_plane_gate()


def _contract_last(x3, w2):
    """(A, B, K) x (K, N) -> (A, B, N) on the MXU with f32 accumulation."""
    if _HAS_DOT3D:
        return jax.lax.dot_general(
            x3, w2, dimension_numbers=(((2,), (0,)), ((), ())),
            preferred_element_type=jnp.float32)
    a, b, k = x3.shape
    y = jnp.dot(x3.reshape(a * b, k), w2, preferred_element_type=jnp.float32)
    return y.reshape(a, b, w2.shape[-1])


def _pick_tile_h(total_h, max_tile=_MAX_TILE_H, align=16):
    """Largest 16-aligned divisor of total_h that is <= max_tile (else whole)."""
    if total_h <= max_tile:
        return total_h
    best = 0
    t = align
    while t <= max_tile:
        if total_h % t == 0:
            best = t
        t += align
    return best if best > 0 else total_h


# ----------------------------------------------------------------------------
# Kernel 1: fused 3x3 / stride-2 conv (+ReLU) [+ optional fused 1x1 projection]
# grid = (batch, row_tiles); bf16 in / bf16 weights / f32 accumulate.
# ----------------------------------------------------------------------------
def _conv3x3s2_kernel(*refs, tile_h, out_w, fuse_proj, tiled):
    i = 0
    x_ref = refs[i]; i += 1
    xh_ref = None
    if tiled:
        xh_ref = refs[i]; i += 1
    w4_ref = refs[i]; b_ref = refs[i + 1]; i += 2
    wp_ref = bp_ref = None
    if fuse_proj:
        wp_ref = refs[i]; bp_ref = refs[i + 1]; i += 2
    o_ref = refs[i]; i += 1

    if tiled:
        # Assemble (tile_h + 1) rows = main row block + 1 halo row in scratch.
        xbuf = refs[i]
        xbuf[0:tile_h] = x_ref[0]
        xbuf[tile_h] = xh_ref[0, 0]
        x = xbuf[...]                        # (tile_h+1, Wp, 4*Cin) bf16
    else:
        x = x_ref[0]                         # (Ho+1, Wp, 4*Cin) bf16

    cout = w4_ref.shape[-1]
    acc = jnp.zeros((tile_h, out_w, cout), jnp.float32)
    # The 9 taps of a 3x3/s2 conv fold into 4 shifted-window contractions over
    # the space-to-depth input (K = 4*Cin each); bf16 x bf16 -> f32 on the MXU.
    for t, (a0, b0) in enumerate(((0, 0), (0, 1), (1, 0), (1, 1))):
        tap = x[a0:a0 + tile_h, b0:b0 + out_w, :]
        acc = acc + _contract_last(tap, w4_ref[t])

    acc = jnp.maximum(acc + b_ref[...], 0.0)                 # bias + ReLU (f32)

    if fuse_proj:
        # Fused 1x1 classifier: the hidden feature map never round-trips HBM.
        acc = _contract_last(acc.astype(jnp.bfloat16), wp_ref[...]) + bp_ref[...]

    n_out = acc.shape[-1]
    o_ref[...] = acc.reshape(1, tile_h, out_w * n_out).astype(o_ref.dtype)


def conv3x3_s2(x_nhwc, w4, bias, *, proj=None, out_dtype=jnp.bfloat16):
    """3x3 / stride-2 / pad-1 conv + ReLU (+ optional fused 1x1 projection).

    Returns a lane-dense (B, H/2, (W/2)*N) slab (host reshape to NHWC is free).
    The grid is (batch, row_tiles) so per-step VMEM is a bounded row tile.
    """
    B, H, W, Cin = x_nhwc.shape
    assert H % 2 == 0 and W % 2 == 0
    Ho, Wo = H // 2, W // 2
    Wp, K4 = Wo + 1, 4 * Cin

    # Host layout prep only (no 9x im2col expansion): zero-pad + space-to-depth
    # so every conv tap becomes a unit-stride window inside the kernel.
    xp = jnp.pad(x_nhwc, ((0, 0), (1, 1), (1, 1), (0, 0)))
    xs = xp.reshape(B, Ho + 1, 2, Wp, 2, Cin)
    xs = jnp.transpose(xs, (0, 1, 3, 2, 4, 5)).reshape(B, Ho + 1, Wp, K4)
    xs = xs.astype(jnp.bfloat16)             # bf16 activations in HBM

    th = _pick_tile_h(Ho)
    nt = Ho // th
    tiled = nt > 1
    Cout = w4.shape[-1]

    w4c = w4.astype(jnp.bfloat16)
    b2 = bias.reshape(1, Cout).astype(jnp.float32)

    if tiled:
        in_specs = [
            pl.BlockSpec((1, th, Wp, K4), lambda b, r: (b, r, 0, 0)),
            # 1-row halo: block size 1 on the row axis -> block idx == row idx.
            pl.BlockSpec((1, 1, Wp, K4), lambda b, r: (b, (r + 1) * th, 0, 0)),
        ]
        args = [xs, xs]
        scratch = [pltpu.VMEM((th + 1, Wp, K4), jnp.bfloat16)]
    else:
        in_specs = [pl.BlockSpec((1, Ho + 1, Wp, K4), lambda b, r: (b, 0, 0, 0))]
        args = [xs]
        scratch = []

    # Constant index maps: weights/biases stay VMEM-resident across the grid.
    in_specs += [pl.BlockSpec((4, K4, Cout), lambda b, r: (0, 0, 0)),
                 pl.BlockSpec((1, Cout), lambda b, r: (0, 0))]
    args += [w4c, b2]
    n_out = Cout
    if proj is not None:
        wp_, bp_ = proj
        n_out = wp_.shape[-1]
        in_specs += [pl.BlockSpec((Cout, n_out), lambda b, r: (0, 0)),
                     pl.BlockSpec((1, n_out), lambda b, r: (0, 0))]
        args += [wp_.astype(jnp.bfloat16),
                 bp_.reshape(1, n_out).astype(jnp.float32)]

    kernel = functools.partial(_conv3x3s2_kernel, tile_h=th, out_w=Wo,
                               fuse_proj=proj is not None, tiled=tiled)
    return pl.pallas_call(
        kernel,
        out_shape=jax.ShapeDtypeStruct((B, Ho, Wo * n_out), out_dtype),
        grid=(B, nt),
        in_specs=in_specs,
        out_specs=pl.BlockSpec((1, th, Wo * n_out), lambda b, r: (b, r, 0)),
        scratch_shapes=scratch,
        compiler_params=pltpu.CompilerParams(
            dimension_semantics=("parallel", "parallel"),
            vmem_limit_bytes=_VMEM_LIMIT_BYTES),
    )(*args)


# ----------------------------------------------------------------------------
# Kernel 2: fused information-blocking decoder.
#   gate = 1 - max softmax(up);  out = conv3x3(up + (gate*enc)@Wp + bp) + bd
# Implemented as 9 K=(C+48) matmuls over the augmented input [up ; gate*enc]
# with host-folded weights; border bias handled by a precomputed bias map.
# ----------------------------------------------------------------------------
def _decoder_kernel(up_ref, z_ref, waug_ref, bias_ref, o_ref, *,
                    out_h, out_w, n_cls, plane_gate):
    R, Q, ktot = z_ref.shape[1], z_ref.shape[2], z_ref.shape[3]

    if plane_gate:
        # Gate on channel planes: lane-dense (R, Q) math, exact reciprocal.
        up = up_ref[0]                                   # (C, R, Q) f32
        m = up[0]
        for c in range(1, n_cls):
            m = jnp.maximum(m, up[c])
        s = jnp.exp(up[0] - m)
        for c in range(1, n_cls):
            s = s + jnp.exp(up[c] - m)
        gate3 = (1.0 - 1.0 / s)[:, :, None]              # max softmax == 1/s
    else:
        # Fallback: lane-axis reductions over the first n_cls channels of z.
        up_pm = z_ref[0, :, :, 0:n_cls].astype(jnp.float32)
        m = jnp.max(up_pm, axis=-1, keepdims=True)
        s = jnp.sum(jnp.exp(up_pm - m), axis=-1, keepdims=True)
        gate3 = 1.0 - 1.0 / s                            # (R, Q, 1)

    # Scale only the encoder channels (k >= n_cls) by the gate (f32 math).
    lane = jax.lax.broadcasted_iota(jnp.int32, (R, Q, ktot), 2)
    scale = jnp.where(lane < n_cls, 1.0, gate3)
    zg = (z_ref[0].astype(jnp.float32) * scale).astype(jnp.bfloat16)

    acc = bias_ref[...].astype(jnp.float32)              # (out_h, out_w, C)
    for di in range(3):
        for dj in range(3):
            tap = zg[di:di + out_h, dj:dj + out_w, :]
            acc = acc + _contract_last(tap, waug_ref[di * 3 + dj])

    o_ref[...] = acc.reshape(1, out_h, out_w * n_cls).astype(o_ref.dtype)


def decoder_block(bot, enc, w_proj, b_proj, w_dec9, b_dec):
    """bot: (B, H8, W8, C) f32 logits;  enc: (B, H4, W4, 48) bf16 features."""
    B, H8, W8, C = bot.shape
    Ce = enc.shape[-1]
    H4, W4 = 2 * H8, 2 * W8
    R, Q = H4 + 2, W4 + 2

    # x2 nearest upsample of the tiny bottleneck + 1-pixel zero ring (host).
    up = jnp.broadcast_to(bot[:, :, None, :, None, :],
                          (B, H8, 2, W8, 2, C)).reshape(B, H4, W4, C)
    up_pad = jnp.pad(up, ((0, 0), (1, 1), (1, 1), (0, 0)))            # f32
    up_pl = jnp.transpose(up_pad, (0, 3, 1, 2))                       # (B,C,R,Q)
    enc_pad = jnp.pad(enc, ((0, 0), (1, 1), (1, 1), (0, 0)))          # bf16
    z = jnp.concatenate([up_pad.astype(jnp.bfloat16), enc_pad], axis=-1)

    # Host-side weight folding: conv3x3(up + (gate*enc)@Wp) ==
    #   sum_t [up ; gate*enc]_tap_t @ [Wd9[t] ; Wp@Wd9[t]]  (+ border bias map).
    wcomb = jnp.einsum("kc,tcd->tkd", w_proj, w_dec9)                 # (9,Ce,C)
    waug = jnp.concatenate([w_dec9, wcomb], axis=1).astype(jnp.bfloat16)

    mI = jnp.pad(jnp.ones((H4, W4), jnp.float32), ((1, 1), (1, 1)))
    taps = jnp.stack([mI[di:di + H4, dj:dj + W4]
                      for di in range(3) for dj in range(3)], axis=-1)  # (H4,W4,9)
    bpw = jnp.einsum("tcd,c->td", w_dec9, b_proj)                       # (9,C)
    biasmap = (taps @ bpw + b_dec).astype(jnp.float32)                  # (H4,W4,C)

    kernel = functools.partial(_decoder_kernel, out_h=H4, out_w=W4,
                               n_cls=C, plane_gate=_HAS_PLANE_GATE)
    return pl.pallas_call(
        kernel,
        out_shape=jax.ShapeDtypeStruct((B, H4, W4 * C), jnp.float32),
        grid=(B,),
        in_specs=[
            pl.BlockSpec((1, C, R, Q), lambda b: (b, 0, 0, 0)),
            pl.BlockSpec((1, R, Q, C + Ce), lambda b: (b, 0, 0, 0)),
            pl.BlockSpec((9, C + Ce, C), lambda b: (0, 0, 0)),
            pl.BlockSpec((H4, W4, C), lambda b: (0, 0, 0)),
        ],
        out_specs=pl.BlockSpec((1, H4, W4 * C), lambda b: (b, 0, 0)),
        compiler_params=pltpu.CompilerParams(
            dimension_semantics=("parallel",),
            vmem_limit_bytes=_VMEM_LIMIT_BYTES),
    )(up_pl, z, waug, biasmap)


# ----------------------------------------------------------------------------
# Parameters (deterministic synthetic init)
# ----------------------------------------------------------------------------
def _pack_w_s2(w):
    """(3,3,Cin,Cout) conv weight -> (4, 4*Cin, Cout) packed tap-group weights
    matching the space-to-depth input layout."""
    w = np.asarray(w)
    cin, cout = w.shape[2], w.shape[3]
    w4 = np.zeros((2, 2, 2, 2, cin, cout), np.float32)
    for a0 in range(2):
        for b0 in range(2):
            for p in range(2):
                for q in range(2):
                    di, dj = 2 * a0 + p, 2 * b0 + q
                    if di < 3 and dj < 3:
                        w4[a0, b0, p, q] = w[di, dj]
    return jnp.asarray(w4.reshape(4, 4 * cin, cout))


def init_params(key, n_classes):
    ks = jax.random.split(key, 10)

    def conv_w(k, cin, cout, scale):
        return scale * jax.random.normal(k, (3, 3, cin, cout), jnp.float32)

    p = {}
    # encoder
    p["w1"] = _pack_w_s2(conv_w(ks[0], 3, 16, 0.20))
    p["b1"] = 0.01 * jax.random.normal(ks[6], (16,), jnp.float32)
    p["w2"] = _pack_w_s2(conv_w(ks[1], 16, 48, 0.08))
    p["b2"] = 0.01 * jax.random.normal(ks[7], (48,), jnp.float32)
    p["w3"] = _pack_w_s2(conv_w(ks[2], 48, 64, 0.05))
    p["b3"] = jnp.zeros((64,), jnp.float32)
    p["w_cls"] = 0.10 * jax.random.normal(ks[3], (64, n_classes), jnp.float32)
    p["b_cls"] = jnp.zeros((n_classes,), jnp.float32)
    # decoder
    p["w_proj"] = 0.10 * jax.random.normal(ks[4], (48, n_classes), jnp.float32)
    p["b_proj"] = 0.01 * jax.random.normal(ks[8], (n_classes,), jnp.float32)
    p["w_dec9"] = (0.10 * jax.random.normal(
        ks[5], (3, 3, n_classes, n_classes), jnp.float32)
                   ).reshape(9, n_classes, n_classes)
    p["b_dec"] = 0.01 * jax.random.normal(ks[9], (n_classes,), jnp.float32)
    return p


# ----------------------------------------------------------------------------
# Forward pass
# ----------------------------------------------------------------------------
def sinet_forward(params, x_nchw):
    x = jnp.transpose(x_nchw, (0, 2, 3, 1)).astype(jnp.float32)       # NCHW->NHWC
    B, H, W, _ = x.shape
    C = params["w_cls"].shape[-1]

    # --- encoder -------------------------------------------------------------
    f1 = conv3x3_s2(x, params["w1"], params["b1"])                    # (B,H/2,(W/2)*16) bf16
    f1 = f1.reshape(B, H // 2, W // 2, 16)
    enc = conv3x3_s2(f1, params["w2"], params["b2"])                  # (B,H/4,(W/4)*48) bf16
    enc = enc.reshape(B, H // 4, W // 4, 48)
    # conv3 + 1x1 classifier fused (the 64-ch feature map never hits HBM)
    bot = conv3x3_s2(enc, params["w3"], params["b3"],
                     proj=(params["w_cls"], params["b_cls"]),
                     out_dtype=jnp.float32)                           # (B,H/8,(W/8)*C) f32
    bot = bot.reshape(B, H // 8, W // 8, C)

    # --- decoder (information blocking) --------------------------------------
    dec = decoder_block(bot, enc, params["w_proj"], params["b_proj"],
                        params["w_dec9"], params["b_dec"])            # (B,H/4,(W/4)*C)
    dec = dec.reshape(B, H // 4, W // 4, C)

    # NCHW transpose on the SMALL decoder map, then the x4 nearest upsample:
    # the full-resolution output is written exactly once and never re-read.
    dec_nchw = jnp.transpose(dec, (0, 3, 1, 2))                       # (B,C,H/4,W/4)
    out = jnp.broadcast_to(dec_nchw[:, :, :, None, :, None],
                           (B, C, H // 4, 4, W // 4, 4)).reshape(B, C, H, W)
    return out


# ----------------------------------------------------------------------------
if __name__ == "__main__":
    key = jax.random.PRNGKey(0)
    k_param, k_input = jax.random.split(key)

    params = init_params(k_param, N_CLASSES)
    x = jax.random.normal(k_input, (2, 3, 16, 16), jnp.float32)       # NCHW, like PyTorch

    fwd = jax.jit(sinet_forward)
    y = fwd(params, x)
    jax.block_until_ready(y)

    assert y.shape == (2, N_CLASSES, 16, 16), y.shape
    assert bool(jnp.all(jnp.isfinite(y)))
    print("KERNEL_OK")
</pallas_src>

<mosaic_0001>
module attributes {stable_mosaic.version = 11 : i64} {
  func.func @k(%arg0: memref<8x8x12xbf16, #tpu.memory_space<vmem>>, %arg1: memref<12x16xbf16, #tpu.memory_space<vmem>>, %arg2: memref<8x8x16xf32, #tpu.memory_space<vmem>>) attributes {dimension_semantics = [], scalar_prefetch = 0 : i64, scratch_operands = 0 : i64, tpu.core_type = #tpu.core_type<tc>} {
    %c0 = arith.constant 0 : index
    %c0_0 = arith.constant 0 : index
    %c0_1 = arith.constant 0 : index
    %0 = vector.load %arg0[%c0, %c0_0, %c0_1] : memref<8x8x12xbf16, #tpu.memory_space<vmem>>, vector<8x8x12xbf16>
    %c0_2 = arith.constant 0 : index
    %c0_3 = arith.constant 0 : index
    %1 = vector.load %arg1[%c0_2, %c0_3] : memref<12x16xbf16, #tpu.memory_space<vmem>>, vector<12x16xbf16>
    %cst = arith.constant dense<0.000000e+00> : vector<8x8x16xf32>
    %2 = tpu.matmul %0, %1, %cst {dimension_numbers = #tpu.dot_dimension_numbers<[2], [0], [0, 1], [1], [0, 0, 0, 1, 1, 1], [], []>} : vector<8x8x12xbf16>, vector<12x16xbf16>, vector<8x8x16xf32> -> vector<8x8x16xf32>
    %c0_4 = arith.constant 0 : index
    %c0_5 = arith.constant 0 : index
    %c0_6 = arith.constant 0 : index
    %3 = vector.load %arg2[%c0_4, %c0_5, %c0_6] : memref<8x8x16xf32, #tpu.memory_space<vmem>>, vector<8x8x16xf32>
    tpu.vector_store %arg2[%c0_4, %c0_5, %c0_6], %2 {strides = array<i32>} : memref<8x8x16xf32, #tpu.memory_space<vmem>>, vector<8x8x16xf32>,
    return
  }
}

module attributes {stable_mosaic.version = 11 : i64} {
  func.func @k(%arg0: memref<1x6x6xf32, #tpu.memory_space<vmem>>, %arg1: memref<6x6x52xf32, #tpu.memory_space<vmem>>) attributes {dimension_semantics = [], scalar_prefetch = 0 : i64, scratch_operands = 0 : i64, tpu.core_type = #tpu.core_type<tc>} {
    %c0 = arith.constant 0 : index
    %c0_0 = arith.constant 0 : index
    %c0_1 = arith.constant 0 : index
    %0 = vector.load %arg0[%c0, %c0_0, %c0_1] : memref<1x6x6xf32, #tpu.memory_space<vmem>>, vector<1x6x6xf32>
    %1 = vector.shape_cast %0 : vector<1x6x6xf32> to vector<6x6xf32>
    %2 = tpu.iota {dimensions = array<i32: 2>} : vector<6x6x52xi32>
    %c4_i32 = arith.constant 4 : i32
    %3 = vector.broadcast %c4_i32 : i32 to vector<6x6x52xi32>
    %4 = arith.cmpi slt, %2, %3 : vector<6x6x52xi32>
    %5 = vector.shape_cast %1 : vector<6x6xf32> to vector<6x6x1xf32>
    %cst = arith.constant 1.000000e+00 : f32
    %6 = vector.broadcast %cst : f32 to vector<6x6x52xf32>
    %7 = vector.shape_cast %5 : vector<6x6x1xf32> to vector<6x6x1xf32>
    %8 = vector.broadcast %7 : vector<6x6x1xf32> to vector<6x6x52xf32>
    %9 = arith.select %4, %6, %8 : vector<6x6x52xi1>, vector<6x6x52xf32>
    %c0_2 = arith.constant 0 : index
    %c0_3 = arith.constant 0 : index
    %c0_4 = arith.constant 0 : index
    %10 = vector.load %arg1[%c0_2, %c0_3, %c0_4] : memref<6x6x52xf32, #tpu.memory_space<vmem>>, vector<6x6x52xf32>
    tpu.vector_store %arg1[%c0_2, %c0_3, %c0_4], %9 {strides = array<i32>} : memref<6x6x52xf32, #tpu.memory_space<vmem>>, vector<6x6x52xf32>,
    return
  }
}

module attributes {stable_mosaic.version = 11 : i64} {
  func.func @_conv3x3s2_kernel(%arg0: i32, %arg1: i32, %arg2: memref<1x9x9x12xbf16, #tpu.memory_space<vmem>>, %arg3: memref<4x12x16xbf16, #tpu.memory_space<vmem>>, %arg4: memref<1x16xf32, #tpu.memory_space<vmem>>, %arg5: memref<1x8x128xbf16, #tpu.memory_space<vmem>>) attributes {dimension_semantics = [#tpu.dimension_semantics<parallel>, #tpu.dimension_semantics<parallel>], iteration_bounds = array<i64: 2, 1>, scalar_prefetch = 0 : i64, scratch_operands = 0 : i64, tpu.core_type = #tpu.core_type<tc>, window_params = [{transform_indices = @transform_0, window_bounds = array<i64: 1, 9, 9, 12>}, {pipeline_mode = #tpu.pipeline_mode<synchronous>, transform_indices = @transform_1, window_bounds = array<i64: 4, 12, 16>}, {pipeline_mode = #tpu.pipeline_mode<synchronous>, transform_indices = @transform_2, window_bounds = array<i64: 1, 16>}, {transform_indices = @transform_3, window_bounds = array<i64: 1, 8, 128>}]} {
    %c0 = arith.constant 0 : index
    %c0_0 = arith.constant 0 : index
    %c0_1 = arith.constant 0 : index
    %c0_2 = arith.constant 0 : index
    %0 = vector.load %arg2[%c0, %c0_0, %c0_1, %c0_2] : memref<1x9x9x12xbf16, #tpu.memory_space<vmem>>, vector<1x9x9x12xbf16>
    %1 = vector.shape_cast %0 : vector<1x9x9x12xbf16> to vector<9x9x12xbf16>
    %cst = arith.constant 0.000000e+00 : f32
    %2 = vector.broadcast %cst : f32 to vector<8x8x16xf32>
    %3 = vector.extract_strided_slice %1 {offsets = [0, 0, 0], sizes = [8, 8, 12], strides = [1, 1, 1]} : vector<9x9x12xbf16> to vector<8x8x12xbf16>
    %c0_3 = arith.constant 0 : index
    %c0_4 = arith.constant 0 : index
    %c0_5 = arith.constant 0 : index
    %4 = vector.load %arg3[%c0_3, %c0_4, %c0_5] : memref<4x12x16xbf16, #tpu.memory_space<vmem>>, vector<1x12x16xbf16>
    %5 = vector.shape_cast %4 : vector<1x12x16xbf16> to vector<12x16xbf16>
    %6 = vector.shape_cast %3 : vector<8x8x12xbf16> to vector<64x12xbf16>
    %cst_6 = arith.constant dense<0.000000e+00> : vector<64x16xf32>
    %7 = tpu.matmul %6, %5, %cst_6 {dimension_numbers = #tpu.dot_dimension_numbers<[1], [0], [0], [1], [0, 0, 1, 1], [], []>} : vector<64x12xbf16>, vector<12x16xbf16>, vector<64x16xf32> -> vector<64x16xf32>
    %8 = vector.shape_cast %7 : vector<64x16xf32> to vector<8x8x16xf32>
    %9 = arith.addf %2, %8 : vector<8x8x16xf32>
    %10 = vector.extract_strided_slice %1 {offsets = [0, 1, 0], sizes = [8, 8, 12], strides = [1, 1, 1]} : vector<9x9x12xbf16> to vector<8x8x12xbf16>
    %c1 = arith.constant 1 : index
    %c0_7 = arith.constant 0 : index
    %c0_8 = arith.constant 0 : index
    %11 = vector.load %arg3[%c1, %c0_7, %c0_8] : memref<4x12x16xbf16, #tpu.memory_space<vmem>>, vector<1x12x16xbf16>
    %12 = vector.shape_cast %11 : vector<1x12x16xbf16> to vector<12x16xbf16>
    %13 = vector.shape_cast %10 : vector<8x8x12xbf16> to vector<64x12xbf16>
    %cst_9 = arith.constant dense<0.000000e+00> : vector<64x16xf32>
    %14 = tpu.matmul %13, %12, %cst_9 {dimension_numbers = #tpu.dot_dimension_numbers<[1], [0], [0], [1], [0, 0, 1, 1], [], []>} : vector<64x12xbf16>, vector<12x16xbf16>, vector<64x16xf32> -> vector<64x16xf32>
    %15 = vector.shape_cast %14 : vector<64x16xf32> to vector<8x8x16xf32>
    %16 = arith.addf %9, %15 : vector<8x8x16xf32>
    %17 = vector.extract_strided_slice %1 {offsets = [1, 0, 0], sizes = [8, 8, 12], strides = [1, 1, 1]} : vector<9x9x12xbf16> to vector<8x8x12xbf16>
    %c2 = arith.constant 2 : index
    %c0_10 = arith.constant 0 : index
    %c0_11 = arith.constant 0 : index
    %18 = vector.load %arg3[%c2, %c0_10, %c0_11] : memref<4x12x16xbf16, #tpu.memory_space<vmem>>, vector<1x12x16xbf16>
    %19 = vector.shape_cast %18 : vector<1x12x16xbf16> to vector<12x16xbf16>
    %20 = vector.shape_cast %17 : vector<8x8x12xbf16> to vector<64x12xbf16>
    %cst_12 = arith.constant dense<0.000000e+00> : vector<64x16xf32>
    %21 = tpu.matmul %20, %19, %cst_12 {dimension_numbers = #tpu.dot_dimension_numbers<[1], [0], [0], [1], [0, 0, 1, 1], [], []>} : vector<64x12xbf16>, vector<12x16xbf16>, vector<64x16xf32> -> vector<64x16xf32>
    %22 = vector.shape_cast %21 : vector<64x16xf32> to vector<8x8x16xf32>
    %23 = arith.addf %16, %22 : vector<8x8x16xf32>
    %24 = vector.extract_strided_slice %1 {offsets = [1, 1, 0], sizes = [8, 8, 12], strides = [1, 1, 1]} : vector<9x9x12xbf16> to vector<8x8x12xbf16>
    %c3 = arith.constant 3 : index
    %c0_13 = arith.constant 0 : index
    %c0_14 = arith.constant 0 : index
    %25 = vector.load %arg3[%c3, %c0_13, %c0_14] : memref<4x12x16xbf16, #tpu.memory_space<vmem>>, vector<1x12x16xbf16>
    %26 = vector.shape_cast %25 : vector<1x12x16xbf16> to vector<12x16xbf16>
    %27 = vector.shape_cast %24 : vector<8x8x12xbf16> to vector<64x12xbf16>
    %cst_15 = arith.constant dense<0.000000e+00> : vector<64x16xf32>
    %28 = tpu.matmul %27, %26, %cst_15 {dimension_numbers = #tpu.dot_dimension_numbers<[1], [0], [0], [1], [0, 0, 1, 1], [], []>} : vector<64x12xbf16>, vector<12x16xbf16>, vector<64x16xf32> -> vector<64x16xf32>
    %29 = vector.shape_cast %28 : vector<64x16xf32> to vector<8x8x16xf32>
    %30 = arith.addf %23, %29 : vector<8x8x16xf32>
    %c0_16 = arith.constant 0 : index
    %c0_17 = arith.constant 0 : index
    %31 = vector.load %arg4[%c0_16, %c0_17] : memref<1x16xf32, #tpu.memory_space<vmem>>, vector<1x16xf32>
    %32 = vector.shape_cast %31 : vector<1x16xf32> to vector<1x1x16xf32>
    %33 = vector.broadcast %32 : vector<1x1x16xf32> to vector<8x8x16xf32>
    %34 = arith.addf %30, %33 : vector<8x8x16xf32>
    %cst_18 = arith.constant 0.000000e+00 : f32
    %35 = vector.broadcast %cst_18 : f32 to vector<8x8x16xf32>
    %36 = arith.maximumf %34, %35 : vector<8x8x16xf32>
    %37 = vector.shape_cast %36 : vector<8x8x16xf32> to vector<1x8x128xf32>
    %38 = arith.truncf %37 : vector<1x8x128xf32> to vector<1x8x128xbf16>
    %c0_19 = arith.constant 0 : index
    %c0_20 = arith.constant 0 : index
    %c0_21 = arith.constant 0 : index
    %39 = vector.load %arg5[%c0_19, %c0_20, %c0_21] : memref<1x8x128xbf16, #tpu.memory_space<vmem>>, vector<1x8x128xbf16>
    tpu.vector_store %arg5[%c0_19, %c0_20, %c0_21], %38 {strides = array<i32>} : memref<1x8x128xbf16, #tpu.memory_space<vmem>>, vector<1x8x128xbf16>,
    return
  }
  func.func @transform_0(%arg0: i32, %arg1: i32) -> (i32, i32, i32, i32) {
    %c0_i32 = arith.constant 0 : i32
    %c0_i32_0 = arith.constant 0 : i32
    %c0_i32_1 = arith.constant 0 : i32
    %c0_i32_2 = arith.constant 0 : i32
    return %arg0, %c0_i32, %c0_i32_0, %c0_i32_1 : i32, i32, i32, i32
  }
  func.func @transform_1(%arg0: i32, %arg1: i32) -> (i32, i32, i32) {
    %c0_i32 = arith.constant 0 : i32
    %c0_i32_0 = arith.constant 0 : i32
    %c0_i32_1 = arith.constant 0 : i32
    %c0_i32_2 = arith.constant 0 : i32
    return %c0_i32, %c0_i32_0, %c0_i32_1 : i32, i32, i32
  }
  func.func @transform_2(%arg0: i32, %arg1: i32) -> (i32, i32) {
    %c0_i32 = arith.constant 0 : i32
    %c0_i32_0 = arith.constant 0 : i32
    %c0_i32_1 = arith.constant 0 : i32
    return %c0_i32, %c0_i32_0 : i32, i32
  }
  func.func @transform_3(%arg0: i32, %arg1: i32) -> (i32, i32, i32) {
    %c0_i32 = arith.constant 0 : i32
    %c0_i32_0 = arith.constant 0 : i32
    return %arg0, %arg1, %c0_i32 : i32, i32, i32
  }
}

module attributes {stable_mosaic.version = 11 : i64} {
  func.func @_conv3x3s2_kernel(%arg0: i32, %arg1: i32, %arg2: memref<1x5x5x64xbf16, #tpu.memory_space<vmem>>, %arg3: memref<4x64x48xbf16, #tpu.memory_space<vmem>>, %arg4: memref<1x48xf32, #tpu.memory_space<vmem>>, %arg5: memref<1x4x192xbf16, #tpu.memory_space<vmem>>) attributes {dimension_semantics = [#tpu.dimension_semantics<parallel>, #tpu.dimension_semantics<parallel>], iteration_bounds = array<i64: 2, 1>, scalar_prefetch = 0 : i64, scratch_operands = 0 : i64, tpu.core_type = #tpu.core_type<tc>, window_params = [{transform_indices = @transform_0, window_bounds = array<i64: 1, 5, 5, 64>}, {pipeline_mode = #tpu.pipeline_mode<synchronous>, transform_indices = @transform_1, window_bounds = array<i64: 4, 64, 48>}, {pipeline_mode = #tpu.pipeline_mode<synchronous>, transform_indices = @transform_2, window_bounds = array<i64: 1, 48>}, {transform_indices = @transform_3, window_bounds = array<i64: 1, 4, 192>}]} {
    %c0 = arith.constant 0 : index
    %c0_0 = arith.constant 0 : index
    %c0_1 = arith.constant 0 : index
    %c0_2 = arith.constant 0 : index
    %0 = vector.load %arg2[%c0, %c0_0, %c0_1, %c0_2] : memref<1x5x5x64xbf16, #tpu.memory_space<vmem>>, vector<1x5x5x64xbf16>
    %1 = vector.shape_cast %0 : vector<1x5x5x64xbf16> to vector<5x5x64xbf16>
    %cst = arith.constant 0.000000e+00 : f32
    %2 = vector.broadcast %cst : f32 to vector<4x4x48xf32>
    %3 = vector.extract_strided_slice %1 {offsets = [0, 0, 0], sizes = [4, 4, 64], strides = [1, 1, 1]} : vector<5x5x64xbf16> to vector<4x4x64xbf16>
    %c0_3 = arith.constant 0 : index
    %c0_4 = arith.constant 0 : index
    %c0_5 = arith.constant 0 : index
    %4 = vector.load %arg3[%c0_3, %c0_4, %c0_5] : memref<4x64x48xbf16, #tpu.memory_space<vmem>>, vector<1x64x48xbf16>
    %5 = vector.shape_cast %4 : vector<1x64x48xbf16> to vector<64x48xbf16>
    %6 = vector.shape_cast %3 : vector<4x4x64xbf16> to vector<16x64xbf16>
    %cst_6 = arith.constant dense<0.000000e+00> : vector<16x48xf32>
    %7 = tpu.matmul %6, %5, %cst_6 {dimension_numbers = #tpu.dot_dimension_numbers<[1], [0], [0], [1], [0, 0, 1, 1], [], []>} : vector<16x64xbf16>, vector<64x48xbf16>, vector<16x48xf32> -> vector<16x48xf32>
    %8 = vector.shape_cast %7 : vector<16x48xf32> to vector<4x4x48xf32>
    %9 = arith.addf %2, %8 : vector<4x4x48xf32>
    %10 = vector.extract_strided_slice %1 {offsets = [0, 1, 0], sizes = [4, 4, 64], strides = [1, 1, 1]} : vector<5x5x64xbf16> to vector<4x4x64xbf16>
    %c1 = arith.constant 1 : index
    %c0_7 = arith.constant 0 : index
    %c0_8 = arith.constant 0 : index
    %11 = vector.load %arg3[%c1, %c0_7, %c0_8] : memref<4x64x48xbf16, #tpu.memory_space<vmem>>, vector<1x64x48xbf16>
    %12 = vector.shape_cast %11 : vector<1x64x48xbf16> to vector<64x48xbf16>
    %13 = vector.shape_cast %10 : vector<4x4x64xbf16> to vector<16x64xbf16>
    %cst_9 = arith.constant dense<0.000000e+00> : vector<16x48xf32>
    %14 = tpu.matmul %13, %12, %cst_9 {dimension_numbers = #tpu.dot_dimension_numbers<[1], [0], [0], [1], [0, 0, 1, 1], [], []>} : vector<16x64xbf16>, vector<64x48xbf16>, vector<16x48xf32> -> vector<16x48xf32>
    %15 = vector.shape_cast %14 : vector<16x48xf32> to vector<4x4x48xf32>
    %16 = arith.addf %9, %15 : vector<4x4x48xf32>
    %17 = vector.extract_strided_slice %1 {offsets = [1, 0, 0], sizes = [4, 4, 64], strides = [1, 1, 1]} : vector<5x5x64xbf16> to vector<4x4x64xbf16>
    %c2 = arith.constant 2 : index
    %c0_10 = arith.constant 0 : index
    %c0_11 = arith.constant 0 : index
    %18 = vector.load %arg3[%c2, %c0_10, %c0_11] : memref<4x64x48xbf16, #tpu.memory_space<vmem>>, vector<1x64x48xbf16>
    %19 = vector.shape_cast %18 : vector<1x64x48xbf16> to vector<64x48xbf16>
    %20 = vector.shape_cast %17 : vector<4x4x64xbf16> to vector<16x64xbf16>
    %cst_12 = arith.constant dense<0.000000e+00> : vector<16x48xf32>
    %21 = tpu.matmul %20, %19, %cst_12 {dimension_numbers = #tpu.dot_dimension_numbers<[1], [0], [0], [1], [0, 0, 1, 1], [], []>} : vector<16x64xbf16>, vector<64x48xbf16>, vector<16x48xf32> -> vector<16x48xf32>
    %22 = vector.shape_cast %21 : vector<16x48xf32> to vector<4x4x48xf32>
    %23 = arith.addf %16, %22 : vector<4x4x48xf32>
    %24 = vector.extract_strided_slice %1 {offsets = [1, 1, 0], sizes = [4, 4, 64], strides = [1, 1, 1]} : vector<5x5x64xbf16> to vector<4x4x64xbf16>
    %c3 = arith.constant 3 : index
    %c0_13 = arith.constant 0 : index
    %c0_14 = arith.constant 0 : index
    %25 = vector.load %arg3[%c3, %c0_13, %c0_14] : memref<4x64x48xbf16, #tpu.memory_space<vmem>>, vector<1x64x48xbf16>
    %26 = vector.shape_cast %25 : vector<1x64x48xbf16> to vector<64x48xbf16>
    %27 = vector.shape_cast %24 : vector<4x4x64xbf16> to vector<16x64xbf16>
    %cst_15 = arith.constant dense<0.000000e+00> : vector<16x48xf32>
    %28 = tpu.matmul %27, %26, %cst_15 {dimension_numbers = #tpu.dot_dimension_numbers<[1], [0], [0], [1], [0, 0, 1, 1], [], []>} : vector<16x64xbf16>, vector<64x48xbf16>, vector<16x48xf32> -> vector<16x48xf32>
    %29 = vector.shape_cast %28 : vector<16x48xf32> to vector<4x4x48xf32>
    %30 = arith.addf %23, %29 : vector<4x4x48xf32>
    %c0_16 = arith.constant 0 : index
    %c0_17 = arith.constant 0 : index
    %31 = vector.load %arg4[%c0_16, %c0_17] : memref<1x48xf32, #tpu.memory_space<vmem>>, vector<1x48xf32>
    %32 = vector.shape_cast %31 : vector<1x48xf32> to vector<1x1x48xf32>
    %33 = vector.broadcast %32 : vector<1x1x48xf32> to vector<4x4x48xf32>
    %34 = arith.addf %30, %33 : vector<4x4x48xf32>
    %cst_18 = arith.constant 0.000000e+00 : f32
    %35 = vector.broadcast %cst_18 : f32 to vector<4x4x48xf32>
    %36 = arith.maximumf %34, %35 : vector<4x4x48xf32>
    %37 = vector.shape_cast %36 : vector<4x4x48xf32> to vector<1x4x192xf32>
    %38 = arith.truncf %37 : vector<1x4x192xf32> to vector<1x4x192xbf16>
    %c0_19 = arith.constant 0 : index
    %c0_20 = arith.constant 0 : index
    %c0_21 = arith.constant 0 : index
    %39 = vector.load %arg5[%c0_19, %c0_20, %c0_21] : memref<1x4x192xbf16, #tpu.memory_space<vmem>>, vector<1x4x192xbf16>
    tpu.vector_store %arg5[%c0_19, %c0_20, %c0_21], %38 {strides = array<i32>} : memref<1x4x192xbf16, #tpu.memory_space<vmem>>, vector<1x4x192xbf16>,
    return
  }
  func.func @transform_0(%arg0: i32, %arg1: i32) -> (i32, i32, i32, i32) {
    %c0_i32 = arith.constant 0 : i32
    %c0_i32_0 = arith.constant 0 : i32
    %c0_i32_1 = arith.constant 0 : i32
    %c0_i32_2 = arith.constant 0 : i32
    return %arg0, %c0_i32, %c0_i32_0, %c0_i32_1 : i32, i32, i32, i32
  }
  func.func @transform_1(%arg0: i32, %arg1: i32) -> (i32, i32, i32) {
    %c0_i32 = arith.constant 0 : i32
    %c0_i32_0 = arith.constant 0 : i32
    %c0_i32_1 = arith.constant 0 : i32
    %c0_i32_2 = arith.constant 0 : i32
    return %c0_i32, %c0_i32_0, %c0_i32_1 : i32, i32, i32
  }
  func.func @transform_2(%arg0: i32, %arg1: i32) -> (i32, i32) {
    %c0_i32 = arith.constant 0 : i32
    %c0_i32_0 = arith.constant 0 : i32
    %c0_i32_1 = arith.constant 0 : i32
    return %c0_i32, %c0_i32_0 : i32, i32
  }
  func.func @transform_3(%arg0: i32, %arg1: i32) -> (i32, i32, i32) {
    %c0_i32 = arith.constant 0 : i32
    %c0_i32_0 = arith.constant 0 : i32
    return %arg0, %arg1, %c0_i32 : i32, i32, i32
  }
}

module attributes {stable_mosaic.version = 11 : i64} {
  func.func @_conv3x3s2_kernel(%arg0: i32, %arg1: i32, %arg2: memref<1x3x3x192xbf16, #tpu.memory_space<vmem>>, %arg3: memref<4x192x64xbf16, #tpu.memory_space<vmem>>, %arg4: memref<1x64xf32, #tpu.memory_space<vmem>>, %arg5: memref<64x4xbf16, #tpu.memory_space<vmem>>, %arg6: memref<1x4xf32, #tpu.memory_space<vmem>>, %arg7: memref<1x2x8xf32, #tpu.memory_space<vmem>>) attributes {dimension_semantics = [#tpu.dimension_semantics<parallel>, #tpu.dimension_semantics<parallel>], iteration_bounds = array<i64: 2, 1>, scalar_prefetch = 0 : i64, scratch_operands = 0 : i64, tpu.core_type = #tpu.core_type<tc>, window_params = [{transform_indices = @transform_0, window_bounds = array<i64: 1, 3, 3, 192>}, {pipeline_mode = #tpu.pipeline_mode<synchronous>, transform_indices = @transform_1, window_bounds = array<i64: 4, 192, 64>}, {pipeline_mode = #tpu.pipeline_mode<synchronous>, transform_indices = @transform_2, window_bounds = array<i64: 1, 64>}, {pipeline_mode = #tpu.pipeline_mode<synchronous>, transform_indices = @transform_3, window_bounds = array<i64: 64, 4>}, {pipeline_mode = #tpu.pipeline_mode<synchronous>, transform_indices = @transform_4, window_bounds = array<i64: 1, 4>}, {transform_indices = @transform_5, window_bounds = array<i64: 1, 2, 8>}]} {
    %c0 = arith.constant 0 : index
    %c0_0 = arith.constant 0 : index
    %c0_1 = arith.constant 0 : index
    %c0_2 = arith.constant 0 : index
    %0 = vector.load %arg2[%c0, %c0_0, %c0_1, %c0_2] : memref<1x3x3x192xbf16, #tpu.memory_space<vmem>>, vector<1x3x3x192xbf16>
    %1 = vector.shape_cast %0 : vector<1x3x3x192xbf16> to vector<3x3x192xbf16>
    %cst = arith.constant 0.000000e+00 : f32
    %2 = vector.broadcast %cst : f32 to vector<2x2x64xf32>
    %3 = vector.extract_strided_slice %1 {offsets = [0, 0, 0], sizes = [2, 2, 192], strides = [1, 1, 1]} : vector<3x3x192xbf16> to vector<2x2x192xbf16>
    %c0_3 = arith.constant 0 : index
    %c0_4 = arith.constant 0 : index
    %c0_5 = arith.constant 0 : index
    %4 = vector.load %arg3[%c0_3, %c0_4, %c0_5] : memref<4x192x64xbf16, #tpu.memory_space<vmem>>, vector<1x192x64xbf16>
    %5 = vector.shape_cast %4 : vector<1x192x64xbf16> to vector<192x64xbf16>
    %6 = vector.shape_cast %3 : vector<2x2x192xbf16> to vector<4x192xbf16>
    %cst_6 = arith.constant dense<0.000000e+00> : vector<4x64xf32>
    %7 = tpu.matmul %6, %5, %cst_6 {dimension_numbers = #tpu.dot_dimension_numbers<[1], [0], [0], [1], [0, 0, 1, 1], [], []>} : vector<4x192xbf16>, vector<192x64xbf16>, vector<4x64xf32> -> vector<4x64xf32>
    %8 = vector.shape_cast %7 : vector<4x64xf32> to vector<2x2x64xf32>
    %9 = arith.addf %2, %8 : vector<2x2x64xf32>
    %10 = vector.extract_strided_slice %1 {offsets = [0, 1, 0], sizes = [2, 2, 192], strides = [1, 1, 1]} : vector<3x3x192xbf16> to vector<2x2x192xbf16>
    %c1 = arith.constant 1 : index
    %c0_7 = arith.constant 0 : index
    %c0_8 = arith.constant 0 : index
    %11 = vector.load %arg3[%c1, %c0_7, %c0_8] : memref<4x192x64xbf16, #tpu.memory_space<vmem>>, vector<1x192x64xbf16>
    %12 = vector.shape_cast %11 : vector<1x192x64xbf16> to vector<192x64xbf16>
    %13 = vector.shape_cast %10 : vector<2x2x192xbf16> to vector<4x192xbf16>
    %cst_9 = arith.constant dense<0.000000e+00> : vector<4x64xf32>
    %14 = tpu.matmul %13, %12, %cst_9 {dimension_numbers = #tpu.dot_dimension_numbers<[1], [0], [0], [1], [0, 0, 1, 1], [], []>} : vector<4x192xbf16>, vector<192x64xbf16>, vector<4x64xf32> -> vector<4x64xf32>
    %15 = vector.shape_cast %14 : vector<4x64xf32> to vector<2x2x64xf32>
    %16 = arith.addf %9, %15 : vector<2x2x64xf32>
    %17 = vector.extract_strided_slice %1 {offsets = [1, 0, 0], sizes = [2, 2, 192], strides = [1, 1, 1]} : vector<3x3x192xbf16> to vector<2x2x192xbf16>
    %c2 = arith.constant 2 : index
    %c0_10 = arith.constant 0 : index
    %c0_11 = arith.constant 0 : index
    %18 = vector.load %arg3[%c2, %c0_10, %c0_11] : memref<4x192x64xbf16, #tpu.memory_space<vmem>>, vector<1x192x64xbf16>
    %19 = vector.shape_cast %18 : vector<1x192x64xbf16> to vector<192x64xbf16>
    %20 = vector.shape_cast %17 : vector<2x2x192xbf16> to vector<4x192xbf16>
    %cst_12 = arith.constant dense<0.000000e+00> : vector<4x64xf32>
    %21 = tpu.matmul %20, %19, %cst_12 {dimension_numbers = #tpu.dot_dimension_numbers<[1], [0], [0], [1], [0, 0, 1, 1], [], []>} : vector<4x192xbf16>, vector<192x64xbf16>, vector<4x64xf32> -> vector<4x64xf32>
    %22 = vector.shape_cast %21 : vector<4x64xf32> to vector<2x2x64xf32>
    %23 = arith.addf %16, %22 : vector<2x2x64xf32>
    %24 = vector.extract_strided_slice %1 {offsets = [1, 1, 0], sizes = [2, 2, 192], strides = [1, 1, 1]} : vector<3x3x192xbf16> to vector<2x2x192xbf16>
    %c3 = arith.constant 3 : index
    %c0_13 = arith.constant 0 : index
    %c0_14 = arith.constant 0 : index
    %25 = vector.load %arg3[%c3, %c0_13, %c0_14] : memref<4x192x64xbf16, #tpu.memory_space<vmem>>, vector<1x192x64xbf16>
    %26 = vector.shape_cast %25 : vector<1x192x64xbf16> to vector<192x64xbf16>
    %27 = vector.shape_cast %24 : vector<2x2x192xbf16> to vector<4x192xbf16>
    %cst_15 = arith.constant dense<0.000000e+00> : vector<4x64xf32>
    %28 = tpu.matmul %27, %26, %cst_15 {dimension_numbers = #tpu.dot_dimension_numbers<[1], [0], [0], [1], [0, 0, 1, 1], [], []>} : vector<4x192xbf16>, vector<192x64xbf16>, vector<4x64xf32> -> vector<4x64xf32>
    %29 = vector.shape_cast %28 : vector<4x64xf32> to vector<2x2x64xf32>
    %30 = arith.addf %23, %29 : vector<2x2x64xf32>
    %c0_16 = arith.constant 0 : index
    %c0_17 = arith.constant 0 : index
    %31 = vector.load %arg4[%c0_16, %c0_17] : memref<1x64xf32, #tpu.memory_space<vmem>>, vector<1x64xf32>
    %32 = vector.shape_cast %31 : vector<1x64xf32> to vector<1x1x64xf32>
    %33 = vector.broadcast %32 : vector<1x1x64xf32> to vector<2x2x64xf32>
    %34 = arith.addf %30, %33 : vector<2x2x64xf32>
    %cst_18 = arith.constant 0.000000e+00 : f32
    %35 = vector.broadcast %cst_18 : f32 to vector<2x2x64xf32>
    %36 = arith.maximumf %34, %35 : vector<2x2x64xf32>
    %37 = arith.truncf %36 : vector<2x2x64xf32> to vector<2x2x64xbf16>
    %c0_19 = arith.constant 0 : index
    %c0_20 = arith.constant 0 : index
    %38 = vector.load %arg5[%c0_19, %c0_20] : memref<64x4xbf16, #tpu.memory_space<vmem>>, vector<64x4xbf16>
    %39 = vector.shape_cast %37 : vector<2x2x64xbf16> to vector<4x64xbf16>
    %cst_21 = arith.constant dense<0.000000e+00> : vector<4x4xf32>
    %40 = tpu.matmul %39, %38, %cst_21 {dimension_numbers = #tpu.dot_dimension_numbers<[1], [0], [0], [1], [0, 0, 1, 1], [], []>} : vector<4x64xbf16>, vector<64x4xbf16>, vector<4x4xf32> -> vector<4x4xf32>
    %41 = vector.shape_cast %40 : vector<4x4xf32> to vector<2x2x4xf32>
    %c0_22 = arith.constant 0 : index
    %c0_23 = arith.constant 0 : index
    %42 = vector.load %arg6[%c0_22, %c0_23] : memref<1x4xf32, #tpu.memory_space<vmem>>, vector<1x4xf32>
    %43 = vector.shape_cast %42 : vector<1x4xf32> to vector<1x1x4xf32>
    %44 = vector.broadcast %43 : vector<1x1x4xf32> to vector<2x2x4xf32>
    %45 = arith.addf %41, %44 : vector<2x2x4xf32>
    %46 = vector.shape_cast %45 : vector<2x2x4xf32> to vector<1x2x8xf32>
    %c0_24 = arith.constant 0 : index
    %c0_25 = arith.constant 0 : index
    %c0_26 = arith.constant 0 : index
    %47 = vector.load %arg7[%c0_24, %c0_25, %c0_26] : memref<1x2x8xf32, #tpu.memory_space<vmem>>, vector<1x2x8xf32>
    tpu.vector_store %arg7[%c0_24, %c0_25, %c0_26], %46 {strides = array<i32>} : memref<1x2x8xf32, #tpu.memory_space<vmem>>, vector<1x2x8xf32>,
    return
  }
  func.func @transform_0(%arg0: i32, %arg1: i32) -> (i32, i32, i32, i32) {
    %c0_i32 = arith.constant 0 : i32
    %c0_i32_0 = arith.constant 0 : i32
    %c0_i32_1 = arith.constant 0 : i32
    %c0_i32_2 = arith.constant 0 : i32
    return %arg0, %c0_i32, %c0_i32_0, %c0_i32_1 : i32, i32, i32, i32
  }
  func.func @transform_1(%arg0: i32, %arg1: i32) -> (i32, i32, i32) {
    %c0_i32 = arith.constant 0 : i32
    %c0_i32_0 = arith.constant 0 : i32
    %c0_i32_1 = arith.constant 0 : i32
    %c0_i32_2 = arith.constant 0 : i32
    return %c0_i32, %c0_i32_0, %c0_i32_1 : i32, i32, i32
  }
  func.func @transform_2(%arg0: i32, %arg1: i32) -> (i32, i32) {
    %c0_i32 = arith.constant 0 : i32
    %c0_i32_0 = arith.constant 0 : i32
    %c0_i32_1 = arith.constant 0 : i32
    return %c0_i32, %c0_i32_0 : i32, i32
  }
  func.func @transform_3(%arg0: i32, %arg1: i32) -> (i32, i32) {
    %c0_i32 = arith.constant 0 : i32
    %c0_i32_0 = arith.constant 0 : i32
    %c0_i32_1 = arith.constant 0 : i32
    return %c0_i32, %c0_i32_0 : i32, i32
  }
  func.func @transform_4(%arg0: i32, %arg1: i32) -> (i32, i32) {
    %c0_i32 = arith.constant 0 : i32
    %c0_i32_0 = arith.constant 0 : i32
    %c0_i32_1 = arith.constant 0 : i32
    return %c0_i32, %c0_i32_0 : i32, i32
  }
  func.func @transform_5(%arg0: i32, %arg1: i32) -> (i32, i32, i32) {
    %c0_i32 = arith.constant 0 : i32
    %c0_i32_0 = arith.constant 0 : i32
    return %arg0, %arg1, %c0_i32 : i32, i32, i32
  }
}

module attributes {stable_mosaic.version = 11 : i64} {
  func.func @_decoder_kernel(%arg0: i32, %arg1: memref<1x4x6x6xf32, #tpu.memory_space<vmem>>, %arg2: memref<1x6x6x52xbf16, #tpu.memory_space<vmem>>, %arg3: memref<9x52x4xbf16, #tpu.memory_space<vmem>>, %arg4: memref<4x4x4xf32, #tpu.memory_space<vmem>>, %arg5: memref<1x4x16xf32, #tpu.memory_space<vmem>>) attributes {dimension_semantics = [#tpu.dimension_semantics<parallel>], iteration_bounds = array<i64: 2>, scalar_prefetch = 0 : i64, scratch_operands = 0 : i64, tpu.core_type = #tpu.core_type<tc>, window_params = [{transform_indices = @transform_0, window_bounds = array<i64: 1, 4, 6, 6>}, {transform_indices = @transform_1, window_bounds = array<i64: 1, 6, 6, 52>}, {pipeline_mode = #tpu.pipeline_mode<synchronous>, transform_indices = @transform_2, window_bounds = array<i64: 9, 52, 4>}, {pipeline_mode = #tpu.pipeline_mode<synchronous>, transform_indices = @transform_3, window_bounds = array<i64: 4, 4, 4>}, {transform_indices = @transform_4, window_bounds = array<i64: 1, 4, 16>}]} {
    %c0 = arith.constant 0 : index
    %c0_0 = arith.constant 0 : index
    %c0_1 = arith.constant 0 : index
    %c0_2 = arith.constant 0 : index
    %0 = vector.load %arg2[%c0, %c0_0, %c0_1, %c0_2] : memref<1x6x6x52xbf16, #tpu.memory_space<vmem>>, vector<1x6x6x4xbf16>
    %1 = vector.shape_cast %0 : vector<1x6x6x4xbf16> to vector<6x6x4xbf16>
    %2 = arith.extf %1 : vector<6x6x4xbf16> to vector<6x6x4xf32>
    %cst = arith.constant dense<0xFF800000> : vector<6x6xf32>
    %3 = vector.multi_reduction <maximumf>, %2, %cst [2] : vector<6x6x4xf32> to vector<6x6xf32>
    %4 = vector.shape_cast %3 : vector<6x6xf32> to vector<6x6x1xf32>
    %5 = vector.broadcast %4 : vector<6x6x1xf32> to vector<6x6x4xf32>
    %6 = arith.subf %2, %5 : vector<6x6x4xf32>
    %7 = math.exp %6 : vector<6x6x4xf32>
    %cst_3 = arith.constant dense<0.000000e+00> : vector<6x6xf32>
    %8 = vector.multi_reduction <add>, %7, %cst_3 [2] : vector<6x6x4xf32> to vector<6x6xf32>
    %9 = vector.shape_cast %8 : vector<6x6xf32> to vector<6x6x1xf32>
    %cst_4 = arith.constant 1.000000e+00 : f32
    %10 = vector.broadcast %cst_4 : f32 to vector<6x6x1xf32>
    %11 = arith.divf %10, %9 : vector<6x6x1xf32>
    %cst_5 = arith.constant 1.000000e+00 : f32
    %12 = vector.broadcast %cst_5 : f32 to vector<6x6x1xf32>
    %13 = arith.subf %12, %11 : vector<6x6x1xf32>
    %14 = tpu.iota {dimensions = array<i32: 2>} : vector<6x6x52xi32>
    %c4_i32 = arith.constant 4 : i32
    %15 = vector.broadcast %c4_i32 : i32 to vector<6x6x52xi32>
    %16 = arith.cmpi slt, %14, %15 : vector<6x6x52xi32>
    %cst_6 = arith.constant 1.000000e+00 : f32
    %17 = vector.broadcast %cst_6 : f32 to vector<6x6x52xf32>
    %18 = vector.shape_cast %13 : vector<6x6x1xf32> to vector<6x6x1xf32>
    %19 = vector.broadcast %18 : vector<6x6x1xf32> to vector<6x6x52xf32>
    %20 = arith.select %16, %17, %19 : vector<6x6x52xi1>, vector<6x6x52xf32>
    %c0_7 = arith.constant 0 : index
    %c0_8 = arith.constant 0 : index
    %c0_9 = arith.constant 0 : index
    %c0_10 = arith.constant 0 : index
    %21 = vector.load %arg2[%c0_7, %c0_8, %c0_9, %c0_10] : memref<1x6x6x52xbf16, #tpu.memory_space<vmem>>, vector<1x6x6x52xbf16>
    %22 = vector.shape_cast %21 : vector<1x6x6x52xbf16> to vector<6x6x52xbf16>
    %23 = arith.extf %22 : vector<6x6x52xbf16> to vector<6x6x52xf32>
    %24 = arith.mulf %23, %20 : vector<6x6x52xf32>
    %25 = arith.truncf %24 : vector<6x6x52xf32> to vector<6x6x52xbf16>
    %c0_11 = arith.constant 0 : index
    %c0_12 = arith.constant 0 : index
    %c0_13 = arith.constant 0 : index
    %26 = vector.load %arg4[%c0_11, %c0_12, %c0_13] : memref<4x4x4xf32, #tpu.memory_space<vmem>>, vector<4x4x4xf32>
    %27 = vector.extract_strided_slice %25 {offsets = [0, 0, 0], sizes = [4, 4, 52], strides = [1, 1, 1]} : vector<6x6x52xbf16> to vector<4x4x52xbf16>
    %c0_14 = arith.constant 0 : index
    %c0_15 = arith.constant 0 : index
    %c0_16 = arith.constant 0 : index
    %28 = vector.load %arg3[%c0_14, %c0_15, %c0_16] : memref<9x52x4xbf16, #tpu.memory_space<vmem>>, vector<1x52x4xbf16>
    %29 = vector.shape_cast %28 : vector<1x52x4xbf16> to vector<52x4xbf16>
    %30 = vector.shape_cast %27 : vector<4x4x52xbf16> to vector<16x52xbf16>
    %cst_17 = arith.constant dense<0.000000e+00> : vector<16x4xf32>
    %31 = tpu.matmul %30, %29, %cst_17 {dimension_numbers = #tpu.dot_dimension_numbers<[1], [0], [0], [1], [0, 0, 1, 1], [], []>} : vector<16x52xbf16>, vector<52x4xbf16>, vector<16x4xf32> -> vector<16x4xf32>
    %32 = vector.shape_cast %31 : vector<16x4xf32> to vector<4x4x4xf32>
    %33 = arith.addf %26, %32 : vector<4x4x4xf32>
    %34 = vector.extract_strided_slice %25 {offsets = [0, 1, 0], sizes = [4, 4, 52], strides = [1, 1, 1]} : vector<6x6x52xbf16> to vector<4x4x52xbf16>
    %c1 = arith.constant 1 : index
    %c0_18 = arith.constant 0 : index
    %c0_19 = arith.constant 0 : index
    %35 = vector.load %arg3[%c1, %c0_18, %c0_19] : memref<9x52x4xbf16, #tpu.memory_space<vmem>>, vector<1x52x4xbf16>
    %36 = vector.shape_cast %35 : vector<1x52x4xbf16> to vector<52x4xbf16>
    %37 = vector.shape_cast %34 : vector<4x4x52xbf16> to vector<16x52xbf16>
    %cst_20 = arith.constant dense<0.000000e+00> : vector<16x4xf32>
    %38 = tpu.matmul %37, %36, %cst_20 {dimension_numbers = #tpu.dot_dimension_numbers<[1], [0], [0], [1], [0, 0, 1, 1], [], []>} : vector<16x52xbf16>, vector<52x4xbf16>, vector<16x4xf32> -> vector<16x4xf32>
    %39 = vector.shape_cast %38 : vector<16x4xf32> to vector<4x4x4xf32>
    %40 = arith.addf %33, %39 : vector<4x4x4xf32>
    %41 = vector.extract_strided_slice %25 {offsets = [0, 2, 0], sizes = [4, 4, 52], strides = [1, 1, 1]} : vector<6x6x52xbf16> to vector<4x4x52xbf16>
    %c2 = arith.constant 2 : index
    %c0_21 = arith.constant 0 : index
    %c0_22 = arith.constant 0 : index
    %42 = vector.load %arg3[%c2, %c0_21, %c0_22] : memref<9x52x4xbf16, #tpu.memory_space<vmem>>, vector<1x52x4xbf16>
    %43 = vector.shape_cast %42 : vector<1x52x4xbf16> to vector<52x4xbf16>
    %44 = vector.shape_cast %41 : vector<4x4x52xbf16> to vector<16x52xbf16>
    %cst_23 = arith.constant dense<0.000000e+00> : vector<16x4xf32>
    %45 = tpu.matmul %44, %43, %cst_23 {dimension_numbers = #tpu.dot_dimension_numbers<[1], [0], [0], [1], [0, 0, 1, 1], [], []>} : vector<16x52xbf16>, vector<52x4xbf16>, vector<16x4xf32> -> vector<16x4xf32>
    %46 = vector.shape_cast %45 : vector<16x4xf32> to vector<4x4x4xf32>
    %47 = arith.addf %40, %46 : vector<4x4x4xf32>
    %48 = vector.extract_strided_slice %25 {offsets = [1, 0, 0], sizes = [4, 4, 52], strides = [1, 1, 1]} : vector<6x6x52xbf16> to vector<4x4x52xbf16>
    %c3 = arith.constant 3 : index
    %c0_24 = arith.constant 0 : index
    %c0_25 = arith.constant 0 : index
    %49 = vector.load %arg3[%c3, %c0_24, %c0_25] : memref<9x52x4xbf16, #tpu.memory_space<vmem>>, vector<1x52x4xbf16>
    %50 = vector.shape_cast %49 : vector<1x52x4xbf16> to vector<52x4xbf16>
    %51 = vector.shape_cast %48 : vector<4x4x52xbf16> to vector<16x52xbf16>
    %cst_26 = arith.constant dense<0.000000e+00> : vector<16x4xf32>
    %52 = tpu.matmul %51, %50, %cst_26 {dimension_numbers = #tpu.dot_dimension_numbers<[1], [0], [0], [1], [0, 0, 1, 1], [], []>} : vector<16x52xbf16>, vector<52x4xbf16>, vector<16x4xf32> -> vector<16x4xf32>
    %53 = vector.shape_cast %52 : vector<16x4xf32> to vector<4x4x4xf32>
    %54 = arith.addf %47, %53 : vector<4x4x4xf32>
    %55 = vector.extract_strided_slice %25 {offsets = [1, 1, 0], sizes = [4, 4, 52], strides = [1, 1, 1]} : vector<6x6x52xbf16> to vector<4x4x52xbf16>
    %c4 = arith.constant 4 : index
    %c0_27 = arith.constant 0 : index
    %c0_28 = arith.constant 0 : index
    %56 = vector.load %arg3[%c4, %c0_27, %c0_28] : memref<9x52x4xbf16, #tpu.memory_space<vmem>>, vector<1x52x4xbf16>
    %57 = vector.shape_cast %56 : vector<1x52x4xbf16> to vector<52x4xbf16>
    %58 = vector.shape_cast %55 : vector<4x4x52xbf16> to vector<16x52xbf16>
    %cst_29 = arith.constant dense<0.000000e+00> : vector<16x4xf32>
    %59 = tpu.matmul %58, %57, %cst_29 {dimension_numbers = #tpu.dot_dimension_numbers<[1], [0], [0], [1], [0, 0, 1, 1], [], []>} : vector<16x52xbf16>, vector<52x4xbf16>, vector<16x4xf32> -> vector<16x4xf32>
    %60 = vector.shape_cast %59 : vector<16x4xf32> to vector<4x4x4xf32>
    %61 = arith.addf %54, %60 : vector<4x4x4xf32>
    %62 = vector.extract_strided_slice %25 {offsets = [1, 2, 0], sizes = [4, 4, 52], strides = [1, 1, 1]} : vector<6x6x52xbf16> to vector<4x4x52xbf16>
    %c5 = arith.constant 5 : index
    %c0_30 = arith.constant 0 : index
    %c0_31 = arith.constant 0 : index
    %63 = vector.load %arg3[%c5, %c0_30, %c0_31] : memref<9x52x4xbf16, #tpu.memory_space<vmem>>, vector<1x52x4xbf16>
    %64 = vector.shape_cast %63 : vector<1x52x4xbf16> to vector<52x4xbf16>
    %65 = vector.shape_cast %62 : vector<4x4x52xbf16> to vector<16x52xbf16>
    %cst_32 = arith.constant dense<0.000000e+00> : vector<16x4xf32>
    %66 = tpu.matmul %65, %64, %cst_32 {dimension_numbers = #tpu.dot_dimension_numbers<[1], [0], [0], [1], [0, 0, 1, 1], [], []>} : vector<16x52xbf16>, vector<52x4xbf16>, vector<16x4xf32> -> vector<16x4xf32>
    %67 = vector.shape_cast %66 : vector<16x4xf32> to vector<4x4x4xf32>
    %68 = arith.addf %61, %67 : vector<4x4x4xf32>
    %69 = vector.extract_strided_slice %25 {offsets = [2, 0, 0], sizes = [4, 4, 52], strides = [1, 1, 1]} : vector<6x6x52xbf16> to vector<4x4x52xbf16>
    %c6 = arith.constant 6 : index
    %c0_33 = arith.constant 0 : index
    %c0_34 = arith.constant 0 : index
    %70 = vector.load %arg3[%c6, %c0_33, %c0_34] : memref<9x52x4xbf16, #tpu.memory_space<vmem>>, vector<1x52x4xbf16>
    %71 = vector.shape_cast %70 : vector<1x52x4xbf16> to vector<52x4xbf16>
    %72 = vector.shape_cast %69 : vector<4x4x52xbf16> to vector<16x52xbf16>
    %cst_35 = arith.constant dense<0.000000e+00> : vector<16x4xf32>
    %73 = tpu.matmul %72, %71, %cst_35 {dimension_numbers = #tpu.dot_dimension_numbers<[1], [0], [0], [1], [0, 0, 1, 1], [], []>} : vector<16x52xbf16>, vector<52x4xbf16>, vector<16x4xf32> -> vector<16x4xf32>
    %74 = vector.shape_cast %73 : vector<16x4xf32> to vector<4x4x4xf32>
    %75 = arith.addf %68, %74 : vector<4x4x4xf32>
    %76 = vector.extract_strided_slice %25 {offsets = [2, 1, 0], sizes = [4, 4, 52], strides = [1, 1, 1]} : vector<6x6x52xbf16> to vector<4x4x52xbf16>
    %c7 = arith.constant 7 : index
    %c0_36 = arith.constant 0 : index
    %c0_37 = arith.constant 0 : index
    %77 = vector.load %arg3[%c7, %c0_36, %c0_37] : memref<9x52x4xbf16, #tpu.memory_space<vmem>>, vector<1x52x4xbf16>
    %78 = vector.shape_cast %77 : vector<1x52x4xbf16> to vector<52x4xbf16>
    %79 = vector.shape_cast %76 : vector<4x4x52xbf16> to vector<16x52xbf16>
    %cst_38 = arith.constant dense<0.000000e+00> : vector<16x4xf32>
    %80 = tpu.matmul %79, %78, %cst_38 {dimension_numbers = #tpu.dot_dimension_numbers<[1], [0], [0], [1], [0, 0, 1, 1], [], []>} : vector<16x52xbf16>, vector<52x4xbf16>, vector<16x4xf32> -> vector<16x4xf32>
    %81 = vector.shape_cast %80 : vector<16x4xf32> to vector<4x4x4xf32>
    %82 = arith.addf %75, %81 : vector<4x4x4xf32>
    %83 = vector.extract_strided_slice %25 {offsets = [2, 2, 0], sizes = [4, 4, 52], strides = [1, 1, 1]} : vector<6x6x52xbf16> to vector<4x4x52xbf16>
    %c8 = arith.constant 8 : index
    %c0_39 = arith.constant 0 : index
    %c0_40 = arith.constant 0 : index
    %84 = vector.load %arg3[%c8, %c0_39, %c0_40] : memref<9x52x4xbf16, #tpu.memory_space<vmem>>, vector<1x52x4xbf16>
    %85 = vector.shape_cast %84 : vector<1x52x4xbf16> to vector<52x4xbf16>
    %86 = vector.shape_cast %83 : vector<4x4x52xbf16> to vector<16x52xbf16>
    %cst_41 = arith.constant dense<0.000000e+00> : vector<16x4xf32>
    %87 = tpu.matmul %86, %85, %cst_41 {dimension_numbers = #tpu.dot_dimension_numbers<[1], [0], [0], [1], [0, 0, 1, 1], [], []>} : vector<16x52xbf16>, vector<52x4xbf16>, vector<16x4xf32> -> vector<16x4xf32>
    %88 = vector.shape_cast %87 : vector<16x4xf32> to vector<4x4x4xf32>
    %89 = arith.addf %82, %88 : vector<4x4x4xf32>
    %90 = vector.shape_cast %89 : vector<4x4x4xf32> to vector<1x4x16xf32>
    %c0_42 = arith.constant 0 : index
    %c0_43 = arith.constant 0 : index
    %c0_44 = arith.constant 0 : index
    %91 = vector.load %arg5[%c0_42, %c0_43, %c0_44] : memref<1x4x16xf32, #tpu.memory_space<vmem>>, vector<1x4x16xf32>
    tpu.vector_store %arg5[%c0_42, %c0_43, %c0_44], %90 {strides = array<i32>} : memref<1x4x16xf32, #tpu.memory_space<vmem>>, vector<1x4x16xf32>,
    return
  }
  func.func @transform_0(%arg0: i32) -> (i32, i32, i32, i32) {
    %c0_i32 = arith.constant 0 : i32
    %c0_i32_0 = arith.constant 0 : i32
    %c0_i32_1 = arith.constant 0 : i32
    %c0_i32_2 = arith.constant 0 : i32
    return %arg0, %c0_i32, %c0_i32_0, %c0_i32_1 : i32, i32, i32, i32
  }
  func.func @transform_1(%arg0: i32) -> (i32, i32, i32, i32) {
    %c0_i32 = arith.constant 0 : i32
    %c0_i32_0 = arith.constant 0 : i32
    %c0_i32_1 = arith.constant 0 : i32
    %c0_i32_2 = arith.constant 0 : i32
    return %arg0, %c0_i32, %c0_i32_0, %c0_i32_1 : i32, i32, i32, i32
  }
  func.func @transform_2(%arg0: i32) -> (i32, i32, i32) {
    %c0_i32 = arith.constant 0 : i32
    %c0_i32_0 = arith.constant 0 : i32
    %c0_i32_1 = arith.constant 0 : i32
    %c0_i32_2 = arith.constant 0 : i32
    return %c0_i32, %c0_i32_0, %c0_i32_1 : i32, i32, i32
  }
  func.func @transform_3(%arg0: i32) -> (i32, i32, i32) {
    %c0_i32 = arith.constant 0 : i32
    %c0_i32_0 = arith.constant 0 : i32
    %c0_i32_1 = arith.constant 0 : i32
    %c0_i32_2 = arith.constant 0 : i32
    return %c0_i32, %c0_i32_0, %c0_i32_1 : i32, i32, i32
  }
  func.func @transform_4(%arg0: i32) -> (i32, i32, i32) {
    %c0_i32 = arith.constant 0 : i32
    %c0_i32_0 = arith.constant 0 : i32
    %c0_i32_1 = arith.constant 0 : i32
    return %arg0, %c0_i32, %c0_i32_0 : i32, i32, i32
  }
}

</mosaic_0001>

<bundles_post_ra>
// kernel: tpu_custom_call.1
= control target key start
LH: loop header
LB: loop body
LE: loop exit
PB: predicated region body
PF: predicated region fallthrough
CT: control target
= control target key end

     0   :  { %7 = vsyncpa [#allocation3], 0  ;;  %s363_s0 = inlined_call_operand.hbm [shape: bf16[8,8,12], index: 0, kind: input, shape index: {}]   ;;  %s364_s1 = inlined_call_operand.hbm [shape: bf16[12,16], index: 1, kind: input, shape index: {}]   ;;  %s365_s2 = inlined_call_operand.hbm [shape: f32[8,8,16], index: 2, kind: output, shape index: {}]  }
   0x1   :  { %8 = vsyncpa [#allocation6], 0 }
   0x2   :  { %9 = vsyncpa [#allocation4], 0  ;;  %s297_s9 = smov [#allocation2]   ;;  %s225_s13 = scalar_lea.hbm %s363_s0, 512 }
   0x3   :  { %s15_s10 = sshll.u32 %s297_s9, 4  ;;  %p226_p0 = scmp.ne.s32.totalorder %s363_s0, %s225_s13  ;;  %s16_s10 = int_to_ptr.vmem [resolvable:$true] %s15_s10 }
   0x4   :  { %p229_p1 = scmp.lt.u32.totalorder %s225_s13, %s363_s0 }
   0x6   :  { %p231_p2 = pnand %p229_p1, %p226_p0 }
   0x8   :  { %234 = shalt.err (!%p231_p2)
}
   0x9   :  { %s235_s18 = scalar_lea.vmem %s16_s10, 512  ;;  %p240_p4 = scmp.lt.s32.totalorder %s16_s10, %s16_s10 }
   0xa   :  { %p236_p3 = scmp.ne.s32.totalorder %s16_s10, %s235_s18  ;;  %p241_p5 = scmp.lt.s32.totalorder %s235_s18, %s235_s18 }
   0xc   :  { %p242_p6 = por %p241_p5, %p240_p4 }
   0xe   :  { %p243_p7 = pnand %p242_p6, %p236_p3 }
  0x10   :  { %246 = shalt.err (!%p243_p7)
}
  0x11   :  { %s298_s19 = smov 64   ;;  %s299_s20 = smov 4  }
  0x12   :  { %21 = dma.hbm_to_vmem [thread:$0]  %s363_s0, 512, %s16_s10, [#allocation3], %s298_s19, %s298_s19, %s299_s20  }
  0x13   :  { %s300_s23 = smov [#allocation5]   ;;  %s247_s27 = scalar_lea.hbm %s364_s1, 128 }
  0x14   :  { %s27_s24 = sshll.u32 %s300_s23, 4  ;;  %p248_p8 = scmp.ne.s32.totalorder %s364_s1, %s247_s27  ;;  %s28_s24 = int_to_ptr.vmem [resolvable:$true] %s27_s24 }
  0x15   :  { %p251_p9 = scmp.lt.u32.totalorder %s247_s27, %s364_s1 }
  0x17   :  { %p253_p10 = pnand %p251_p9, %p248_p8 }
  0x19   :  { %256 = shalt.err (!%p253_p10)
}
  0x1a   :  { %s257_s4 = scalar_lea.vmem %s28_s24, 128  ;;  %p262_p12 = scmp.lt.s32.totalorder %s28_s24, %s28_s24 }
  0x1b   :  { %p258_p11 = scmp.ne.s32.totalorder %s28_s24, %s257_s4  ;;  %p263_p13 = scmp.lt.s32.totalorder %s257_s4, %s257_s4 }
  0x1d   :  { %p264_p0 = por %p263_p13, %p262_p12 }
  0x1f   :  { %p265_p1 = pnand %p264_p0, %p258_p11 }
  0x21   :  { %268 = shalt.err (!%p265_p1)
}
  0x22   :  { %33 = dma.hbm_to_vmem [thread:$0]  %s364_s1, 128, %s28_s24, [#allocation6], %s298_s19, %s298_s19, %s299_s20  }
  0x23   :  { %291 = dma.done.wait [#allocation3], 512  }
  0x24   :  { %292 = vsyncadd [#allocation3], 4294966784 }
  0x25   :  { %293 = dma.done.wait [#allocation6], 128  }
  0x26   :  { %294 = vsyncadd [#allocation6], 4294967168  ;;  %vm89_vm0 = vcmask 1045504   ;;  %v220_v0 = vld [vmem:[#allocation5] sm:$0x3f]   ;;  %vm76_vm1 = vcmask 97280  }
  0x27   :  { %v221_v1 = vld [vmem:[#allocation2] sm:$0xff]   ;;  %211 = vmatprep.subr.msk.bf16.mxu0 %vm89_vm0, %v220_v0  ;;  %212 = vmatprep.subr.msk.bf16.mxu1 %vm89_vm0, %v220_v0  ;;  %v91_v2 = vsel %vm89_vm0, %v220_v0, 0  ;;  %v222_v3 = vld [vmem:[#allocation2 + $0x10] sm:$0xff]   ;;  %v223_v4 = vld [vmem:[#allocation2 + $0x8] sm:$0xff]   ;;  %vm158_vm2 = vcmask 130048   ;;  %s301_s1 = smov [#allocation7]  }
  0x28   :  { %200 = vmatpush3.bf16.msra.mxu0 %v91_v2  ;;  %210 = vmatpush3.bf16.msra.mxu1 %v91_v2  ;;  %v224_v5 = vld [vmem:[#allocation2 + $0x18] sm:$0xff]   ;;  %s172_s6 = sshll.u32 %s301_s1, 4  ;;  %s173_s6 = int_to_ptr.vmem [resolvable:$true] %s172_s6 }
  0x29   :  { %201 = vmatprep.mubr.msk.bf16.mxu0 %vm76_vm1, %v221_v1  ;;  %205 = vmatprep.mubr.msk.bf16.mxu1 %vm76_vm1, %v222_v3  ;;  %s269_s7 = scalar_lea.vmem %s173_s6, 1024  ;;  %p274_p3 = scmp.lt.s32.totalorder %s173_s6, %s173_s6 }
  0x2a   :  { %p270_p2 = scmp.ne.s32.totalorder %s173_s6, %s269_s7  ;;  %p275_p4 = scmp.lt.s32.totalorder %s269_s7, %s269_s7 }
  0x2b   :  { %202 = vmatmul.mubr.msk.bf16.vlgmr.msra.gmra.mrb[0].mxu0 %vm76_vm1, %v223_v4  ;;  %206 = vmatmul.mubr.msk.bf16.vlgmr.msra.gmra.mrb[0].mxu1 %vm76_vm1, %v224_v5 }
  0x2c   :  { %p276_p5 = por %p275_p4, %p274_p3 }
  0x2e   :  { %p277_p6 = pnand %p276_p5, %p270_p2 }
  0xfe   :  { %v203_v6 = vpop.f32.mrb[0].mxu0  ;;  %v207_v7 = vpop.f32.mrb[0].mxu1 }
  0xff   :  { %161 = vst.msk [vmem:[#allocation7 + $0x10] sm:$0xff] %vm158_vm2, %v203_v6  ;;  %165 = vst.msk [vmem:[#allocation7 + $0x30] sm:$0xff] %vm158_vm2, %v207_v7  ;;  %v127_v8 = vpop.f32.mrb[1].mxu0  ;;  %v143_v9 = vpop.f32.mrb[1].mxu1 }
 0x100   :  { %159 = vst.msk [vmem:[#allocation7] sm:$0xff] %vm158_vm2, %v127_v8  ;;  %163 = vst.msk [vmem:[#allocation7 + $0x20] sm:$0xff] %vm158_vm2, %v143_v9  ;;  %v204_v10 = vpop.f32.mrb[2].mxu0  ;;  %v208_v11 = vpop.f32.mrb[2].mxu1 }
 0x101   :  { %162 = vst.msk [vmem:[#allocation7 + $0x18] sm:$0xff] %vm158_vm2, %v204_v10  ;;  %166 = vst.msk [vmem:[#allocation7 + $0x38] sm:$0xff] %vm158_vm2, %v208_v11  ;;  %v130_v12 = vpop.f32.mrb[3].mxu0  ;;  %v146_v13 = vpop.f32.mrb[3].mxu1 }
 0x102   :  { %160 = vst.msk [vmem:[#allocation7 + $0x8] sm:$0xff] %vm158_vm2, %v130_v12  ;;  %164 = vst.msk [vmem:[#allocation7 + $0x28] sm:$0xff] %vm158_vm2, %v146_v13 }
 0x103   :  { %280 = shalt.err (!%p277_p6)
}
 0x104   :  { %s281_s10 = scalar_lea.hbm %s365_s2, 1024 }
 0x105   :  { %p282_p7 = scmp.ne.s32.totalorder %s365_s2, %s281_s10  ;;  %p285_p8 = scmp.lt.u32.totalorder %s281_s10, %s365_s2 }
 0x107   :  { %p287_p9 = pnand %p285_p8, %p282_p7 }
 0x109   :  { %290 = shalt.err (!%p287_p9)
}
 0x10a   :  { %s302_s15 = smov 128   ;;  %s303_s16 = smov 8  }
 0x10b   :  { %178 = dma.vmem_to_hbm [thread:$0]  %s173_s6, 1024, %s365_s2, [#allocation4], %s302_s15, %s302_s15, %s303_s16  }
 0x10c   :  { %295 = dma.done.wait [#allocation4], 1024  }
 0x10d   :  { %296 = vsyncadd [#allocation4], 4294966272 }
 0x10e   :  { %182 = vsyncpa [#allocation3], 1 }
 0x10f   :  { %183 = vsyncpa [#allocation6], 1 }
 0x110   :  { %184 = vsyncpa [#allocation4], 1 }

// kernel: tpu_custom_call.1
= control target key start
LH: loop header
LB: loop body
LE: loop exit
PB: predicated region body
PF: predicated region fallthrough
CT: control target
= control target key end

     0   :  { %v10_v0 = vlaneseq  ;;  %s151_s0 = inlined_call_operand.vmem [shape: f32[1,6,6], index: 0, kind: input, shape index: {}]   ;;  %s152_s1 = inlined_call_operand.hbm [shape: f32[6,6,52], index: 1, kind: output, shape index: {}]  }
   0x1   :  { %6 = vsyncpa [#allocation3], 0  ;;  %v9_v2 = vld [vmem:[%s151_s0] sm:$0x3f]  ;;  %vm61_vm1 = vcmask 422912   ;;  %s111_s0 = smov [#allocation2]  }
   0x2   :  { %v14_v1 = vshrl.u32 %v10_v0, 7  ;;  %v11_v15 = vand.u32 127, %v10_v0  ;;  %s73_s8 = sshll.u32 %s111_s0, 4  ;;  %s74_s8 = int_to_ptr.vmem [resolvable:$true] %s73_s8 }
   0x3   :  { %s87_s9 = scalar_lea.vmem %s74_s8, 768  ;;  %p92_p1 = scmp.lt.s32.totalorder %s74_s8, %s74_s8 }
   0x4   :  { %v29_v3 = vsub.s32 2, %v14_v1  ;;  %v15_v4 = vsub.s32 0, %v14_v1  ;;  %v36_v5 = vsub.s32 3, %v14_v1  ;;  %v22_v6 = vsub.s32 1, %v14_v1  ;;  %p88_p0 = scmp.ne.s32.totalorder %s74_s8, %s87_s9  ;;  %p93_p2 = scmp.lt.s32.totalorder %s87_s9, %s87_s9 }
   0x5   :  { %v50_v11 = vsub.s32 5, %v14_v1  ;;  %v43_v12 = vsub.s32 4, %v14_v1  ;;  %vm12_vm0 = vcmp.lt.s32.totalorder %v11_v15, 4 }
   0x6   :  { %v30_v7 = vrot.slane %v9_v2, %v29_v3  ;;  %v16_v8 = vrot.slane %v9_v2, %v15_v4  ;;  %v37_v9 = vrot.slane %v9_v2, %v36_v5  ;;  %v23_v10 = vrot.slane %v9_v2, %v22_v6  ;;  %p94_p3 = por %p93_p2, %p92_p1 }
   0x7   :  { %v51_v13 = vrot.slane %v9_v2, %v50_v11  ;;  %v44_v14 = vrot.slane %v9_v2, %v43_v12 }
   0x8   :  { %32 = vbcast.lane.b32.xlu1 %v30_v7, 256  ;;  %18 = vbcast.lane.b32.xlu0 %v16_v8, 256  ;;  %p95_p4 = pnand %p94_p3, %p88_p0 }
   0xc   :  { %39 = vbcast.lane.b32.xlu1 %v37_v9, 256  ;;  %25 = vbcast.lane.b32.xlu0 %v23_v10, 256 }
  0x10   :  { %53 = vbcast.lane.b32.xlu1 %v51_v13, 256  ;;  %46 = vbcast.lane.b32.xlu0 %v44_v14, 256 }
  0x7a   :  { %v33_v16 = vpop.permute.xlu1 %32  ;;  %v19_v17 = vpop.permute.xlu0 %18 }
  0x7b   :  { %v57_v18 = vsel %vm12_vm0, 1.0, %v33_v16  ;;  %v55_v19 = vsel %vm12_vm0, 1.0, %v19_v17 }
  0x7c   :  { %64 = vst.msk [vmem:[#allocation2 + $0x10] sm:$0x3f] %vm61_vm1, %v57_v18  ;;  %62 = vst.msk [vmem:[#allocation2] sm:$0x3f] %vm61_vm1, %v55_v19 }
  0x7e   :  { %v40_v20 = vpop.permute.xlu1 %39  ;;  %v26_v21 = vpop.permute.xlu0 %25 }
  0x7f   :  { %v58_v22 = vsel %vm12_vm0, 1.0, %v40_v20  ;;  %v56_v23 = vsel %vm12_vm0, 1.0, %v26_v21 }
  0x80   :  { %65 = vst.msk [vmem:[#allocation2 + $0x18] sm:$0x3f] %vm61_vm1, %v58_v22  ;;  %63 = vst.msk [vmem:[#allocation2 + $0x8] sm:$0x3f] %vm61_vm1, %v56_v23 }
  0x82   :  { %v54_v24 = vpop.permute.xlu1 %53  ;;  %v47_v25 = vpop.permute.xlu0 %46 }
  0x83   :  { %v60_v26 = vsel %vm12_vm0, 1.0, %v54_v24  ;;  %v59_v27 = vsel %vm12_vm0, 1.0, %v47_v25 }
  0x84   :  { %67 = vst.msk [vmem:[#allocation2 + $0x28] sm:$0x3f] %vm61_vm1, %v60_v26  ;;  %66 = vst.msk [vmem:[#allocation2 + $0x20] sm:$0x3f] %vm61_vm1, %v59_v27 }
  0x85   :  { %98 = shalt.err (!%p95_p4)
}
  0x86   :  { %s99_s12 = scalar_lea.hbm %s152_s1, 768 }
  0x87   :  { %p100_p5 = scmp.ne.s32.totalorder %s152_s1, %s99_s12  ;;  %p103_p6 = scmp.lt.u32.totalorder %s99_s12, %s152_s1 }
  0x89   :  { %p105_p7 = pnand %p103_p6, %p100_p5 }
  0x8b   :  { %108 = shalt.err (!%p105_p7)
}
  0x8c   :  { %s112_s17 = smov 128   ;;  %s113_s18 = smov 8  }
  0x8d   :  { %79 = dma.vmem_to_hbm [thread:$0]  %s74_s8, 768, %s152_s1, [#allocation3], %s112_s17, %s112_s17, %s113_s18  }
  0x8e   :  { %109 = dma.done.wait [#allocation3], 768  }
  0x8f   :  { %110 = vsyncadd [#allocation3], 4294966528 }
  0x90   :  { %83 = vsyncpa [#allocation3], 1 }

// kernel: sinet_forward.4
= control target key start
LH: loop header
LB: loop body
LE: loop exit
PB: predicated region body
PF: predicated region fallthrough
CT: control target
= control target key end

     0   :  { %s1278_s12 = smov 0   ;;  %s1280_s13 = smov 0   ;;  %s1416_s0 = inlined_call_operand.vmem [shape: bf16[2,9,9,12], index: 0, kind: input, shape index: {}]   ;;  %s1417_s1 = inlined_call_operand.vmem [shape: bf16[4,12,16], index: 1, kind: input, shape index: {}]   ;;  %s1418_s2 = inlined_call_operand.vmem [shape: f32[1,16], index: 2, kind: input, shape index: {}]   ;;  %s1419_s3 = inlined_call_operand.vmem [shape: bf16[2,8,128], index: 3, kind: output, shape index: {}]  }
   0x1   :  { %s1282_s14 = smov 0  }
   0x2 LB: > { %s25_s15 = sadd.s32 1, %s1243_s13  ;;  %p1043_p0 = scmp.ge.s32.totalorder %s1247_s14, 1  ;;  %s1247_s14 = sphi %s1282_s14, %s13_s14   ;;  %s1243_s13 = sphi %s1280_s13, %s1423_s13   ;;  %s1239_s12 = sphi %s1278_s12, %s1422_s12  }
   0x3   : > { %p27_p1 = scmp.ge.s32.totalorder %s25_s15, 2  ;;  %p151_p2 = scmp.lt.s32.totalorder %s1247_s14, 3 }
   0x5   : > { %s1425_s15 = smov (%p27_p1, %s25_s15), 0  ;;  %p152_p3 = pnand %p1043_p0, %p151_p2 }
   0x6   : > { %v1213_v0 = vld [vmem:[%s1417_s1] sm:$0x3f] (!%p152_p3)   ;;  %vm248_vm0 = vcmask (!%p152_p3), 1045504   ;;  %p177_p4 = scmp.lt.s32.totalorder (!%p152_p3), %s1239_s12, 1  ;;  %v1214_v1 = vld [vmem:[%s1417_s1 + $0x10] sm:$0x3f] (!%p152_p3)  }
   0x7   : > { %155 = sbr.rel (%p152_p3) target bundleno = 412 (0x19c), region = 32  ;;  %1175 = vmatprep.subr.msk.bf16.mxu1 (!%p152_p3), %vm248_vm0, %v1213_v0  ;;  %v250_v2 = vsel (!%p152_p3), %vm248_vm0, %v1213_v0, 0  ;;  %v1216_v3 = vld [vmem:[%s1417_s1 + $0x8] sm:$0x3f] (!%p152_p3)   ;;  %1177 = vmatprep.subr.msk.bf16.mxu0 (!%p152_p3), %vm248_vm0, %v1214_v1  ;;  %v575_v4 = vsel (!%p152_p3), %vm248_vm0, %v1214_v1, 0  ;;  %vm235_vm1 = vcmask (!%p152_p3), 97280  }
   0x8   : > { %1112 = vmatpush3.bf16.msra.mxu1 (!%p152_p3), %v250_v2  ;;  %1132 = vmatpush3.bf16.msra.mxu0 (!%p152_p3), %v575_v4  ;;  %v1218_v5 = vld [vmem:[%s1417_s1 + $0x18] sm:$0x3f] (!%p152_p3)   ;;  %v473_v6 = vsel (!%p152_p3), %vm248_vm0, %v1216_v3, 0  ;;  %vm328_vm2 = vsmask.f32 (!%p152_p3), 3328  ;;  %s1251_s30 = smov (!%p152_p3), 48  }
   0x9   : > { %1176 = vmatprep.subr.msk.bf16.mxu1 (!%p152_p3), %vm248_vm0, %v1216_v3  ;;  %1178 = vmatprep.subr.msk.bf16.mxu0 (!%p152_p3), %vm248_vm0, %v1218_v5  ;;  %v690_v7 = vsel (!%p152_p3), %vm248_vm0, %v1218_v5, 0  ;;  %vm329_vm3 = vsmask.f32 (!%p152_p3), 7440  ;;  %s1252_s4 = smov (!%p152_p3), 16   ;;  %s1253_s5 = smov (!%p152_p3), 64   ;;  %vm952_vm5 = vcmask (!%p152_p3), 130048  }
   0xa   : > { %vm1363_vm4 = vmor (!%p152_p3), %vm328_vm2, %vm329_vm3  ;;  %s1254_s6 = smov (!%p152_p3), 32   ;;  %s1255_s7 = smov (!%p152_p3), 96   ;;  %vm954_vm6 = vcmask (!%p152_p3), 261120   ;;  %vm956_vm7 = vcmask (!%p152_p3), 392192   ;;  %vm958_vm8 = vcmask (!%p152_p3), 523264   ;;  %vm960_vm9 = vcmask (!%p152_p3), 654336  }
   0xb   : > { %s1256_s8 = smov (!%p152_p3), 80   ;;  %s1257_s9 = smov (!%p152_p3), 112   ;;  %vm962_vm10 = vcmask (!%p152_p3), 785408   ;;  %vm964_vm11 = vcmask (!%p152_p3), 916480  }
   0xe   : > { %s1427_s12 = smov (!%p177_p4, %s1239_s12), 1 }
   0xf   : > { %s1179_s22 = smul.u32 72, %s1427_s12  ;;  %s1045_s10 = sshll.u32 %s1427_s12, 2 }
  0x10   : > { %s188_s17 = scalar_lea.vmem %s1419_s3, %s1045_s10 }
  0x11   : > { %s1319_s27 = scalar_lea.vmem %s1416_s0, %s1179_s22 }
  0x12   : > { %v190_v8 = vld [vmem:[%s1319_s27] sm:$0xf]  ;;  %v192_v9 = vld [vmem:[%s1319_s27 + $0x8] sm:$0xf]  ;;  %v194_v10 = vld [vmem:[%s1319_s27 + $0x10] sm:$0xf] }
  0x13   : > { %v1046_v11 = vcombine.low %v190_v8, %v192_v9  ;;  %v332_v12 = vshrl.u32 %v190_v8, 16  ;;  %v335_v13 = vshll.u32 %v190_v8, 16  ;;  %v346_v14 = vshrl.u32 %v192_v9, 16  ;;  %v196_v15 = vld [vmem:[%s1319_s27 + $0x18] sm:$0xf] }
  0x14   : > { %v349_v16 = vshll.u32 %v192_v9, 16  ;;  %v360_v17 = vshrl.u32 %v194_v10, 16  ;;  %v363_v18 = vshll.u32 %v194_v10, 16  ;;  %v1068_v19 = vcombine.low %v192_v9, %v194_v10  ;;  %v198_v20 = vld [vmem:[%s1319_s27 + $0x20] sm:$0xf] }
  0x15   : > { %1113 = vmatprep.mubr.msk.bf16.mxu1 %vm235_vm1, %v1046_v11  ;;  %v334_v21 = vrot.slane %v332_v12, 4  ;;  %v337_v22 = vrot.slane %v335_v13, 5  ;;  %v348_v23 = vrot.slane %v346_v14, 4  ;;  %v1047_v24 = vcombine.low %v194_v10, %v196_v15  ;;  %v1331_v25 = vld [vmem:[%s1319_s27 + $0x28] sm:$0xf] }
  0x16   : > { %v351_v26 = vrot.slane %v349_v16, 5  ;;  %v362_v27 = vrot.slane %v360_v17, 4  ;;  %v365_v28 = vrot.slane %v363_v18, 5  ;;  %1133 = vmatprep.mubr.msk.bf16.mxu0 %vm235_vm1, %v1068_v19  ;;  %v374_v29 = vshrl.u32 %v196_v15, 16  ;;  %v1335_v30 = vld [vmem:[%s1319_s27 + $0x30] sm:$0xf] }
  0x17   : > { %v338_v31 = vor.u32 %v337_v22, %v334_v21  ;;  %1114 = vmatmul.mubr.msk.bf16.vlgmr.msra.gmra.mrb[0].mxu1 %vm235_vm1, %v1047_v24  ;;  %v377_v32 = vshll.u32 %v196_v15, 16  ;;  %v388_v33 = vshrl.u32 %v198_v20, 16  ;;  %v391_v34 = vshll.u32 %v198_v20, 16  ;;  %v1339_v35 = vld [vmem:[%s1319_s27 + $0x38] sm:$0xf] }
  0x18   : > { %v352_v36 = vor.u32 %v351_v26, %v348_v23  ;;  %v366_v37 = vor.u32 %v365_v28, %v362_v27  ;;  %v376_v38 = vrot.slane %v374_v29, 4  ;;  %1122 = vmatpush3.bf16.msra.mxu1 %v473_v6  ;;  %v1069_v39 = vcombine.low %v196_v15, %v198_v20  ;;  %v206_v40 = vld [vmem:[%s1319_s27 + $0x40] sm:$0xf]  ;;  %v191_v41 = vld [vmem:[%s1319_s27 + $0x4] sm:$0x1] }
  0x19   : > { %v339_v42 = vrot.slane %v338_v31, 4  ;;  %v379_v43 = vrot.slane %v377_v32, 5  ;;  %v390_v44 = vrot.slane %v388_v33, 4  ;;  %v393_v45 = vrot.slane %v391_v34, 5  ;;  %v193_v46 = vld [vmem:[%s1319_s27 + $0xc] sm:$0x1] }
  0x1a   : > { %v353_v47 = vrot.slane %v352_v36, 4  ;;  %v367_v48 = vrot.slane %v366_v37, 4  ;;  %1134 = vmatmul.mubr.msk.bf16.vlgmr.msra.gmra.mrb[0].mxu0 %vm235_vm1, %v1069_v39  ;;  %v1048_v49 = vcombine.low %v198_v20, %v1331_v25  ;;  %v402_v50 = vshrl.u32 %v1331_v25, 16  ;;  %v195_v51 = vld [vmem:[%s1319_s27 + $0x14] sm:$0x1] }
  0x1b   : > { %1142 = vmatpush3.bf16.msra.mxu0 %v690_v7  ;;  %v405_v52 = vshll.u32 %v1331_v25, 16  ;;  %v416_v53 = vshrl.u32 %v1335_v30, 16  ;;  %v419_v54 = vshll.u32 %v1335_v30, 16  ;;  %v1070_v55 = vcombine.low %v1331_v25, %v1335_v30  ;;  %v197_v56 = vld [vmem:[%s1319_s27 + $0x1c] sm:$0x1] }
  0x1c   : > { %1117 = vmatprep.mubr.msk.bf16.mxu1 %vm235_vm1, %v1048_v49  ;;  %v1049_v57 = vcombine.low %v1335_v30, %v1339_v35  ;;  %v430_v58 = vshrl.u32 %v1339_v35, 16  ;;  %v433_v59 = vshll.u32 %v1339_v35, 16  ;;  %v1071_v60 = vcombine.low %v1339_v35, %v206_v40  ;;  %v199_v2 = vld [vmem:[%s1319_s27 + $0x24] sm:$0x1]  ;;  %v201_v15 = vld [vmem:[%s1319_s27 + $0x2c] sm:$0x1] }
  0x1d   : > { %1137 = vmatprep.mubr.msk.bf16.mxu0 %vm235_vm1, %v1070_v55  ;;  %v654_v61 = vshrl.u32 %v206_v40, 16  ;;  %v657_v62 = vshll.u32 %v206_v40, 16  ;;  %v341_v63 = vshll.u32 %v191_v41, 16  ;;  %v355_v0 = vshll.u32 %v193_v46, 16  ;;  %v203_v20 = vld [vmem:[%s1319_s27 + $0x34] sm:$0x1] }
  0x1e   : > { %v369_v3 = vshll.u32 %v195_v51, 16  ;;  %v380_v4 = vor.u32 %v379_v43, %v376_v38  ;;  %v383_v5 = vshll.u32 %v197_v56, 16  ;;  %v394_v6 = vor.u32 %v393_v45, %v390_v44  ;;  %v205_v29 = vld [vmem:[%s1319_s27 + $0x3c] sm:$0x1]  ;;  %v207_v34 = vld [vmem:[%s1319_s27 + $0x44] sm:$0x1] }
  0x1f   : > { %1118 = vmatmul.mubr.msk.bf16.gmra.mrb[4].mxu1 %vm235_vm1, %v1049_v57  ;;  %v656_v7 = vrot.slane %v654_v61, 4  ;;  %v659_v8 = vrot.slane %v657_v62, 5  ;;  %v343_v9 = vrot.slane %v341_v63, 5  ;;  %v357_v10 = vrot.slane %v355_v0, 5 }
  0x20   : > { %v371_v11 = vrot.slane %v369_v3, 5  ;;  %v381_v12 = vrot.slane %v380_v4, 4  ;;  %v385_v13 = vrot.slane %v383_v5, 5  ;;  %v395_v14 = vrot.slane %v394_v6, 4  ;;  %v1088_v4 = vld [vmem:[%s1418_s2] ss:$0 sm:$0xff] }
  0x21   : > { %v344_v16 = vsel %vm1363_vm4, %v339_v42, %v343_v9  ;;  %v358_v17 = vsel %vm1363_vm4, %v353_v47, %v357_v10  ;;  %v397_v18 = vshll.u32 %v199_v2, 16  ;;  %v404_v19 = vrot.slane %v402_v50, 4 }
  0x22   : > { %1138 = vmatmul.mubr.msk.bf16.gmra.mrb[4].mxu0 %vm235_vm1, %v1071_v60  ;;  %v1057_v21 = vcombine.low %v344_v16, %v358_v17  ;;  %v372_v22 = vsel %vm1363_vm4, %v367_v48, %v371_v11  ;;  %v386_v23 = vsel %vm1363_vm4, %v381_v12, %v385_v13  ;;  %v407_v24 = vrot.slane %v405_v52, 5 }
  0x23   : > { %v399_v25 = vrot.slane %v397_v18, 5  ;;  %v1058_v26 = vcombine.low %v372_v22, %v386_v23  ;;  %v1079_v27 = vcombine.low %v358_v17, %v372_v22  ;;  %v411_v28 = vshll.u32 %v201_v15, 16 }
  0x24   : > { %1123 = vmatprep.mubr.msk.bf16.mxu1 %vm235_vm1, %v1057_v21  ;;  %v408_v30 = vor.u32 %v407_v24, %v404_v19  ;;  %v418_v31 = vrot.slane %v416_v53, 4  ;;  %v421_v32 = vrot.slane %v419_v54, 5  ;;  %v425_v33 = vshll.u32 %v203_v20, 16 }
  0x25   : > { %v400_v35 = vsel %vm1363_vm4, %v395_v14, %v399_v25  ;;  %1143 = vmatprep.mubr.msk.bf16.mxu0 %vm235_vm1, %v1079_v27  ;;  %v413_v36 = vrot.slane %v411_v28, 5  ;;  %v432_v37 = vrot.slane %v430_v58, 4  ;;  %v435_v38 = vrot.slane %v433_v59, 5 }
  0x26   : > { %v1080_v39 = vcombine.low %v386_v23, %v400_v35  ;;  %v409_v40 = vrot.slane %v408_v30, 4  ;;  %v422_v41 = vor.u32 %v421_v32, %v418_v31  ;;  %v427_v42 = vrot.slane %v425_v33, 5 }
  0x27   : > { %1124 = vmatmul.mubr.msk.bf16.vlgmr.msra.gmra.mrb[0].mxu1 %vm235_vm1, %v1058_v26  ;;  %v436_v43 = vor.u32 %v435_v38, %v432_v37  ;;  %v439_v44 = vshll.u32 %v205_v29, 16  ;;  %v660_v45 = vor.u32 %v659_v8, %v656_v7  ;;  %v663_v46 = vshll.u32 %v207_v34, 16 }
  0x28   : > { %v414_v47 = vsel %vm1363_vm4, %v409_v40, %v413_v36  ;;  %v423_v48 = vrot.slane %v422_v41, 4  ;;  %v1249_v62 = vmov 1983009808   ;;  %v793_v0 = vlaneseq }
  0x29   : > { %v1059_v49 = vcombine.low %v400_v35, %v414_v47  ;;  %v437_v50 = vrot.slane %v436_v43, 4  ;;  %v441_v51 = vrot.slane %v439_v44, 5  ;;  %v661_v52 = vrot.slane %v660_v45, 4 }
  0x2a   : > { %1144 = vmatmul.mubr.msk.bf16.vlgmr.msra.gmra.mrb[0].mxu0 %vm235_vm1, %v1080_v39  ;;  %v428_v53 = vsel %vm1363_vm4, %v423_v48, %v427_v42  ;;  %v665_v54 = vrot.slane %v663_v46, 5  ;;  %v791_v63 = vunpack.c.l.s4 %v1249_v62  ;;  %v794_v11 = vshrl.u32 %v793_v0, 7 }
  0x2b   : > { %1127 = vmatprep.mubr.msk.bf16.mxu1 %vm235_vm1, %v1059_v49  ;;  %v1081_v55 = vcombine.low %v414_v47, %v428_v53  ;;  %v442_v56 = vsel %vm1363_vm4, %v437_v50, %v441_v51  ;;  %v1250_v35 = vmov 1934713408  }
  0x2c   : > { %v1060_v57 = vcombine.low %v428_v53, %v442_v56  ;;  %v666_v58 = vsel %vm1363_vm4, %v661_v52, %v665_v54  ;;  %v792_v10 = vunpack.c.0.s8 %v791_v63  ;;  %v855_v36 = vunpack.c.l.s4 %v1250_v35 }
  0x2d   : > { %1147 = vmatprep.mubr.msk.bf16.mxu0 %vm235_vm1, %v1081_v55  ;;  %v1082_v59 = vcombine.low %v442_v56, %v666_v58 }
  0x2e   : > { %v795_v22 = vsub.s32 %v792_v10, %v794_v11  ;;  %v856_v55 = vunpack.c.0.s8 %v855_v36 }
  0x2f   : > { %1128 = vmatmul.mubr.msk.bf16.gmra.mrb[4].mxu1 %vm235_vm1, %v1060_v57 }
  0x30   : > { %v859_v62 = vsub.s32 %v856_v55, %v794_v11 }
  0x32   : > { %1148 = vmatmul.mubr.msk.bf16.gmra.mrb[4].mxu0 %vm235_vm1, %v1082_v59 }
  0xfa   : > { %v1125_v60 = vpop.f32.mrb[0].mxu1 }
  0xfb   : > { %v509_v61 = vpop.f32.mrb[1].mxu1 }
  0xfc   : > { %v1126_v2 = vpop.f32.mrb[2].mxu1 }
  0xfd   : > { %v1145_v3 = vpop.f32.mrb[0].mxu0  ;;  %v512_v1 = vpop.f32.mrb[3].mxu1 }
  0xfe   : > { %v1151_v5 = vadd.f32 %v1145_v3, %v1125_v60  ;;  %v726_v6 = vpop.f32.mrb[1].mxu0 }
  0xff   : > { %v1152_v7 = vadd.f32 %v726_v6, %v509_v61  ;;  %v1146_v8 = vpop.f32.mrb[2].mxu0 }
 0x100   : > { %v774_v9 = vadd.f32 %v1151_v5, %v1088_v4  ;;  %v1153_v12 = vadd.f32 %v1146_v8, %v1126_v2  ;;  %v729_v13 = vpop.f32.mrb[3].mxu0 }
 0x101   : > { %v772_v14 = vadd.f32 %v1152_v7, %v1088_v4  ;;  %v1154_v15 = vadd.f32 %v729_v13, %v512_v1 }
 0x102   : > { %v782_v16 = vmax.f32 %v774_v9, 0.0  ;;  %v775_v17 = vadd.f32 %v1153_v12, %v1088_v4  ;;  %v1129_v18 = vpop.f32.mrb[4].mxu1 }
 0x103   : > { %v780_v19 = vmax.f32 %v772_v14, 0.0  ;;  %v773_v20 = vadd.f32 %v1154_v15, %v1088_v4  ;;  %v525_v21 = vpop.f32.mrb[5].mxu1 }
 0x104   : > { %v783_v23 = vmax.f32 %v775_v17, 0.0  ;;  %v1130_v24 = vpop.f32.mrb[6].mxu1 }
 0x105   : > { %v788_v25 = vcombine.low %v780_v19, %v782_v16  ;;  %v789_v26 = vcombine.high %v780_v19, %v782_v16  ;;  %v781_v27 = vmax.f32 %v773_v20, 0.0  ;;  %v1149_v28 = vpop.f32.mrb[4].mxu0  ;;  %v528_v29 = vpop.f32.mrb[7].mxu1 }
 0x106   : > { %v1155_v30 = vadd.f32 %v1149_v28, %v1129_v18  ;;  %v742_v31 = vpop.f32.mrb[5].mxu0 }
 0x107   : > { %v804_v32 = vcombine.low %v781_v27, %v783_v23  ;;  %v805_v33 = vcombine.high %v781_v27, %v783_v23  ;;  %v1150_v34 = vpop.f32.mrb[6].mxu0  ;;  %v796_v37 = vrot.slane %v788_v25, %v795_v22  ;;  %v1156_v39 = vadd.f32 %v742_v31, %v525_v21 }
 0x108   : > { %v778_v38 = vadd.f32 %v1155_v30, %v1088_v4  ;;  %v1157_v40 = vadd.f32 %v1150_v34, %v1130_v24  ;;  %v745_v41 = vpop.f32.mrb[7].mxu0  ;;  %v803_v42 = vrot.slane %v789_v26, %v795_v22 }
 0x109   : > { %v812_v43 = vrot.slane %v804_v32, %v795_v22  ;;  %v819_v44 = vrot.slane %v805_v33, %v795_v22  ;;  %v1158_v45 = vadd.f32 %v745_v41, %v528_v29  ;;  %v776_v47 = vadd.f32 %v1156_v39, %v1088_v4 }
 0x10a   : > { %v786_v46 = vmax.f32 %v778_v38, 0.0  ;;  %v779_v48 = vadd.f32 %v1157_v40, %v1088_v4 }
 0x10b   : > { %v777_v49 = vadd.f32 %v1158_v45, %v1088_v4  ;;  %v853_v50 = vcombine.high %v796_v37, %v812_v43  ;;  %v852_v51 = vcombine.low %v796_v37, %v812_v43  ;;  %v868_v52 = vcombine.low %v803_v42, %v819_v44 }
 0x10c   : > { %v784_v53 = vmax.f32 %v776_v47, 0.0  ;;  %v787_v54 = vmax.f32 %v779_v48, 0.0  ;;  %v869_v56 = vcombine.high %v803_v42, %v819_v44 }
 0x10d   : > { %v785_v57 = vmax.f32 %v777_v49, 0.0  ;;  %v867_v7 = vrot.slane %v853_v50, %v859_v62  ;;  %v860_v8 = vrot.slane %v852_v51, %v859_v62  ;;  %v876_v9 = vrot.slane %v868_v52, %v859_v62 }
 0x10e   : > { %v820_v58 = vcombine.low %v784_v53, %v786_v46  ;;  %v821_v59 = vcombine.high %v784_v53, %v786_v46  ;;  %v883_v15 = vrot.slane %v869_v56, %v859_v62 }
 0x10f   : > { %v836_v60 = vcombine.low %v785_v57, %v787_v54  ;;  %v837_v61 = vcombine.high %v785_v57, %v787_v54 }
 0x110   : > { %v828_v63 = vrot.slane %v820_v58, %v795_v22  ;;  %v835_v0 = vrot.slane %v821_v59, %v795_v22 }
 0x111   : > { %v844_v2 = vrot.slane %v836_v60, %v795_v22  ;;  %v851_v3 = vrot.slane %v837_v61, %v795_v22 }
 0x113   : > { %v885_v1 = vcombine.high %v828_v63, %v844_v2  ;;  %v884_v5 = vcombine.low %v828_v63, %v844_v2  ;;  %v900_v4 = vcombine.low %v835_v0, %v851_v3  ;;  %v901_v6 = vcombine.high %v835_v0, %v851_v3 }
 0x115   : > { %v899_v10 = vrot.slane %v885_v1, %v859_v62  ;;  %v892_v12 = vrot.slane %v884_v5, %v859_v62  ;;  %v908_v13 = vrot.slane %v900_v4, %v859_v62  ;;  %v915_v14 = vrot.slane %v901_v6, %v859_v62 }
 0x117   : > { %v919_v16 = vcombine.high %v867_v7, %v899_v10  ;;  %v917_v17 = vcombine.high %v860_v8, %v892_v12  ;;  %v916_v18 = vcombine.low %v860_v8, %v892_v12  ;;  %v920_v11 = vcombine.low %v876_v9, %v908_v13 }
 0x118   : > { %v918_v19 = vcombine.low %v867_v7, %v899_v10  ;;  %v922_v20 = vcombine.low %v883_v15, %v915_v14  ;;  %v921_v21 = vcombine.high %v876_v9, %v908_v13  ;;  %v923_v22 = vcombine.high %v883_v15, %v915_v14 }
 0x119   : > { %933 = vrot.lane.b32.xlu1 %v919_v16, %s1251_s30  ;;  %925 = vrot.lane.b32.xlu0 %v917_v17, %s1252_s4 }
 0x11d   : > { %937 = vrot.lane.b32.xlu1 %v920_v11, %s1253_s5  ;;  %929 = vrot.lane.b32.xlu0 %v918_v19, %s1254_s6 }
 0x121   : > { %945 = vrot.lane.b32.xlu1 %v922_v20, %s1255_s7  ;;  %941 = vrot.lane.b32.xlu0 %v921_v21, %s1256_s8 }
 0x125   : > { %949 = vrot.lane.b32.xlu0 %v923_v22, %s1257_s9 }
 0x18b   : > { %v934_v23 = vpop.permute.xlu1 %933  ;;  %v926_v24 = vpop.permute.xlu0 %925 }
 0x18c   : > { %v953_v25 = vsel %vm952_vm5, %v916_v18, %v926_v24 }
 0x18f   : > { %v938_v26 = vpop.permute.xlu1 %937  ;;  %v930_v27 = vpop.permute.xlu0 %929 }
 0x190   : > { %v955_v28 = vsel %vm954_vm6, %v953_v25, %v930_v27 }
 0x191   : > { %v957_v29 = vsel %vm956_vm7, %v955_v28, %v934_v23 }
 0x192   : > { %v959_v30 = vsel %vm958_vm8, %v957_v29, %v938_v26 }
 0x193   : > { %v942_v31 = vpop.permute.xlu0 %941  ;;  %v946_v32 = vpop.permute.xlu1 %945 }
 0x194   : > { %v961_v33 = vsel %vm960_vm9, %v959_v30, %v942_v31 }
 0x195   : > { %v963_v35 = vsel %vm962_vm10, %v961_v33, %v946_v32 }
 0x197   : > { %v950_v34 = vpop.permute.xlu0 %949 }
 0x198   : > { %v965_v36 = vsel %vm964_vm11, %v963_v35, %v950_v34 }
 0x199   : > { %v966_v37 = vpack.c.bf16 %v965_v36, %v965_v36 }
 0x19b   : > { %967 = vst [vmem:[%s188_s17] sm:$0xf] %v966_v37 }
 0x19c PF: > { %s13_s14 = sadd.s32 1, %s1247_s14   ;;  %s1422_s12 = smov %s1243_s13 }
 0x19d   : > { %p10_p5 = scmp.ge.s32.totalorder %s13_s14, 4   ;;  %s1423_s13 = smov %s1425_s15 }
 0x19f   :  { %12 = sbr.rel (!%p10_p5) target bundleno = 2 (0x2), region = 65 }

// kernel: sinet_forward.5
= control target key start
LH: loop header
LB: loop body
LE: loop exit
PB: predicated region body
PF: predicated region fallthrough
CT: control target
= control target key end

     0   :  { %s1132_s12 = smov 0   ;;  %s1134_s13 = smov 0   ;;  %s1315_s0 = inlined_call_operand.vmem [shape: bf16[2,5,5,64], index: 0, kind: input, shape index: {}]   ;;  %s1316_s1 = inlined_call_operand.vmem [shape: bf16[4,64,48], index: 1, kind: input, shape index: {}]   ;;  %s1317_s2 = inlined_call_operand.vmem [shape: f32[1,48], index: 2, kind: input, shape index: {}]   ;;  %s1318_s3 = inlined_call_operand.vmem [shape: bf16[2,4,192], index: 3, kind: output, shape index: {}]  }
   0x1   :  { %s1136_s14 = smov 0  }
   0x2 LB: > { %s25_s15 = sadd.s32 1, %s1099_s13  ;;  %p908_p0 = scmp.ge.s32.totalorder %s1103_s14, 1  ;;  %s1103_s14 = sphi %s1136_s14, %s13_s14   ;;  %s1099_s13 = sphi %s1134_s13, %s1324_s13   ;;  %s1095_s12 = sphi %s1132_s12, %s1323_s12  }
   0x3   : > { %p27_p1 = scmp.ge.s32.totalorder %s25_s15, 2  ;;  %p151_p2 = scmp.lt.s32.totalorder %s1103_s14, 3 }
   0x5   : > { %s1326_s15 = smov (%p27_p1, %s25_s15), 0  ;;  %p152_p3 = pnand %p908_p0, %p151_p2 }
   0x6   : > { %v1061_v0 = vld [vmem:[%s1316_s1] sm:$0xff] (!%p152_p3)   ;;  %v1105_v1 = vmov (!%p152_p3), 0.0   ;;  %v1062_v2 = vld [vmem:[%s1316_s1 + $0x8] sm:$0xff] (!%p152_p3)   ;;  %vm1106_vm0 = vmmov (!%p152_p3), 0   ;;  %p179_p4 = scmp.lt.s32.totalorder (!%p152_p3), %s1095_s12, 1  ;;  %v216_v5 = vlaneseq (!%p152_p3)  ;;  %v1064_v6 = vld [vmem:[%s1316_s1 + $0x10] sm:$0xff] (!%p152_p3)  }
   0x7   : > { %155 = sbr.rel (%p152_p3) target bundleno = 416 (0x1a0), region = 32  ;;  %981 = vmatprep.subr.bf16.mxu0 (!%p152_p3), %v1105_v1  ;;  %993 = vmatprep.subr.bf16.mxu1 (!%p152_p3), %v1105_v1  ;;  %v1063_v3 = vld [vmem:[%s1316_s1 + $0x20] sm:$0xff] (!%p152_p3)   ;;  %v1065_v4 = vld [vmem:[%s1316_s1 + $0x28] sm:$0xff] (!%p152_p3)   ;;  %v1067_v7 = vld [vmem:[%s1316_s1 + $0x30] sm:$0xff] (!%p152_p3)   ;;  %v1107_v8 = vmov (!%p152_p3), 1983009808  }
   0x8   : > { %982 = vmatpush3.bf16.msra.mxu0 (!%p152_p3), %v1061_v0  ;;  %989 = vmatprep.mubr.msk.bf16.mxu0 (!%p152_p3), %vm1106_vm0, %v1105_v1  ;;  %v214_v9 = vunpack.c.l.s4 (!%p152_p3), %v1107_v8  ;;  %v1183_v10 = vshrl.u32 (!%p152_p3), %v216_v5, 7  ;;  %v1066_v11 = vld [vmem:[%s1316_s1 + $0x18] sm:$0xff] (!%p152_p3)   ;;  %vm252_vm1 = vcmask (!%p152_p3), 523264   ;;  %vm348_vm2 = vsmask.f32 (!%p152_p3), 1280  ;;  %v1070_v29 = vld [vmem:[%s1316_s1 + $0x40] sm:$0xff] (!%p152_p3)  }
   0x9   : > { %983 = vmatprep.subr.bf16.mxu0 (!%p152_p3), %v1105_v1  ;;  %1001 = vmatprep.mubr.msk.bf16.mxu1 (!%p152_p3), %vm1106_vm0, %v1105_v1  ;;  %v1071_v19 = vld [vmem:[%s1316_s1 + $0x38] sm:$0xff] (!%p152_p3)   ;;  %vm349_vm3 = vsmask.f32 (!%p152_p3), 3336  ;;  %vm351_vm4 = vsmask.f32 (!%p152_p3), 5392  ;;  %v1072_v43 = vld [vmem:[%s1316_s1 + $0x48] sm:$0xff] (!%p152_p3)  }
   0xa   : > { %994 = vmatpush3.bf16.msra.mxu1 (!%p152_p3), %v1063_v3  ;;  %v215_v17 = vunpack.c.0.s8 (!%p152_p3), %v214_v9  ;;  %vm353_vm5 = vsmask.f32 (!%p152_p3), 7448  ;;  %vm1219_vm6 = vmor (!%p152_p3), %vm348_vm2, %vm349_vm3  ;;  %s1110_s5 = smov (!%p152_p3), 48   ;;  %s1111_s6 = smov (!%p152_p3), 96   ;;  %vm798_vm9 = vcmask (!%p152_p3), 392192   ;;  %vm800_vm10 = vcmask (!%p152_p3), 785408  }
   0xb   : > { %995 = vmatprep.subr.bf16.mxu1 (!%p152_p3), %v1105_v1  ;;  %vm352_vm7 = vmor (!%p152_p3), %vm1219_vm6, %vm351_vm4  ;;  %vm802_vm11 = vcmask (!%p152_p3), 130048   ;;  %vm817_vm12 = vcmask (!%p152_p3), 1041408   ;;  %vm818_vm13 = vcmask (!%p152_p3), 519170  }
   0xc   : > { %984 = vmatpush3.bf16.msra.mxu0 (!%p152_p3), %v1062_v2  ;;  %v1202_v21 = vsub.s32 (!%p152_p3), %v215_v17, %v1183_v10  ;;  %vm1241_vm8 = vmor (!%p152_p3), %vm352_vm7, %vm353_vm5 }
   0xd   : > { %985 = vmatprep.subr.bf16.mxu0 (!%p152_p3), %v1105_v1  ;;  %vm819_vm14 = vmor (!%p152_p3), %vm818_vm13, %vm817_vm12 }
   0xe   : > { %s1328_s12 = smov (!%p179_p4, %s1095_s12), 1  ;;  %996 = vmatpush3.bf16.msra.mxu1 %v1065_v4  ;;  %v1074_v4 = vld [vmem:[%s1316_s1 + $0x50] sm:$0xff]  }
   0xf   : > { %s1029_s26 = smul.u32 20, %s1328_s12  ;;  %997 = vmatprep.subr.bf16.mxu1 %v1105_v1  ;;  %s960_s7 = sshll.u32 %s1328_s12, 2 }
  0x10   : > { %986 = vmatpush3.bf16.msra.mxu0 %v1064_v6  ;;  %s192_s10 = scalar_lea.vmem %s1318_s3, %s960_s7 }
  0x11   : > { %s183_s4 = scalar_lea.vmem %s1315_s0, %s1029_s26  ;;  %987 = vmatprep.subr.bf16.mxu0 %v1105_v1 }
  0x12   : > { %v194_v12 = vld [vmem:[%s183_s4] sm:$0x7]  ;;  %v1189_v13 = vld [vmem:[%s183_s4 + $0x4] sm:$0x7]  ;;  %v196_v14 = vld [vmem:[%s183_s4 + $0x8] sm:$0x7]  ;;  %998 = vmatpush3.bf16.msra.mxu1 %v1067_v7 }
  0x13   : > { %v1191_v15 = vld [vmem:[%s183_s4 + $0xc] sm:$0x7]  ;;  %v211_v16 = vcombine.low %v194_v12, %v1189_v13  ;;  %v1199_v20 = vld [vmem:[%s183_s4 + $0x10] sm:$0x7]  ;;  %999 = vmatprep.subr.bf16.mxu1 %v1105_v1  ;;  %v516_v22 = vcombine.low %v1189_v13, %v196_v14  ;;  %v322_v25 = vrot.slane %v194_v12, %v1202_v21  ;;  %v330_v26 = vrot.slane %v1189_v13, %v1202_v21  ;;  %s1109_s4 = smov 16  }
  0x14   : > { %v212_v18 = vcombine.low %v196_v14, %v1191_v15  ;;  %988 = vmatpush3.bf16.msra.mxu0 %v1066_v11  ;;  %v338_v27 = vrot.slane %v196_v14, %v1202_v21  ;;  %v346_v28 = vrot.slane %v1191_v15, %v1202_v21  ;;  %v1225_v31 = vrot.slane %v1199_v20, %v1202_v21 }
  0x15   : > { %v219_v23 = vrot.slane %v211_v16, %v1202_v21  ;;  %1005 = vmatprep.subr.bf16.mxu0 %v1105_v1  ;;  %v517_v32 = vcombine.low %v1191_v15, %v1199_v20  ;;  %v356_v34 = vshrl.u32 %v322_v25, 16  ;;  %v359_v35 = vshll.u32 %v322_v25, 16  ;;  %v1076_v20 = vld [vmem:[%s1316_s1 + $0x58] sm:$0xff]  }
  0x16   : > { %v226_v24 = vrot.slane %v212_v18, %v1202_v21  ;;  %1000 = vmatpush3.bf16.msra.mxu1 %v1071_v19  ;;  %v323_v36 = vcombine.high %v322_v25, %v322_v25  ;;  %v331_v37 = vcombine.high %v330_v26, %v330_v26  ;;  %v339_v38 = vcombine.high %v338_v27, %v338_v27 }
  0x17   : > { %1017 = vmatprep.subr.bf16.mxu1 %v1105_v1  ;;  %v347_v39 = vcombine.high %v346_v28, %v346_v28  ;;  %v370_v40 = vshrl.u32 %v330_v26, 16  ;;  %v358_v41 = vrot.slane %v356_v34, 6  ;;  %v361_v42 = vrot.slane %v359_v35, 7 }
  0x18   : > { %v227_v33 = vcombine.low %v219_v23, %v226_v24  ;;  %v365_v44 = vshll.u32 %v323_v36, 16  ;;  %v373_v45 = vshll.u32 %v330_v26, 16  ;;  %v379_v47 = vshll.u32 %v331_v37, 16  ;;  %v1075_v36 = vld [vmem:[%s1316_s1 + $0x68] sm:$0xff]  }
  0x19   : > { %v372_v46 = vrot.slane %v370_v40, 6  ;;  %v384_v48 = vshrl.u32 %v338_v27, 16  ;;  %v387_v49 = vshll.u32 %v338_v27, 16  ;;  %v362_v50 = vor.u32 %v361_v42, %v358_v41  ;;  %v1080_v42 = vld [vmem:[%s1316_s1 + $0x78] sm:$0xff]  }
  0x1a   : > { %990 = vmatmul.mubr.msk.bf16.vlgmr.msra.gmra.mrb[0].mxu0 %vm252_vm1, %v227_v33  ;;  %v367_v51 = vrot.slane %v365_v44, 7  ;;  %v375_v52 = vrot.slane %v373_v45, 7  ;;  %v393_v53 = vshll.u32 %v339_v38, 16  ;;  %v398_v57 = vshrl.u32 %v346_v28, 16  ;;  %v1073_v33 = vld [vmem:[%s1316_s1 + $0x60] sm:$0xff]  }
  0x1b   : > { %1006 = vmatpush3.bf16.msra.mxu0 %v1070_v29  ;;  %1013 = vmatprep.mubr.msk.bf16.mxu0 %vm1106_vm0, %v1105_v1  ;;  %v386_v55 = vrot.slane %v384_v48, 6  ;;  %v389_v56 = vrot.slane %v387_v49, 7  ;;  %v524_v58 = vrot.slane %v516_v22, %v1202_v21  ;;  %v363_v59 = vrot.slane %v362_v50, 2 }
  0x1c   : > { %1007 = vmatprep.subr.bf16.mxu0 %v1105_v1  ;;  %v376_v60 = vor.u32 %v375_v52, %v372_v46  ;;  %v381_v61 = vrot.slane %v379_v47, 7  ;;  %v401_v62 = vshll.u32 %v346_v28, 16  ;;  %v395_v0 = vrot.slane %v393_v53, 7 }
  0x1d   : > { %v390_v63 = vor.u32 %v389_v56, %v386_v55  ;;  %v400_v2 = vrot.slane %v398_v57, 6  ;;  %v407_v3 = vshll.u32 %v347_v39, 16  ;;  %v368_v5 = vsel %vm1241_vm8, %v363_v59, %v367_v51  ;;  %v1077_v39 = vld [vmem:[%s1316_s1 + $0x70] sm:$0xff]  }
  0x1e   : > { %v377_v6 = vrot.slane %v376_v60, 2  ;;  %v403_v7 = vrot.slane %v401_v62, 7  ;;  %v629_v8 = vshrl.u32 %v1225_v31, 16  ;;  %v627_v12 = vcombine.high %v1225_v31, %v1225_v31 }
  0x1f   : > { %1008 = vmatpush3.bf16.msra.mxu0 %v1072_v43  ;;  %v391_v9 = vrot.slane %v390_v63, 2  ;;  %v409_v11 = vrot.slane %v407_v3, 7  ;;  %v632_v13 = vshll.u32 %v1225_v31, 16  ;;  %v531_v17 = vrot.slane %v517_v32, %v1202_v21 }
  0x20   : > { %1009 = vmatprep.subr.bf16.mxu0 %v1105_v1  ;;  %v382_v14 = vsel %vm1241_vm8, %v377_v6, %v381_v61  ;;  %v404_v15 = vor.u32 %v403_v7, %v400_v2  ;;  %v631_v16 = vrot.slane %v629_v8, 6  ;;  %v638_v26 = vshll.u32 %v627_v12, 16  ;;  %v956_v8 = vld [vmem:[%s1317_s2] ss:$0 sm:$0xff] }
  0x21   : > { %v411_v18 = vcombine.low %v368_v5, %v382_v14  ;;  %v634_v19 = vrot.slane %v632_v13, 7  ;;  %v396_v22 = vsel %vm1241_vm8, %v391_v9, %v395_v0  ;;  %v532_v27 = vcombine.low %v524_v58, %v531_v17 }
  0x22   : > { %v405_v23 = vrot.slane %v404_v15, 2  ;;  %v640_v32 = vrot.slane %v638_v26, 7  ;;  %v642_v37 = vcombine.low %v382_v14, %v396_v22 }
  0x23   : > { %1010 = vmatpush3.bf16.msra.mxu0 %v1074_v4  ;;  %v635_v25 = vor.u32 %v634_v19, %v631_v16  ;;  %v419_v29 = vrot.slane %v411_v18, %v1202_v21 }
  0x24   : > { %1011 = vmatprep.subr.bf16.mxu0 %v1105_v1  ;;  %v410_v24 = vsel %vm1241_vm8, %v405_v23, %v409_v11  ;;  %v650_v40 = vrot.slane %v642_v37, %v1202_v21  ;;  %v1108_v23 = vmov 1934713408  }
  0x25   : > { %v412_v28 = vcombine.low %v396_v22, %v410_v24  ;;  %v636_v31 = vrot.slane %v635_v25, 2 }
  0x27   : > { %1012 = vmatpush3.bf16.msra.mxu0 %v1076_v20  ;;  %v426_v30 = vrot.slane %v412_v28, %v1202_v21  ;;  %v641_v35 = vsel %vm1241_vm8, %v636_v31, %v640_v32 }
  0x28   : > { %v643_v38 = vcombine.low %v410_v24, %v641_v35  ;;  %v771_v24 = vunpack.c.l.s4 %v1108_v23 }
  0x29   : > { %v427_v34 = vcombine.low %v419_v29, %v426_v30 }
  0x2a   : > { %1014 = vmatmul.mubr.msk.bf16.vlgmr.msra.gmra.mrb[4].mxu0 %vm252_vm1, %v532_v27  ;;  %v657_v41 = vrot.slane %v643_v38, %v1202_v21  ;;  %v772_v31 = vunpack.c.0.s8 %v771_v24 }
  0x2b   : > { %1002 = vmatmul.mubr.msk.bf16.vlgmr.msra.gmra.mrb[0].mxu1 %vm252_vm1, %v427_v34 }
  0x2c   : > { %1018 = vmatpush3.bf16.msra.mxu1 %v1073_v33  ;;  %1025 = vmatprep.mubr.msk.bf16.mxu1 %vm1106_vm0, %v1105_v1  ;;  %v658_v43 = vcombine.low %v650_v40, %v657_v41  ;;  %v775_v35 = vsub.s32 %v772_v31, %v1183_v10 }
  0x2d   : > { %1019 = vmatprep.subr.bf16.mxu1 %v1105_v1 }
  0x30   : > { %1020 = vmatpush3.bf16.msra.mxu1 %v1075_v36 }
  0x31   : > { %1021 = vmatprep.subr.bf16.mxu1 %v1105_v1 }
  0x34   : > { %1022 = vmatpush3.bf16.msra.mxu1 %v1077_v39 }
  0x35   : > { %1023 = vmatprep.subr.bf16.mxu1 %v1105_v1 }
  0x38   : > { %1024 = vmatpush3.bf16.msra.mxu1 %v1080_v42 }
  0x3b   : > { %1026 = vmatmul.mubr.msk.bf16.vlgmr.msra.gmra.mrb[4].mxu1 %vm252_vm1, %v658_v43 }
  0xed   : > { %v290_v44 = vpop.f32.mrb[0].mxu0 }
  0xee   : > { %v991_v45 = vpop.f32.mrb[1].mxu0  ;;  %v299_v53 = vcombine.high %v290_v44, %v290_v44 }
  0xef   : > { %v293_v46 = vpop.f32.mrb[2].mxu0 }
  0xf0   : > { %v992_v47 = vpop.f32.mrb[3].mxu0  ;;  %v300_v58 = vcombine.high %v293_v46, %v293_v46 }
  0xfd   : > { %v594_v48 = vpop.f32.mrb[4].mxu0 }
  0xfe   : > { %v1015_v49 = vpop.f32.mrb[5].mxu0  ;;  %v489_v51 = vpop.f32.mrb[0].mxu1  ;;  %v603_v57 = vcombine.high %v594_v48, %v594_v48 }
  0xff   : > { %v597_v50 = vpop.f32.mrb[6].mxu0  ;;  %v498_v54 = vcombine.high %v489_v51, %v489_v51  ;;  %v502_v55 = vadd.f32 %v489_v51, %v290_v44  ;;  %v1003_v56 = vpop.f32.mrb[1].mxu1 }
 0x100   : > { %v1016_v52 = vpop.f32.mrb[7].mxu0  ;;  %v492_v59 = vpop.f32.mrb[2].mxu1  ;;  %v604_v60 = vcombine.high %v597_v50, %v597_v50 }
 0x101   : > { %v503_v61 = vadd.f32 %v498_v54, %v299_v53  ;;  %v499_v62 = vcombine.high %v492_v59, %v492_v59  ;;  %v504_v63 = vadd.f32 %v492_v59, %v293_v46  ;;  %v1004_v0 = vpop.f32.mrb[3].mxu1  ;;  %v607_v2 = vadd.f32 %v594_v48, %v502_v55 }
 0x103   : > { %v505_v3 = vadd.f32 %v499_v62, %v300_v58  ;;  %v608_v4 = vadd.f32 %v603_v57, %v503_v61  ;;  %v609_v5 = vadd.f32 %v597_v50, %v504_v63 }
 0x105   : > { %v610_v6 = vadd.f32 %v604_v60, %v505_v3 }
 0x10e   : > { %v720_v7 = vpop.f32.mrb[4].mxu1 }
 0x10f   : > { %v729_v9 = vcombine.high %v720_v7, %v720_v7  ;;  %v733_v11 = vadd.f32 %v720_v7, %v607_v2  ;;  %v1027_v12 = vpop.f32.mrb[5].mxu1 }
 0x110   : > { %v723_v13 = vpop.f32.mrb[6].mxu1 }
 0x111   : > { %v734_v14 = vadd.f32 %v729_v9, %v608_v4  ;;  %v744_v15 = vadd.f32 %v956_v8, %v733_v11  ;;  %v730_v16 = vcombine.high %v723_v13, %v723_v13  ;;  %v735_v17 = vadd.f32 %v723_v13, %v609_v5  ;;  %v1028_v18 = vpop.f32.mrb[7].mxu1 }
 0x113   : > { %v745_v19 = vadd.f32 %v956_v8, %v734_v14  ;;  %v736_v20 = vadd.f32 %v730_v16, %v610_v6  ;;  %v746_v22 = vadd.f32 %v956_v8, %v735_v17  ;;  %v748_v25 = vmax.f32 %v744_v15, 0.0 }
 0x115   : > { %v747_v26 = vadd.f32 %v956_v8, %v736_v20  ;;  %v750_v27 = vmax.f32 %v746_v22, 0.0  ;;  %v749_v28 = vmax.f32 %v745_v19, 0.0 }
 0x117   : > { %v751_v29 = vmax.f32 %v747_v26, 0.0  ;;  %v752_v30 = vcombine.low %v748_v25, %v750_v27 }
 0x119   : > { %v760_v32 = vcombine.low %v749_v28, %v751_v29  ;;  %v759_v33 = vrot.slane %v752_v30, %v1202_v21 }
 0x11b   : > { %v767_v34 = vrot.slane %v760_v32, %v1202_v21 }
 0x11d   : > { %v769_v36 = vcombine.high %v759_v33, %v767_v34  ;;  %v768_v37 = vcombine.low %v759_v33, %v767_v34 }
 0x11f   : > { %v783_v38 = vrot.slane %v769_v36, %v775_v35  ;;  %v776_v39 = vrot.slane %v768_v37, %v775_v35 }
 0x121   : > { %v785_v40 = vcombine.high %v783_v38, %v1105_v1  ;;  %v784_v41 = vcombine.high %v776_v39, %v1105_v1 }
 0x123   : > { %795 = vrot.lane.b32.xlu1 %v785_v40, %s1109_s4  ;;  %787 = vrot.lane.b32.xlu0 %v784_v41, %s1110_s5 }
 0x127   : > { %791 = vrot.lane.b32.xlu0 %v783_v38, %s1111_s6 }
 0x195   : > { %v788_v42 = vpop.permute.xlu0 %787  ;;  %v796_v10 = vpop.permute.xlu1 %795 }
 0x196   : > { %v799_v43 = vsel %vm798_vm9, %v776_v39, %v788_v42 }
 0x199   : > { %v792_v44 = vpop.permute.xlu0 %791 }
 0x19a   : > { %v801_v45 = vsel %vm800_vm10, %v799_v43, %v792_v44  ;;  %v803_v46 = vsel %vm802_vm11, %v792_v44, %v796_v10 }
 0x19b   : > { %v957_v47 = vpack.c.bf16 %v803_v46, %v801_v45 }
 0x19d   : > { %v815_v1 = vrot.slane %v957_v47, %v1202_v21 }
 0x19f   : > { %820 = vst.msk [vmem:[%s192_s10] sm:$0xf] %vm819_vm14, %v815_v1 }
 0x1a0 PF: > { %s13_s14 = sadd.s32 1, %s1103_s14   ;;  %s1323_s12 = smov %s1099_s13 }
 0x1a1   : > { %p10_p5 = scmp.ge.s32.totalorder %s13_s14, 4   ;;  %s1324_s13 = smov %s1326_s15 }
 0x1a3   :  { %12 = sbr.rel (!%p10_p5) target bundleno = 2 (0x2), region = 65 }

// kernel: sinet_forward.6
= control target key start
LH: loop header
LB: loop body
LE: loop exit
PB: predicated region body
PF: predicated region fallthrough
CT: control target
= control target key end

     0   :  { %s1553_s18 = smov 0   ;;  %s1555_s19 = smov 0   ;;  %s1861_s0 = inlined_call_operand.vmem [shape: bf16[2,3,3,192], index: 0, kind: input, shape index: {}]   ;;  %s1862_s1 = inlined_call_operand.vmem [shape: bf16[4,192,64], index: 1, kind: input, shape index: {}]   ;;  %s1863_s2 = inlined_call_operand.vmem [shape: f32[1,64], index: 2, kind: input, shape index: {}]   ;;  %s1864_s3 = inlined_call_operand.vmem [shape: bf16[64,4], index: 3, kind: input, shape index: {}]   ;;  %s1865_s4 = inlined_call_operand.vmem [shape: f32[1,4], index: 4, kind: input, shape index: {}]   ;;  %s1866_s5 = inlined_call_operand.vmem [shape: f32[2,2,8], index: 5, kind: output, shape index: {}]  }
   0x1   :  { %s1557_s20 = smov 0  }
   0x2 LB: > { %s27_s21 = sadd.s32 1, %s1510_s19  ;;  %p1248_p0 = scmp.ge.s32.totalorder %s1514_s20, 1  ;;  %s1514_s20 = sphi %s1557_s20, %s15_s20   ;;  %s1510_s19 = sphi %s1555_s19, %s1868_s19   ;;  %s1506_s18 = sphi %s1553_s18, %s1867_s18  }
   0x3   : > { %p29_p1 = scmp.ge.s32.totalorder %s27_s21, 2  ;;  %p201_p2 = scmp.lt.s32.totalorder %s1514_s20, 3 }
   0x5   : > { %s1870_s21 = smov (%p29_p1, %s27_s21), 0  ;;  %p202_p3 = pnand %p1248_p0, %p201_p2 }
   0x6   : > { %v1440_v0 = vld [vmem:[%s1862_s1] sm:$0xff] (!%p202_p3)   ;;  %v1516_v1 = vmov (!%p202_p3), 0   ;;  %v1442_v3 = vld [vmem:[%s1862_s1 + $0x8] sm:$0xff] (!%p202_p3)   ;;  %v1444_v5 = vld [vmem:[%s1862_s1 + $0x10] sm:$0xff] (!%p202_p3)   ;;  %p231_p4 = scmp.lt.s32.totalorder (!%p202_p3), %s1506_s18, 1  ;;  %v291_v13 = vlaneseq (!%p202_p3)  ;;  %vm383_vm14 = vcmask (!%p202_p3), 523264  }
   0x7   : > { %205 = sbr.rel (%p202_p3) target bundleno = 676 (0x2a4), region = 40  ;;  %387 = vmatprep.subr.bf16.mxu0 (!%p202_p3), %v1516_v1  ;;  %599 = vmatprep.subr.bf16.mxu1 (!%p202_p3), %v1516_v1  ;;  %v1441_v2 = vld [vmem:[%s1862_s1 + $0x60] sm:$0xff] (!%p202_p3)   ;;  %v1443_v4 = vld [vmem:[%s1862_s1 + $0x68] sm:$0xff] (!%p202_p3)   ;;  %v1445_v6 = vld [vmem:[%s1862_s1 + $0x70] sm:$0xff] (!%p202_p3)   ;;  %v1517_v19 = vmov (!%p202_p3), 1966171168  }
   0x8   : > { %388 = vmatpush1.bf16.msra.mxu0 (!%p202_p3), %v1440_v0  ;;  %600 = vmatpush1.bf16.msra.mxu1 (!%p202_p3), %v1441_v2  ;;  %v1446_v7 = vld [vmem:[%s1862_s1 + $0x18] sm:$0xff] (!%p202_p3)   ;;  %v1448_v9 = vld [vmem:[%s1862_s1 + $0x20] sm:$0xff] (!%p202_p3)   ;;  %v1450_v11 = vld [vmem:[%s1862_s1 + $0x28] sm:$0xff] (!%p202_p3)   ;;  %v289_v20 = vunpack.c.l.s4 (!%p202_p3), %v1517_v19  ;;  %v1642_v21 = vshrl.u32 (!%p202_p3), %v291_v13, 7  ;;  %vm467_vm0 = vsmask.f32 (!%p202_p3), 256 }
   0x9   : > { %389 = vmatprep.subr.bf16.mxu0 (!%p202_p3), %v1516_v1  ;;  %601 = vmatprep.subr.bf16.mxu1 (!%p202_p3), %v1516_v1  ;;  %v1447_v8 = vld [vmem:[%s1862_s1 + $0x78] sm:$0xff] (!%p202_p3)   ;;  %v1449_v10 = vld [vmem:[%s1862_s1 + $0x80] sm:$0xff] (!%p202_p3)   ;;  %v1451_v12 = vld [vmem:[%s1862_s1 + $0x88] sm:$0xff] (!%p202_p3)   ;;  %vm468_vm1 = vsmask.f32 (!%p202_p3), 1284  ;;  %s1522_s29 = smov (!%p202_p3), 4  }
   0xa   : > { %v1452_v14 = vld [vmem:[%s1862_s1 + $0x30] sm:$0xff] (!%p202_p3)   ;;  %v1454_v17 = vld [vmem:[%s1862_s1 + $0x38] sm:$0xff] (!%p202_p3)   ;;  %v290_v26 = vunpack.c.0.s8 (!%p202_p3), %v289_v20  ;;  %vm470_vm2 = vsmask.f32 (!%p202_p3), 2312  ;;  %vm469_vm3 = vmor (!%p202_p3), %vm467_vm0, %vm468_vm1  ;;  %vm472_vm4 = vsmask.f32 (!%p202_p3), 3340 }
   0xb   : > { %v1453_v15 = vld [vmem:[%s1862_s1 + $0x90] sm:$0xff] (!%p202_p3)   ;;  %v1455_v25 = vld [vmem:[%s1862_s1 + $0x98] sm:$0xff] (!%p202_p3)   ;;  %vm474_vm5 = vsmask.f32 (!%p202_p3), 4368  ;;  %v1456_v29 = vld [vmem:[%s1862_s1 + $0x40] sm:$0xff] (!%p202_p3)   ;;  %vm1519_vm0 = vmmov (!%p202_p3), 0  }
   0xc   : > { %390 = vmatpush1.bf16.msra.mxu0 (!%p202_p3), %v1442_v3  ;;  %602 = vmatpush1.bf16.msra.mxu1 (!%p202_p3), %v1443_v4  ;;  %v1457_v30 = vld [vmem:[%s1862_s1 + $0xa0] sm:$0xff] (!%p202_p3)   ;;  %v1663_v31 = vsub.s32 (!%p202_p3), %v290_v26, %v1642_v21  ;;  %vm471_vm6 = vmor (!%p202_p3), %vm469_vm3, %vm470_vm2  ;;  %vm476_vm7 = vsmask.f32 (!%p202_p3), 5396  ;;  %vm478_vm9 = vsmask.f32 (!%p202_p3), 6424  ;;  %v1458_v37 = vld [vmem:[%s1862_s1 + $0x48] sm:$0xff] (!%p202_p3)  }
   0xd   : > { %391 = vmatprep.subr.bf16.mxu0 (!%p202_p3), %v1516_v1  ;;  %603 = vmatprep.subr.bf16.mxu1 (!%p202_p3), %v1516_v1  ;;  %vm473_vm8 = vmor (!%p202_p3), %vm471_vm6, %vm472_vm4  ;;  %vm480_vm10 = vsmask.f32 (!%p202_p3), 7452  ;;  %v1459_v41 = vld [vmem:[%s1862_s1 + $0xa8] sm:$0xff] (!%p202_p3)   ;;  %v1460_v49 = vld [vmem:[%s1862_s1 + $0x50] sm:$0xff] (!%p202_p3)   ;;  %vm1169_vm1 = vcmask (!%p202_p3), 31744   ;;  %vm1171_vm2 = vcmask (!%p202_p3), 58368  }
   0xe   : > { %s1872_s18 = smov (!%p231_p4, %s1506_s18), 1  ;;  %vm475_vm11 = vmor %vm473_vm8, %vm474_vm5  ;;  %v1461_v51 = vld [vmem:[%s1862_s1 + $0xb0] sm:$0xff]   ;;  %v1462_v55 = vld [vmem:[%s1862_s1 + $0x58] sm:$0xff]  }
   0xf   : > { %s1408_s17 = smul.u32 12, %s1872_s18  ;;  %vm477_vm12 = vmor %vm475_vm11, %vm476_vm7  ;;  %v1463_v57 = vld [vmem:[%s1862_s1 + $0xb8] sm:$0xff]   ;;  %v1464_v62 = vld [vmem:[%s1862_s1 + $0xc0] sm:$0xff]   ;;  %s1250_s30 = sshll.u32 %s1872_s18, 1 }
  0x10   : > { %392 = vmatpush1.bf16.msra.mxu0 %v1444_v5  ;;  %604 = vmatpush1.bf16.msra.mxu1 %v1445_v6  ;;  %vm479_vm13 = vmor %vm477_vm12, %vm478_vm9  ;;  %v1465_v63 = vld [vmem:[%s1862_s1 + $0x120] sm:$0xff]   ;;  %v1466_v3 = vld [vmem:[%s1862_s1 + $0xc8] sm:$0xff]   ;;  %s242_s8 = scalar_lea.vmem %s1866_s5, %s1250_s30 }
  0x11   : > { %393 = vmatprep.subr.bf16.mxu0 %v1516_v1  ;;  %605 = vmatprep.subr.bf16.mxu1 %v1516_v1  ;;  %s235_s28 = scalar_lea.vmem %s1861_s0, %s1408_s17  ;;  %vm481_vm15 = vmor %vm479_vm13, %vm480_vm10  ;;  %v1467_v4 = vld [vmem:[%s1862_s1 + $0x128] sm:$0xff]   ;;  %v1468_v5 = vld [vmem:[%s1862_s1 + $0xd0] sm:$0xff]  }
  0x12   : > { %v1251_v16 = vld.sshfl [vmem:[%s235_s28] sm:$0x33 pattern:$0x75316420]  ;;  %v1469_v6 = vld [vmem:[%s1862_s1 + $0x130] sm:$0xff]   ;;  %v1482_v19 = vld [vmem:[%s1862_s1 + $0x108] sm:$0xff]  }
  0x13   : > { %v1640_v18 = vld.sshfl [vmem:[%s235_s28 + $0x4] sm:$0x33 pattern:$0x75316420]  ;;  %v465_v22 = vcombine.high %v1251_v16, %v1251_v16  ;;  %v483_v32 = vshrl.u32 %v1251_v16, 16  ;;  %v1476_v13 = vld [vmem:[%s1862_s1 + $0xf0] sm:$0xff]  }
  0x14   : > { %394 = vmatpush1.bf16.msra.mxu0 %v1446_v7  ;;  %606 = vmatpush1.bf16.msra.mxu1 %v1447_v8  ;;  %v1644_v23 = vld.sshfl [vmem:[%s235_s28 + $0x8] sm:$0x33 pattern:$0x75316420]  ;;  %v287_v24 = vcombine.low %v1251_v16, %v1640_v18  ;;  %v466_v27 = vcombine.high %v1640_v18, %v1640_v18  ;;  %v492_v35 = vshrl.u32 %v1640_v18, 16  ;;  %v1470_v7 = vld [vmem:[%s1862_s1 + $0xd8] sm:$0xff]  }
  0x15   : > { %395 = vmatprep.subr.bf16.mxu0 %v1516_v1  ;;  %607 = vmatprep.subr.bf16.mxu1 %v1516_v1  ;;  %v862_v28 = vcombine.high %v1644_v23, %v1644_v23  ;;  %v488_v33 = vshll.u32 %v465_v22, 16  ;;  %v864_v38 = vshrl.u32 %v1644_v23, 16  ;;  %v685_v47 = vcombine.low %v1640_v18, %v1644_v23  ;;  %v1471_v8 = vld [vmem:[%s1862_s1 + $0x138] sm:$0xff]   ;;  %v1481_v18 = vld [vmem:[%s1862_s1 + $0x160] sm:$0xff]   ;;  %v1483_v20 = vld [vmem:[%s1862_s1 + $0x168] sm:$0xff]  }
  0x16   : > { %v294_v34 = vrot.slane %v287_v24, %v1663_v31  ;;  %v497_v36 = vshll.u32 %v466_v27, 16  ;;  %v1479_v16 = vld [vmem:[%s1862_s1 + $0x158] sm:$0xff]   ;;  %v1484_v22 = vld [vmem:[%s1862_s1 + $0x110] sm:$0xff]  }
  0x17   : > { %v869_v39 = vshll.u32 %v862_v28, 16  ;;  %v490_v43 = vsel %vm481_vm15, %v483_v32, %v488_v33  ;;  %v1694_v53 = vrot.slane %v685_v47, %v1663_v31  ;;  %v1485_v23 = vld [vmem:[%s1862_s1 + $0x170] sm:$0xff]   ;;  %v1486_v24 = vld [vmem:[%s1862_s1 + $0x118] sm:$0xff]   ;;  %v1488_v28 = vld [vmem:[%s1864_s3] sm:$0xff]   ;;  %v1520_v33 = vmov 1983009808  }
  0x18   : > { %396 = vmatpush1.bf16.msra.mxu0 %v1448_v9  ;;  %608 = vmatpush1.bf16.msra.mxu1 %v1449_v10  ;;  %v295_v40 = vcombine.high %v294_v34, %v294_v34  ;;  %v499_v44 = vsel %vm481_vm15, %v492_v35, %v497_v36  ;;  %v302_v59 = vrot.slane %v294_v34, %v1663_v31  ;;  %v1472_v9 = vld [vmem:[%s1862_s1 + $0xe0] sm:$0xff]   ;;  %v1491_v32 = vld [vmem:[%s1864_s3 + $0x18] sm:$0xff]   ;;  %v429_v34 = vunpack.c.l.s4 %v1520_v33 }
  0x19   : > { %397 = vmatprep.subr.bf16.mxu0 %v1516_v1  ;;  %609 = vmatprep.subr.bf16.mxu1 %v1516_v1  ;;  %v500_v45 = vcombine.low %v490_v43, %v499_v44  ;;  %v871_v46 = vsel %vm481_vm15, %v864_v38, %v869_v39  ;;  %v693_v58 = vcombine.high %v1694_v53, %v1694_v53  ;;  %v1473_v10 = vld [vmem:[%s1862_s1 + $0x140] sm:$0xff]  }
  0x1a   : > { %v309_v42 = vrot.slane %v295_v40, %v1663_v31  ;;  %v872_v48 = vcombine.low %v499_v44, %v871_v46  ;;  %v700_v26 = vrot.slane %v1694_v53, %v1663_v31  ;;  %v430_v35 = vunpack.c.0.s8 %v429_v34 }
  0x1b   : > { %v507_v50 = vrot.slane %v500_v45, %v1663_v31  ;;  %v707_v0 = vrot.slane %v693_v58, %v1663_v31 }
  0x1c   : > { %398 = vmatpush1.bf16.msra.mxu0 %v1450_v11  ;;  %610 = vmatpush1.bf16.msra.mxu1 %v1451_v12  ;;  %v1697_v54 = vrot.slane %v872_v48, %v1663_v31  ;;  %v1474_v11 = vld [vmem:[%s1862_s1 + $0xe8] sm:$0xff]   ;;  %v433_v36 = vsub.s32 %v430_v35, %v1642_v21 }
  0x1d   : > { %399 = vmatprep.subr.bf16.mxu0 %v1516_v1  ;;  %611 = vmatprep.subr.bf16.mxu1 %v1516_v1  ;;  %v508_v52 = vcombine.high %v507_v50, %v507_v50  ;;  %v515_v61 = vrot.slane %v507_v50, %v1663_v31  ;;  %v1475_v12 = vld [vmem:[%s1862_s1 + $0x148] sm:$0xff]  }
  0x1e   : > { %1265 = vmatprep.mubr.msk.bf16.mxu0 %vm383_vm14, %v309_v42  ;;  %v880_v60 = vcombine.high %v1697_v54, %v1697_v54  ;;  %v887_v27 = vrot.slane %v1697_v54, %v1663_v31 }
  0x1f   : > { %v522_v56 = vrot.slane %v508_v52, %v1663_v31 }
  0x20   : > { %400 = vmatpush1.bf16.msra.mxu0 %v1452_v14  ;;  %612 = vmatpush1.bf16.msra.mxu1 %v1453_v15  ;;  %v894_v2 = vrot.slane %v880_v60, %v1663_v31  ;;  %v1477_v14 = vld [vmem:[%s1862_s1 + $0x150] sm:$0xff]   ;;  %v1478_v15 = vld [vmem:[%s1862_s1 + $0xf8] sm:$0xff]  }
  0x21   : > { %401 = vmatprep.subr.bf16.mxu0 %v1516_v1  ;;  %613 = vmatprep.subr.bf16.mxu1 %v1516_v1 }
  0x22   : > { %1304 = vmatprep.mubr.msk.bf16.mxu1 %vm383_vm14, %v522_v56 }
  0x24   : > { %402 = vmatpush1.bf16.msra.mxu0 %v1454_v17  ;;  %614 = vmatpush1.bf16.msra.mxu1 %v1455_v25  ;;  %v1480_v17 = vld [vmem:[%s1862_s1 + $0x100] sm:$0xff]   ;;  %v1487_v25 = vld [vmem:[%s1862_s1 + $0x178] sm:$0xff]  }
  0x25   : > { %403 = vmatprep.subr.bf16.mxu0 %v1516_v1  ;;  %615 = vmatprep.subr.bf16.mxu1 %v1516_v1 }
  0x28   : > { %404 = vmatpush1.bf16.msra.mxu0 %v1456_v29  ;;  %616 = vmatpush1.bf16.msra.mxu1 %v1457_v30  ;;  %v1518_v29 = vmov 0.0   ;;  %v1490_v30 = vld [vmem:[%s1864_s3 + $0x10] sm:$0xff]  }
  0x29   : > { %405 = vmatprep.subr.bf16.mxu0 %v1516_v1  ;;  %617 = vmatprep.subr.bf16.mxu1 %v1516_v1 }
  0x2c   : > { %406 = vmatpush1.bf16.msra.mxu0 %v1458_v37  ;;  %618 = vmatpush1.bf16.msra.mxu1 %v1459_v41 }
  0x2d   : > { %407 = vmatprep.subr.bf16.mxu0 %v1516_v1  ;;  %619 = vmatprep.subr.bf16.mxu1 %v1516_v1 }
  0x30   : > { %408 = vmatpush1.bf16.msra.mxu0 %v1460_v49  ;;  %620 = vmatpush1.bf16.msra.mxu1 %v1461_v51 }
  0x31   : > { %409 = vmatprep.subr.bf16.mxu0 %v1516_v1  ;;  %621 = vmatprep.subr.bf16.mxu1 %v1516_v1 }
  0x34   : > { %410 = vmatpush1.bf16.msra.mxu0 %v1462_v55  ;;  %622 = vmatpush1.bf16.msra.mxu1 %v1463_v57 }
  0x35   : > { %784 = vmatprep.subr.bf16.mxu0 %v1516_v1  ;;  %971 = vmatprep.subr.bf16.mxu1 %v1516_v1 }
  0x37   : > { %420 = vmatmul.mubr.bf16.vlgmr.msra.gmra.mrb[0].mxu0 %v302_v59  ;;  %632 = vmatmul.mubr.bf16.vlgmr.msra.gmra.mrb[0].mxu1 %v515_v61 }
  0x38   : > { %785 = vmatpush1.bf16.msra.mxu0 %v1464_v62  ;;  %972 = vmatpush1.bf16.msra.mxu1 %v1465_v63  ;;  %v1381_v63 = vld [vmem:[%s1863_s2] ss:$0 sm:$0xff] }
  0x39   : > { %786 = vmatprep.subr.bf16.mxu0 %v1516_v1  ;;  %973 = vmatprep.subr.bf16.mxu1 %v1516_v1 }
  0x3a   : > { %1342 = vmatprep.mubr.msk.bf16.mxu0 %vm383_vm14, %v707_v0  ;;  %1380 = vmatprep.mubr.msk.bf16.mxu1 %vm383_vm14, %v894_v2 }
  0x3c   : > { %787 = vmatpush1.bf16.msra.mxu0 %v1466_v3  ;;  %974 = vmatpush1.bf16.msra.mxu1 %v1467_v4 }
  0x3d   : > { %788 = vmatprep.subr.bf16.mxu0 %v1516_v1  ;;  %975 = vmatprep.subr.bf16.mxu1 %v1516_v1 }
  0x40   : > { %789 = vmatpush1.bf16.msra.mxu0 %v1468_v5  ;;  %976 = vmatpush1.bf16.msra.mxu1 %v1469_v6 }
  0x41   : > { %790 = vmatprep.subr.bf16.mxu0 %v1516_v1  ;;  %977 = vmatprep.subr.bf16.mxu1 %v1516_v1 }
  0x44   : > { %791 = vmatpush1.bf16.msra.mxu0 %v1470_v7  ;;  %978 = vmatpush1.bf16.msra.mxu1 %v1471_v8 }
  0x45   : > { %792 = vmatprep.subr.bf16.mxu0 %v1516_v1  ;;  %979 = vmatprep.subr.bf16.mxu1 %v1516_v1 }
  0x48   : > { %793 = vmatpush1.bf16.msra.mxu0 %v1472_v9  ;;  %980 = vmatpush1.bf16.msra.mxu1 %v1473_v10 }
  0x49   : > { %794 = vmatprep.subr.bf16.mxu0 %v1516_v1  ;;  %981 = vmatprep.subr.bf16.mxu1 %v1516_v1 }
  0x4c   : > { %795 = vmatpush1.bf16.msra.mxu0 %v1474_v11  ;;  %982 = vmatpush1.bf16.msra.mxu1 %v1475_v12  ;;  %v1521_v12 = vmov 1934713408  }
  0x4d   : > { %796 = vmatprep.subr.bf16.mxu0 %v1516_v1  ;;  %983 = vmatprep.subr.bf16.mxu1 %v1516_v1 }
  0x50   : > { %797 = vmatpush1.bf16.msra.mxu0 %v1476_v13  ;;  %984 = vmatpush1.bf16.msra.mxu1 %v1477_v14  ;;  %v1151_v13 = vunpack.c.l.s4 %v1521_v12 }
  0x51   : > { %798 = vmatprep.subr.bf16.mxu0 %v1516_v1  ;;  %985 = vmatprep.subr.bf16.mxu1 %v1516_v1 }
  0x54   : > { %799 = vmatpush1.bf16.msra.mxu0 %v1478_v15  ;;  %986 = vmatpush1.bf16.msra.mxu1 %v1479_v16 }
  0x55   : > { %800 = vmatprep.subr.bf16.mxu0 %v1516_v1  ;;  %987 = vmatprep.subr.bf16.mxu1 %v1516_v1 }
  0x58   : > { %801 = vmatpush1.bf16.msra.mxu0 %v1480_v17  ;;  %988 = vmatpush1.bf16.msra.mxu1 %v1481_v18  ;;  %v1152_v17 = vunpack.c.0.s8 %v1151_v13  ;;  %v1388_v18 = vld [vmem:[%s1865_s4] ss:$0 sm:$0xff] }
  0x59   : > { %802 = vmatprep.subr.bf16.mxu0 %v1516_v1  ;;  %989 = vmatprep.subr.bf16.mxu1 %v1516_v1 }
  0x5c   : > { %803 = vmatpush1.bf16.msra.mxu0 %v1482_v19  ;;  %990 = vmatpush1.bf16.msra.mxu1 %v1483_v20 }
  0x5d   : > { %804 = vmatprep.subr.bf16.mxu0 %v1516_v1  ;;  %991 = vmatprep.subr.bf16.mxu1 %v1516_v1 }
  0x60   : > { %805 = vmatpush1.bf16.msra.mxu0 %v1484_v22  ;;  %992 = vmatpush1.bf16.msra.mxu1 %v1485_v23 }
  0x61   : > { %806 = vmatprep.subr.bf16.mxu0 %v1516_v1  ;;  %993 = vmatprep.subr.bf16.mxu1 %v1516_v1  ;;  %v1489_v1 = vld [vmem:[%s1864_s3 + $0x8] sm:$0xff]  }
  0x64   : > { %807 = vmatpush1.bf16.msra.mxu0 %v1486_v24  ;;  %994 = vmatpush1.bf16.msra.mxu1 %v1487_v25 }
  0x65   : > { %1396 = vmatprep.subr.bf16.mxu0 %v1518_v29 }
  0x67   : > { %817 = vmatmul.mubr.bf16.vlgmr.msra.gmra.mrb[4].mxu0 %v700_v26  ;;  %1004 = vmatmul.mubr.bf16.vlgmr.msra.gmra.mrb[4].mxu1 %v887_v27 }
  0x68   : > { %1397 = vmatpush3.bf16.msra.mxu0 %v1488_v28  ;;  %1404 = vmatprep.mubr.msk.bf16.mxu0 %vm1519_vm0, %v1518_v29 }
  0x69   : > { %1398 = vmatprep.subr.bf16.mxu0 %v1518_v29 }
  0x6c   : > { %1399 = vmatpush3.bf16.msra.mxu0 %v1489_v1 }
  0x6d   : > { %1400 = vmatprep.subr.bf16.mxu0 %v1518_v29 }
  0x70   : > { %1401 = vmatpush3.bf16.msra.mxu0 %v1490_v30 }
  0x71   : > { %1402 = vmatprep.subr.bf16.mxu0 %v1518_v29 }
  0x74   : > { %1403 = vmatpush3.bf16.msra.mxu0 %v1491_v32 }
 0x10a   : > { %v421_v37 = vpop.f32.mrb[0].mxu0  ;;  %v633_v39 = vpop.f32.mrb[0].mxu1 }
 0x10b   : > { %v434_v38 = vrot.slane %v421_v37, %v433_v36  ;;  %v423_v40 = vpop.f32.mrb[1].mxu0  ;;  %v646_v41 = vrot.slane %v633_v39, %v433_v36  ;;  %v635_v42 = vpop.f32.mrb[1].mxu1 }
 0x10c   : > { %v424_v43 = vpop.f32.mrb[2].mxu0  ;;  %v636_v45 = vpop.f32.mrb[2].mxu1 }
 0x10d   : > { %v435_v44 = vcombine.high %v434_v38, %v434_v38  ;;  %v425_v46 = vpop.f32.mrb[3].mxu0  ;;  %v647_v47 = vcombine.high %v646_v41, %v646_v41  ;;  %v650_v48 = vadd.f32 %v646_v41, %v434_v38  ;;  %v637_v49 = vpop.f32.mrb[3].mxu1 }
 0x10f   : > { %v651_v50 = vadd.f32 %v647_v47, %v435_v44 }
 0x13a   : > { %v818_v51 = vpop.f32.mrb[4].mxu0  ;;  %v1005_v53 = vpop.f32.mrb[4].mxu1 }
 0x13b   : > { %v831_v52 = vrot.slane %v818_v51, %v433_v36  ;;  %v820_v54 = vpop.f32.mrb[5].mxu0  ;;  %v1018_v55 = vrot.slane %v1005_v53, %v433_v36  ;;  %v1007_v56 = vpop.f32.mrb[5].mxu1 }
 0x13c   : > { %v821_v57 = vpop.f32.mrb[6].mxu0  ;;  %v1008_v60 = vpop.f32.mrb[6].mxu1 }
 0x13d   : > { %v832_v58 = vcombine.high %v831_v52, %v831_v52  ;;  %v835_v59 = vadd.f32 %v831_v52, %v650_v48  ;;  %v822_v61 = vpop.f32.mrb[7].mxu0  ;;  %v1019_v62 = vcombine.high %v1018_v55, %v1018_v55  ;;  %v1009_v0 = vpop.f32.mrb[7].mxu1 }
 0x13f   : > { %v836_v2 = vadd.f32 %v832_v58, %v651_v50  ;;  %v1022_v3 = vadd.f32 %v1018_v55, %v835_v59 }
 0x141   : > { %v1023_v4 = vadd.f32 %v1019_v62, %v836_v2  ;;  %v1031_v5 = vadd.f32 %v1381_v63, %v1022_v3 }
 0x143   : > { %v1032_v6 = vadd.f32 %v1381_v63, %v1023_v4  ;;  %v1033_v7 = vmax.f32 %v1031_v5, 0.0 }
 0x145   : > { %v1034_v8 = vmax.f32 %v1032_v6, 0.0 }
 0x147   : > { %v1382_v9 = vpack.c.bf16 %v1034_v8, %v1033_v7 }
 0x149   : > { %v1054_v10 = vrot.slane %v1382_v9, %v1663_v31 }
 0x14b   : > { %v1061_v11 = vrot.slane %v1054_v10, %v1663_v31  ;;  %v1155_v31 = vsub.s32 %v1152_v17, %v1642_v21 }
 0x14d   : > { %1405 = vmatmul.mubr.msk.bf16.vlgmr.msra.gmra.mrb[8].mxu0 %vm383_vm14, %v1061_v11 }
 0x220   : > { %v1123_v14 = vpop.f32.mrb[8].mxu0 }
 0x221   : > { %v1136_v15 = vrot.slane %v1123_v14, %v433_v36  ;;  %v1406_v16 = vpop.f32.mrb[9].mxu0 }
 0x222   : > { %v1126_v19 = vpop.f32.mrb[10].mxu0 }
 0x223   : > { %v1137_v20 = vcombine.high %v1136_v15, %v1136_v15  ;;  %v1407_v22 = vpop.f32.mrb[11].mxu0  ;;  %v1147_v23 = vadd.f32 %v1388_v18, %v1136_v15 }
 0x225   : > { %v1148_v24 = vadd.f32 %v1388_v18, %v1137_v20 }
 0x227   : > { %v1149_v25 = vcombine.low %v1147_v23, %v1148_v24 }
 0x229   : > { %v1156_v26 = vrot.slane %v1149_v25, %v1155_v31 }
 0x22b   : > { %v1157_v27 = vcombine.high %v1156_v26, %v1518_v29 }
 0x22d   : > { %v1165_v28 = vrot.slane %v1157_v27, %v433_v36 }
 0x22f   : > { %1166 = vrot.lane.b32.xlu0 %v1165_v28, %s1522_s29 }
 0x2a1   : > { %v1167_v1 = vpop.permute.xlu0 %1166 }
 0x2a2   : > { %v1170_v30 = vsel %vm1169_vm1, %v1156_v26, %v1167_v1 }
 0x2a3   : > { %1172 = vst.msk [vmem:[%s242_s8] sm:$0x3] %vm1171_vm2, %v1170_v30 }
 0x2a4 PF: > { %s15_s20 = sadd.s32 1, %s1514_s20   ;;  %s1867_s18 = smov %s1510_s19 }
 0x2a5   : > { %p12_p5 = scmp.ge.s32.totalorder %s15_s20, 4   ;;  %s1868_s19 = smov %s1870_s21 }
 0x2a7   :  { %14 = sbr.rel (!%p12_p5) target bundleno = 2 (0x2), region = 73 }

// kernel: sinet_forward.7
= control target key start
LH: loop header
LB: loop body
LE: loop exit
PB: predicated region body
PF: predicated region fallthrough
CT: control target
= control target key end

     0   :  { %s1916_s15 = smov 0   ;;  %s2389_s0 = inlined_call_operand.vmem [shape: f32[2,4,6,6], index: 0, kind: input, shape index: {}]   ;;  %s2390_s1 = inlined_call_operand.vmem [shape: bf16[2,6,6,52], index: 1, kind: input, shape index: {}]   ;;  %s2391_s2 = inlined_call_operand.vmem [shape: bf16[9,52,4], index: 2, kind: input, shape index: {}]   ;;  %s2392_s3 = inlined_call_operand.vmem [shape: f32[4,4,4], index: 3, kind: input, shape index: {}]   ;;  %s2393_s4 = inlined_call_operand.vmem [shape: f32[2,4,16], index: 4, kind: output, shape index: {}]  }
   0x1 LB: > { %s1526_s0 = sadd.s32 4294967295, %s1882_s15   ;;  %p1530_p0 = scmp.ge.s32.totalorder %s1882_s15, 1  ;;  %s1882_s15 = sphi %s1916_s15, %s14_s15  }
   0x2   : > { %p172_p1 = scmp.lt.s32.totalorder %s1882_s15, 3 }
   0x4   : > { %p173_p2 = pnand %p1530_p0, %p172_p1 }
   0x5   : > { %p207_p3 = scmp.lt.s32.totalorder (!%p173_p2), %s1526_s0, 1  ;;  %vm229_vm0 = vcmask (!%p173_p2), 29696   ;;  %v1816_v48 = vld [vmem:[%s2391_s2] sm:$0xff] (!%p173_p2)   ;;  %v1884_v49 = vmov (!%p173_p2), 0.0   ;;  %v1817_v50 = vld [vmem:[%s2391_s2 + $0x8] sm:$0xff] (!%p173_p2)   ;;  %v1818_v51 = vld [vmem:[%s2391_s2 + $0x10] sm:$0xff] (!%p173_p2)   ;;  %v302_v60 = vlaneseq (!%p173_p2) }
   0x6   : > { %176 = sbr.rel (%p173_p2) target bundleno = 765 (0x2fd), region = 36  ;;  %1692 = vmatprep.subr.bf16.mxu0 (!%p173_p2), %v1884_v49  ;;  %1704 = vmatprep.subr.bf16.mxu1 (!%p173_p2), %v1884_v49  ;;  %v1819_v52 = vld [vmem:[%s2391_s2 + $0x18] ss:$0 sps:$4 sm:$0x33] (!%p173_p2)   ;;  %vm380_vm1 = vcmask (!%p173_p2), 1041408   ;;  %v1820_v54 = vld [vmem:[%s2391_s2 + $0x1c] sm:$0xff] (!%p173_p2)  }
   0x7   : > { %1693 = vmatpush3.bf16.msra.mxu0 (!%p173_p2), %v1816_v48  ;;  %v382_v53 = vsel (!%p173_p2), %vm380_vm1, %v1819_v52, 0  ;;  %1705 = vmatpush3.bf16.msra.mxu1 (!%p173_p2), %v1820_v54  ;;  %vm1885_vm2 = vmmov (!%p173_p2), 0   ;;  %v1822_v55 = vld [vmem:[%s2391_s2 + $0x24] sm:$0xff] (!%p173_p2)   ;;  %v1824_v56 = vld [vmem:[%s2391_s2 + $0x2c] sm:$0xff] (!%p173_p2)   ;;  %v2006_v63 = vand.u32 (!%p173_p2), 127, %v302_v60  ;;  %vm376_vm4 = vcmask (!%p173_p2), 424960  }
   0x8   : > { %1694 = vmatprep.subr.bf16.mxu0 (!%p173_p2), %v1884_v49  ;;  %1706 = vmatprep.subr.bf16.mxu1 (!%p173_p2), %v1884_v49  ;;  %v1826_v57 = vld [vmem:[%s2391_s2 + $0x34] ss:$0 sps:$4 sm:$0x33] (!%p173_p2)   ;;  %vm475_vm5 = vsmask.f32 (!%p173_p2), 1280  ;;  %vm641_vm10 = vcmask (!%p173_p2), 1040384  }
   0x9   : > { %1700 = vmatprep.mubr.msk.bf16.mxu0 (!%p173_p2), %vm1885_vm2, %v1884_v49  ;;  %1712 = vmatprep.mubr.msk.bf16.mxu1 (!%p173_p2), %vm1885_vm2, %v1884_v49  ;;  %v580_v58 = vsel (!%p173_p2), %vm380_vm1, %v1826_v57, 0  ;;  %vm304_vm3 = vcmp.lt.s32.totalorder (!%p173_p2), %v2006_v63, 4  ;;  %vm476_vm6 = vsmask.f32 (!%p173_p2), 3336  ;;  %vm478_vm8 = vsmask.f32 (!%p173_p2), 5392 }
   0xa   : > { %vm2089_vm7 = vmor (!%p173_p2), %vm475_vm5, %vm476_vm6  ;;  %vm480_vm9 = vsmask.f32 (!%p173_p2), 7448  ;;  %vm642_vm11 = vcmask (!%p173_p2), 1042434   ;;  %vm644_vm12 = vcmask (!%p173_p2), 1044484   ;;  %vm646_vm13 = vcmask (!%p173_p2), 1046534   ;;  %s1888_s25 = smov (!%p173_p2), 8  }
   0xb   : > { %1695 = vmatpush3.bf16.msra.mxu0 (!%p173_p2), %v1817_v50  ;;  %1707 = vmatpush3.bf16.msra.mxu1 (!%p173_p2), %v1822_v55  ;;  %v1823_v55 = vld [vmem:[%s2391_s2 + $0x40] sm:$0xff] (!%p173_p2)   ;;  %vm479_vm14 = vmor (!%p173_p2), %vm2089_vm7, %vm478_vm8  ;;  %v1834_v63 = vld [vmem:[%s2391_s2 + $0x6c] ss:$0 sps:$4 sm:$0x33] (!%p173_p2)   ;;  %s1889_s26 = smov (!%p173_p2), 4   ;;  %s1890_s27 = smov (!%p173_p2), 12  }
   0xc   : > { %1696 = vmatprep.subr.bf16.mxu0 (!%p173_p2), %v1884_v49  ;;  %1708 = vmatprep.subr.bf16.mxu1 (!%p173_p2), %v1884_v49  ;;  %vm2117_vm15 = vmor (!%p173_p2), %vm641_vm10, %vm642_vm11 }
   0xd   : > { %s2405_s0 = smov (!%p207_p3, %s1526_s0), 1  ;;  %vm2135_vm5 = vmor %vm2117_vm15, %vm644_vm12 }
   0xe   : > { %s1800_s16 = smul.u32 24, %s2405_s0  ;;  %vm2156_vm6 = vmor %vm2135_vm5, %vm646_vm13  ;;  %s1532_s28 = sshll.u32 %s2405_s0, 2 }
   0xf   : > { %1697 = vmatpush3.bf16.msra.mxu0 %v1818_v51  ;;  %1709 = vmatpush3.bf16.msra.mxu1 %v1824_v56  ;;  %s215_s5 = scalar_lea.vmem %s2393_s4, %s1532_s28 }
  0x10   : > { %s211_s19 = scalar_lea.vmem %s2390_s1, %s1800_s16  ;;  %1698 = vmatprep.subr.bf16.mxu0 %v1884_v49  ;;  %1710 = vmatprep.subr.bf16.mxu1 %v1884_v49 }
  0x11   : > { %v217_v0 = vld [vmem:[%s211_s19] sm:$0x7]  ;;  %v219_v1 = vld [vmem:[%s211_s19 + $0x8] sm:$0x7]  ;;  %v218_v2 = vld [vmem:[%s211_s19 + $0x4] sm:$0x7] }
  0x12   : > { %v1930_v3 = vunpack.c.l.bf16 %v217_v0  ;;  %v1932_v4 = vunpack.c.l.bf16 %v219_v1  ;;  %v1934_v5 = vunpack.c.l.bf16 %v218_v2  ;;  %v220_v6 = vld [vmem:[%s211_s19 + $0xc] sm:$0x7]  ;;  %v221_v7 = vld [vmem:[%s211_s19 + $0x10] sm:$0x7]  ;;  %v222_v8 = vld [vmem:[%s211_s19 + $0x14] sm:$0x7] }
  0x13   : > { %v1936_v9 = vunpack.c.l.bf16 %v220_v6  ;;  %v1938_v10 = vunpack.c.l.bf16 %v221_v7  ;;  %v1940_v11 = vunpack.c.l.bf16 %v222_v8  ;;  %1699 = vmatpush3.bf16.msra.mxu0 %v382_v53  ;;  %1711 = vmatpush3.bf16.msra.mxu1 %v580_v58  ;;  %v1886_v6 = vmov 1983009808  }
  0x14   : > { %v230_v12 = vsel %vm229_vm0, %v1930_v3, -inf  ;;  %v236_v13 = vsel %vm229_vm0, %v1932_v4, -inf  ;;  %v233_v14 = vsel %vm229_vm0, %v1934_v5, -inf  ;;  %1716 = vmatprep.subr.bf16.mxu0 %v1884_v49  ;;  %1728 = vmatprep.subr.bf16.mxu1 %v1884_v49  ;;  %v341_v7 = vunpack.c.l.s4 %v1886_v6 }
  0x15   : > { %231 = vmax.xlane.f32.xlu0 %v230_v12  ;;  %237 = vmax.xlane.f32.xlu1 %v236_v13  ;;  %v239_v15 = vsel %vm229_vm0, %v1936_v9, -inf  ;;  %v242_v16 = vsel %vm229_vm0, %v1938_v10, -inf  ;;  %v245_v17 = vsel %vm229_vm0, %v1940_v11, -inf }
  0x19   : > { %234 = vmax.xlane.f32.xlu0 %v233_v14  ;;  %240 = vmax.xlane.f32.xlu1 %v239_v15  ;;  %v342_v14 = vunpack.c.0.s8 %v341_v7  ;;  %v2011_v15 = vshrl.u32 %v302_v60, 7 }
  0x1d   : > { %243 = vmax.xlane.f32.xlu0 %v242_v16  ;;  %246 = vmax.xlane.f32.xlu1 %v245_v17 }
  0xa2   : > { %v232_v18 = vpop.xlane.xlu0 %231  ;;  %v238_v19 = vpop.xlane.xlu1 %237 }
  0xa3   : > { %v248_v20 = vsub.f32 %v1930_v3, %v232_v18  ;;  %v250_v21 = vsub.f32 %v1932_v4, %v238_v19 }
  0xa5   : > { %v254_v22 = vmul.f32 1.442695, %v248_v20  ;;  %v258_v23 = vmul.f32 1.442695, %v250_v21 }
  0xa6   : > { %v235_v24 = vpop.xlane.xlu0 %234  ;;  %v241_v25 = vpop.xlane.xlu1 %240 }
  0xa7   : > { %1852 = vpow2.f32 %v254_v22  ;;  %v249_v26 = vsub.f32 %v1934_v5, %v235_v24  ;;  %v251_v27 = vsub.f32 %v1936_v9, %v241_v25  ;;  %v2017_v22 = vsub.s32 %v342_v14, %v2011_v15 }
  0xa8   : > { %1854 = vpow2.f32 %v258_v23 }
  0xa9   : > { %v256_v28 = vmul.f32 1.442695, %v249_v26  ;;  %v260_v29 = vmul.f32 1.442695, %v251_v27 }
  0xaa   : > { %v244_v30 = vpop.xlane.xlu0 %243  ;;  %v247_v31 = vpop.xlane.xlu1 %246 }
  0xab   : > { %1856 = vpow2.f32 %v256_v28  ;;  %v252_v32 = vsub.f32 %v1938_v10, %v244_v30  ;;  %v253_v33 = vsub.f32 %v1940_v11, %v247_v31 }
  0xac   : > { %1858 = vpow2.f32 %v260_v29 }
  0xad   : > { %v262_v34 = vmul.f32 1.442695, %v252_v32  ;;  %v264_v35 = vmul.f32 1.442695, %v253_v33 }
  0xaf   : > { %1860 = vpow2.f32 %v262_v34 }
  0xb0   : > { %1862 = vpow2.f32 %v264_v35 }
  0xb1   : > { %v1853_v36 = vpop.eup %1852 }
  0xb2   : > { %v1855_v37 = vpop.eup %1854  ;;  %v266_v38 = vsel %vm229_vm0, %v1853_v36, 0.0 }
  0xb3   : > { %267 = vadd.xlane.f32.xlu0 %v266_v38  ;;  %v272_v39 = vsel %vm229_vm0, %v1855_v37, 0.0 }
  0xb5   : > { %v1857_v40 = vpop.eup %1856 }
  0xb6   : > { %v1859_v41 = vpop.eup %1858  ;;  %v269_v42 = vsel %vm229_vm0, %v1857_v40, 0.0 }
  0xb7   : > { %273 = vadd.xlane.f32.xlu0 %v272_v39  ;;  %270 = vadd.xlane.f32.xlu1 %v269_v42  ;;  %v275_v43 = vsel %vm229_vm0, %v1859_v41, 0.0 }
  0xb9   : > { %v1861_v44 = vpop.eup %1860 }
  0xba   : > { %v1863_v45 = vpop.eup %1862  ;;  %v278_v46 = vsel %vm229_vm0, %v1861_v44, 0.0 }
  0xbb   : > { %276 = vadd.xlane.f32.xlu1 %v275_v43  ;;  %279 = vadd.xlane.f32.xlu0 %v278_v46  ;;  %v281_v47 = vsel %vm229_vm0, %v1863_v45, 0.0  ;;  %v1821_v43 = vld [vmem:[%s2391_s2 + $0x38] sm:$0xff]   ;;  %vm2125_vm0 = vmor %vm479_vm14, %vm480_vm9 }
  0xbf   : > { %282 = vadd.xlane.f32.xlu1 %v281_v47  ;;  %v1827_v47 = vld [vmem:[%s2391_s2 + $0x50] ss:$0 sps:$4 sm:$0x33]  }
  0xc0   : > { %v706_v60 = vsel %vm380_vm1, %v1827_v47, 0 }
 0x140   : > { %v268_v59 = vpop.xlane.xlu0 %267 }
 0x141   : > { %1864 = vrcp.f32 %v268_v59 }
 0x144   : > { %v271_v61 = vpop.xlane.xlu1 %270  ;;  %v274_v62 = vpop.xlane.xlu0 %273 }
 0x145   : > { %1866 = vrcp.f32 %v271_v61 }
 0x146   : > { %1868 = vrcp.f32 %v274_v62 }
 0x148   : > { %v277_v0 = vpop.xlane.xlu1 %276  ;;  %v280_v1 = vpop.xlane.xlu0 %279 }
 0x149   : > { %1870 = vrcp.f32 %v277_v0 }
 0x14a   : > { %1872 = vrcp.f32 %v280_v1 }
 0x14b   : > { %v1865_v2 = vpop.eup %1864 }
 0x14c   : > { %v296_v8 = vsub.f32 1.0, %v1865_v2  ;;  %v283_v54 = vpop.xlane.xlu1 %282  ;;  %v1825_v2 = vld [vmem:[%s2391_s2 + $0x48] sm:$0xff]  }
 0x14d   : > { %1874 = vrcp.f32 %v283_v54 }
 0x14e   : > { %v305_v12 = vsel %vm304_vm3, 1.0, %v296_v8 }
 0x14f   : > { %v1867_v13 = vpop.eup %1866  ;;  %v311_v16 = vmul.f32 %v305_v12, %v1930_v3 }
 0x150   : > { %v1869_v17 = vpop.eup %1868  ;;  %v297_v18 = vsub.f32 1.0, %v1867_v13  ;;  %v1828_v13 = vld [vmem:[%s2391_s2 + $0x54] sm:$0xff]  }
 0x151   : > { %v298_v19 = vsub.f32 1.0, %v1869_v17  ;;  %v317_v23 = vpack.c.bf16 %v311_v16, %v311_v16 }
 0x152   : > { %v306_v20 = vsel %vm304_vm3, 1.0, %v297_v18 }
 0x153   : > { %v1871_v21 = vpop.eup %1870  ;;  %v2020_v24 = vmul.f32 %v306_v20, %v1934_v5  ;;  %v307_v26 = vsel %vm304_vm3, 1.0, %v298_v19  ;;  %v2027_v28 = vrot.slane %v317_v23, %v2017_v22  ;;  %v1849_v19 = vld [vmem:[%s2391_s2 + $0xf0] sm:$0xff]  }
 0x154   : > { %v299_v25 = vsub.f32 1.0, %v1871_v21  ;;  %v1873_v27 = vpop.eup %1872  ;;  %v2032_v30 = vmul.f32 %v307_v26, %v1932_v4 }
 0x155   : > { %v318_v3 = vpack.c.bf16 %v2020_v24, %v2020_v24  ;;  %v1533_v31 = vpack.c.bf16 %v2020_v24, %v311_v16  ;;  %v300_v33 = vsub.f32 1.0, %v1873_v27  ;;  %v483_v35 = vshrl.u32 %v2027_v28, 16 }
 0x156   : > { %v308_v29 = vsel %vm304_vm3, 1.0, %v299_v25  ;;  %v486_v36 = vshll.u32 %v2027_v28, 16  ;;  %v1559_v62 = vrot.slane %v2027_v28, 9 }
 0x157   : > { %v2035_v5 = vmul.f32 %v308_v29, %v1936_v9  ;;  %v2039_v32 = vrot.slane %v318_v3, %v2017_v22  ;;  %v309_v4 = vsel %vm304_vm3, 1.0, %v300_v33  ;;  %v319_v9 = vpack.c.bf16 %v2032_v30, %v2032_v30 }
 0x158   : > { %v2053_v38 = vmul.f32 %v309_v4, %v1938_v10  ;;  %v346_v39 = vrot.slane %v1533_v31, %v2017_v22  ;;  %v2065_v10 = vcombine.high %v2027_v28, %v2027_v28  ;;  %v485_v44 = vrot.slane %v483_v35, 6 }
 0x159   : > { %v1534_v34 = vpack.c.bf16 %v2035_v5, %v2032_v30  ;;  %v497_v40 = vshrl.u32 %v2039_v32, 16  ;;  %v500_v41 = vshll.u32 %v2039_v32, 16  ;;  %v320_v42 = vpack.c.bf16 %v2035_v5, %v2035_v5 }
 0x15a   : > { %v488_v45 = vrot.slane %v486_v36, 7  ;;  %v2072_v50 = vrot.slane %v319_v9, %v2017_v22  ;;  %v321_v51 = vpack.c.bf16 %v2053_v38, %v2053_v38  ;;  %v2085_v56 = vcombine.high %v2039_v32, %v2039_v32 }
 0x15b   : > { %v2050_v37 = vrot.slane %v1534_v34, %v2017_v22  ;;  %v499_v48 = vrot.slane %v497_v40, 6  ;;  %v502_v52 = vrot.slane %v500_v41, 7  ;;  %v2078_v53 = vrot.slane %v320_v42, %v2017_v22 }
 0x15c   : > { %v489_v58 = vor.u32 %v488_v45, %v485_v44  ;;  %v492_v59 = vshll.u32 %v2065_v10, 16  ;;  %v2100_v0 = vrot.slane %v321_v51, %v2017_v22  ;;  %v466_v1 = vcombine.high %v2072_v50, %v2072_v50 }
 0x15d   : > { %v354_v46 = vcombine.low %v346_v39, %v2050_v37  ;;  %v503_v61 = vor.u32 %v502_v52, %v499_v48  ;;  %v474_v6 = vcombine.high %v2078_v53, %v2078_v53  ;;  %v506_v7 = vshll.u32 %v2085_v56, 16  ;;  %v1875_v52 = vpop.eup %1874 }
 0x15e   : > { %v511_v8 = vshrl.u32 %v2072_v50, 16  ;;  %v514_v12 = vshll.u32 %v2072_v50, 16  ;;  %v650_v14 = vrot.slane %v2065_v10, 7  ;;  %v490_v16 = vrot.slane %v489_v58, 2 }
 0x15f   : > { %1701 = vmatmul.mubr.msk.bf16.vlgmr.msra.gmra.mrb[0].mxu0 %vm376_vm4, %v354_v46  ;;  %v494_v17 = vrot.slane %v492_v59, 7  ;;  %v525_v18 = vshrl.u32 %v2078_v53, 16  ;;  %v504_v20 = vrot.slane %v503_v61, 2  ;;  %v528_v25 = vshll.u32 %v2078_v53, 16 }
 0x160   : > { %1717 = vmatpush3.bf16.msra.mxu0 %v1821_v43  ;;  %1724 = vmatprep.mubr.msk.bf16.mxu0 %vm1885_vm2, %v1884_v49  ;;  %v513_v21 = vrot.slane %v511_v8, 6  ;;  %v516_v23 = vrot.slane %v514_v12, 7  ;;  %v880_v26 = vshrl.u32 %v2100_v0, 16  ;;  %v883_v27 = vshll.u32 %v2100_v0, 16 }
 0x161   : > { %1718 = vmatprep.subr.bf16.mxu0 %v1884_v49  ;;  %v520_v3 = vshll.u32 %v466_v1, 16  ;;  %v527_v28 = vrot.slane %v525_v18, 6  ;;  %v508_v31 = vrot.slane %v506_v7, 7  ;;  %v530_v34 = vrot.slane %v528_v25, 7  ;;  %v1831_v25 = vld [vmem:[%s2391_s2 + $0x78] sm:$0xff]  }
 0x162   : > { %v517_v33 = vor.u32 %v516_v23, %v513_v21  ;;  %v534_v35 = vshll.u32 %v474_v6, 16  ;;  %v1560_v36 = vrot.slane %v2039_v32, 9  ;;  %v1561_v4 = vrot.slane %v2072_v50, 9  ;;  %v1830_v23 = vld [vmem:[%s2391_s2 + $0x5c] sm:$0xff]  }
 0x163   : > { %v1562_v9 = vrot.slane %v2078_v53, 9  ;;  %v495_v39 = vsel %vm2125_vm0, %v490_v16, %v494_v17  ;;  %v2147_v40 = vcombine.high %v2100_v0, %v2100_v0  ;;  %v2151_v41 = vsel %vm2125_vm0, %v504_v20, %v508_v31  ;;  %v1850_v32 = vld [vmem:[%s2391_s2 + $0xdc] ss:$0 sps:$4 sm:$0x33]  }
 0x164   : > { %1719 = vmatpush3.bf16.msra.mxu0 %v1823_v55  ;;  %v518_v42 = vrot.slane %v517_v33, 2  ;;  %v531_v43 = vor.u32 %v530_v34, %v527_v28  ;;  %v522_v10 = vrot.slane %v520_v3, 7  ;;  %v654_v44 = vrot.slane %v2085_v56, 7  ;;  %v1832_v3 = vld [vmem:[%s2391_s2 + $0x64] sm:$0xff]  }
 0x165   : > { %1720 = vmatprep.subr.bf16.mxu0 %v1884_v49  ;;  %v658_v45 = vrot.slane %v466_v1, 7  ;;  %v662_v46 = vrot.slane %v474_v6, 7  ;;  %v882_v47 = vrot.slane %v880_v26, 6  ;;  %v885_v48 = vrot.slane %v883_v27, 7  ;;  %v1833_v28 = vld [vmem:[%s2391_s2 + $0x80] sm:$0xff]  }
 0x166   : > { %v532_v50 = vrot.slane %v531_v43, 2  ;;  %v536_v51 = vrot.slane %v534_v35, 7  ;;  %v523_v53 = vsel %vm2125_vm0, %v518_v42, %v522_v10  ;;  %v538_v54 = vcombine.low %v495_v39, %v2151_v41  ;;  %v1835_v33 = vld [vmem:[%s2391_s2 + $0x88] ss:$0 sps:$4 sm:$0x33]  }
 0x167   : > { %v651_v55 = vsel %vm2156_vm6, %v1559_v62, %v650_v14  ;;  %v2168_v57 = vsel %vm2156_vm6, %v1560_v36, %v654_v44  ;;  %v2175_v58 = vsel %vm2156_vm6, %v1561_v4, %v658_v45  ;;  %v2179_v59 = vsel %vm2156_vm6, %v1562_v9, %v662_v46  ;;  %v1829_v14 = vld [vmem:[%s2391_s2 + $0x70] sm:$0xff]  }
 0x168   : > { %1721 = vmatpush3.bf16.msra.mxu0 %v1825_v2  ;;  %v537_v56 = vsel %vm2125_vm0, %v532_v50, %v536_v51  ;;  %v665_v62 = vcombine.low %v2175_v58, %v2179_v59  ;;  %v886_v1 = vor.u32 %v885_v48, %v882_v47  ;;  %v889_v2 = vshll.u32 %v2147_v40, 16  ;;  %v1838_v47 = vld [vmem:[%s2391_s2 + $0x94] sm:$0xff]   ;;  %v1840_v51 = vld [vmem:[%s2391_s2 + $0x9c] sm:$0xff]  }
 0x169   : > { %1722 = vmatprep.subr.bf16.mxu0 %v1884_v49  ;;  %v539_v61 = vcombine.low %v523_v53, %v537_v56  ;;  %v546_v6 = vrot.slane %v538_v54, %v2017_v22  ;;  %v301_v21 = vsub.f32 1.0, %v1875_v52  ;;  %v1576_v29 = vpack.c.bf16 %v2053_v38, %v2035_v5  ;;  %v1839_v48 = vld [vmem:[%s2391_s2 + $0xb0] sm:$0xff]   ;;  %v1841_v52 = vld [vmem:[%s2391_s2 + $0xb8] sm:$0xff]   ;;  %v1842_v54 = vld [vmem:[%s2391_s2 + $0xa4] ss:$0 sps:$4 sm:$0x33]  }
 0x16a   : > { %v2191_v12 = vrot.slane %v665_v62, %v2017_v22  ;;  %v887_v18 = vrot.slane %v886_v1, 2  ;;  %v891_v20 = vrot.slane %v889_v2, 7  ;;  %v1575_v35 = vpack.c.bf16 %v2032_v30, %v2020_v24  ;;  %v1836_v30 = vld [vmem:[%s2391_s2 + $0x8c] sm:$0xff]  }
 0x16b   : > { %v2187_v7 = vrot.slane %v539_v61, %v2017_v22  ;;  %v310_v27 = vsel %vm304_vm3, 1.0, %v301_v21  ;;  %v893_v5 = vcombine.low %v2151_v41, %v523_v53  ;;  %v783_v36 = vrot.slane %v1576_v29, %v2017_v22  ;;  %v1837_v41 = vld [vmem:[%s2391_s2 + $0xa8] sm:$0xff]  }
 0x16c   : > { %1723 = vmatpush3.bf16.msra.mxu0 %v706_v60  ;;  %v664_v60 = vcombine.low %v651_v55, %v2168_v57  ;;  %v2213_v26 = vsel %vm2125_vm0, %v887_v18, %v891_v20  ;;  %v316_v34 = vmul.f32 %v310_v27, %v1940_v11  ;;  %v810_v4 = vsel %vm380_vm1, %v1834_v63, 0 }
 0x16d   : > { %1740 = vmatprep.subr.bf16.mxu0 %v1884_v49  ;;  %v554_v16 = vcombine.low %v546_v6, %v2187_v7  ;;  %v894_v31 = vcombine.low %v537_v56, %v2213_v26  ;;  %v935_v9 = vsel %vm380_vm1, %v1835_v33, 0  ;;  %v776_v42 = vrot.slane %v1575_v35, %v2017_v22  ;;  %v1843_v56 = vld [vmem:[%s2391_s2 + $0xc0] ss:$0 sps:$4 sm:$0x33]  }
 0x16e   : > { %v672_v8 = vrot.slane %v664_v60, %v2017_v22  ;;  %v322_v11 = vpack.c.bf16 %v316_v34, %v316_v34  ;;  %v901_v24 = vrot.slane %v893_v5, %v2017_v22  ;;  %v1601_v44 = vrot.slane %v2100_v0, 9 }
 0x16f   : > { %1713 = vmatmul.mubr.msk.bf16.vlgmr.msra.gmra.mrb[0].mxu1 %vm376_vm4, %v554_v16  ;;  %v908_v39 = vrot.slane %v894_v31, %v2017_v22  ;;  %v784_v43 = vcombine.low %v776_v42, %v783_v36  ;;  %v998_v46 = vrot.slane %v2147_v40, 7  ;;  %v1614_v53 = vpack.c.bf16 %v316_v34, %v2053_v38  ;;  %v1851_v31 = vld [vmem:[%s2391_s2 + $0xf8] ss:$0 sps:$4 sm:$0x33]   ;;  %v323_v42 = vld [vmem:[%s2392_s3] sm:$0xf] }
 0x170   : > { %v680_v17 = vcombine.low %v672_v8, %v2191_v12  ;;  %1729 = vmatpush3.bf16.msra.mxu1 %v1828_v13  ;;  %1736 = vmatprep.mubr.msk.bf16.mxu1 %vm1885_vm2, %v1884_v49  ;;  %v2260_v45 = vrot.slane %v322_v11, %v2017_v22  ;;  %v1000_v38 = vcombine.low %v2168_v57, %v2175_v58  ;;  %v1138_v6 = vsel %vm380_vm1, %v1843_v56, 0  ;;  %v1844_v58 = vld [vmem:[%s2391_s2 + $0xc4] sm:$0xff]  }
 0x171   : > { %1730 = vmatprep.subr.bf16.mxu1 %v1884_v49  ;;  %v909_v10 = vcombine.low %v901_v24, %v908_v39  ;;  %v2279_v50 = vsel %vm2156_vm6, %v1601_v44, %v998_v46  ;;  %v1111_v1 = vrot.slane %v1614_v53, %v2017_v22  ;;  %v1354_v34 = vsel %vm380_vm1, %v1851_v31, 0 }
 0x172   : > { %1725 = vmatmul.mubr.msk.bf16.vlgmr.msra.gmra.mrb[4].mxu0 %vm376_vm4, %v680_v17  ;;  %v1208_v0 = vshrl.u32 %v2260_v45, 16  ;;  %v1211_v40 = vshll.u32 %v2260_v45, 16  ;;  %v1001_v55 = vcombine.low %v2179_v59, %v2279_v50  ;;  %v1206_v62 = vcombine.high %v2260_v45, %v2260_v45 }
 0x173   : > { %1741 = vmatpush3.bf16.msra.mxu0 %v1829_v14  ;;  %1748 = vmatprep.mubr.msk.bf16.mxu0 %vm1885_vm2, %v1884_v49  ;;  %v1042_v59 = vsel %vm380_vm1, %v1842_v54, 0  ;;  %v1008_v57 = vrot.slane %v1000_v38, %v2017_v22  ;;  %v1845_v14 = vld [vmem:[%s2391_s2 + $0xe0] sm:$0xff]   ;;  %v1112_v16 = vcombine.low %v2050_v37, %v1111_v1  ;;  %v1639_v20 = vrot.slane %v2260_v45, 9  ;;  %v1846_v37 = vld [vmem:[%s2391_s2 + $0xcc] sm:$0xff]  }
 0x174   : > { %1742 = vmatprep.subr.bf16.mxu0 %v1884_v49  ;;  %1731 = vmatpush3.bf16.msra.mxu1 %v1830_v23  ;;  %v1210_v60 = vrot.slane %v1208_v0, 6  ;;  %v1213_v61 = vrot.slane %v1211_v40, 7  ;;  %v1015_v2 = vrot.slane %v1001_v55, %v2017_v22  ;;  %v1217_v13 = vshll.u32 %v1206_v62, 16 }
 0x175   : > { %1732 = vmatprep.subr.bf16.mxu1 %v1884_v49  ;;  %v1318_v21 = vrot.slane %v1206_v62, 7  ;;  %vm1457_vm3 = vcmask 97280  }
 0x176   : > { %v1214_v8 = vor.u32 %v1213_v61, %v1210_v60  ;;  %v1016_v17 = vcombine.low %v1008_v57, %v1015_v2  ;;  %v1219_v18 = vrot.slane %v1217_v13, 7 }
 0x177   : > { %1743 = vmatpush3.bf16.msra.mxu0 %v1831_v25  ;;  %v1847_v25 = vld [vmem:[%s2391_s2 + $0xe8] sm:$0xff]  }
 0x178   : > { %1744 = vmatprep.subr.bf16.mxu0 %v1884_v49  ;;  %1733 = vmatpush3.bf16.msra.mxu1 %v1832_v3  ;;  %v1215_v23 = vrot.slane %v1214_v8, 2  ;;  %v1319_v3 = vsel %vm2156_vm6, %v1639_v20, %v1318_v21 }
 0x179   : > { %1734 = vmatprep.subr.bf16.mxu1 %v1884_v49  ;;  %v1320_v63 = vcombine.low %v2279_v50, %v1319_v3 }
 0x17a   : > { %v1220_v27 = vsel %vm2125_vm0, %v1215_v23, %v1219_v18 }
 0x17b   : > { %1745 = vmatpush3.bf16.msra.mxu0 %v1833_v28  ;;  %v1848_v28 = vld [vmem:[%s2391_s2 + $0xd4] sm:$0xff]   ;;  %v1221_v29 = vcombine.low %v2213_v26, %v1220_v27  ;;  %v1255_v26 = vsel %vm380_vm1, %v1850_v32, 0  ;;  %v1327_v35 = vrot.slane %v1320_v63, %v2017_v22  ;;  %vm1453_vm1 = vcmask 31744  }
 0x17c   : > { %1746 = vmatprep.subr.bf16.mxu0 %v1884_v49  ;;  %1735 = vmatpush3.bf16.msra.mxu1 %v810_v4 }
 0x17d   : > { %1752 = vmatprep.subr.bf16.mxu1 %v1884_v49  ;;  %v1228_v33 = vrot.slane %v1221_v29, %v2017_v22  ;;  %v1328_v36 = vcombine.low %v2191_v12, %v1327_v35 }
 0x17f   : > { %1747 = vmatpush3.bf16.msra.mxu0 %v935_v9  ;;  %1737 = vmatmul.mubr.msk.bf16.vlgmr.msra.gmra.mrb[4].mxu1 %vm376_vm4, %v784_v43  ;;  %v1229_v5 = vcombine.low %v2187_v7, %v1228_v33  ;;  %v325_v7 = vld [vmem:[%s2392_s3 + $0x8] sm:$0xf]  ;;  %v326_v43 = vld [vmem:[%s2392_s3 + $0xc] sm:$0xf] }
 0x180   : > { %1764 = vmatprep.subr.bf16.mxu0 %v1884_v49  ;;  %1753 = vmatpush3.bf16.msra.mxu1 %v1836_v30  ;;  %v324_v30 = vld [vmem:[%s2392_s3 + $0x4] sm:$0xf] }
 0x181   : > { %1754 = vmatprep.subr.bf16.mxu1 %v1884_v49  ;;  %1760 = vmatprep.mubr.msk.bf16.mxu1 %vm1885_vm2, %v1884_v49 }
 0x182   : > { %1749 = vmatmul.mubr.msk.bf16.vlgmr.msra.gmra.mrb[8].mxu0 %vm376_vm4, %v909_v10 }
 0x183   : > { %1765 = vmatpush3.bf16.msra.mxu0 %v1837_v41  ;;  %1772 = vmatprep.mubr.msk.bf16.mxu0 %vm1885_vm2, %v1884_v49 }
 0x184   : > { %1766 = vmatprep.subr.bf16.mxu0 %v1884_v49  ;;  %1755 = vmatpush3.bf16.msra.mxu1 %v1838_v47 }
 0x185   : > { %1756 = vmatprep.subr.bf16.mxu1 %v1884_v49 }
 0x187   : > { %1767 = vmatpush3.bf16.msra.mxu0 %v1839_v48 }
 0x188   : > { %1768 = vmatprep.subr.bf16.mxu0 %v1884_v49  ;;  %1757 = vmatpush3.bf16.msra.mxu1 %v1840_v51 }
 0x189   : > { %1758 = vmatprep.subr.bf16.mxu1 %v1884_v49 }
 0x18b   : > { %1769 = vmatpush3.bf16.msra.mxu0 %v1841_v52 }
 0x18c   : > { %1770 = vmatprep.subr.bf16.mxu0 %v1884_v49  ;;  %1759 = vmatpush3.bf16.msra.mxu1 %v1042_v59 }
 0x18d   : > { %1776 = vmatprep.subr.bf16.mxu1 %v1884_v49 }
 0x18f   : > { %1771 = vmatpush3.bf16.msra.mxu0 %v1138_v6  ;;  %1761 = vmatmul.mubr.msk.bf16.vlgmr.msra.gmra.mrb[8].mxu1 %vm376_vm4, %v1016_v17 }
 0x190   : > { %1788 = vmatprep.subr.bf16.mxu0 %v1884_v49  ;;  %1777 = vmatpush3.bf16.msra.mxu1 %v1844_v58 }
 0x191   : > { %1778 = vmatprep.subr.bf16.mxu1 %v1884_v49  ;;  %1784 = vmatprep.mubr.msk.bf16.mxu1 %vm1885_vm2, %v1884_v49 }
 0x192   : > { %1773 = vmatmul.mubr.msk.bf16.vlgmr.msra.gmra.mrb[12].mxu0 %vm376_vm4, %v1112_v16 }
 0x193   : > { %1789 = vmatpush3.bf16.msra.mxu0 %v1845_v14  ;;  %1796 = vmatprep.mubr.msk.bf16.mxu0 %vm1885_vm2, %v1884_v49  ;;  %vm1455_vm2 = vcmask 64512  }
 0x194   : > { %1790 = vmatprep.subr.bf16.mxu0 %v1884_v49  ;;  %1779 = vmatpush3.bf16.msra.mxu1 %v1846_v37 }
 0x195   : > { %1780 = vmatprep.subr.bf16.mxu1 %v1884_v49 }
 0x197   : > { %1791 = vmatpush3.bf16.msra.mxu0 %v1847_v25 }
 0x198   : > { %1792 = vmatprep.subr.bf16.mxu0 %v1884_v49  ;;  %1781 = vmatpush3.bf16.msra.mxu1 %v1848_v28 }
 0x199   : > { %1782 = vmatprep.subr.bf16.mxu1 %v1884_v49 }
 0x19b   : > { %1793 = vmatpush3.bf16.msra.mxu0 %v1849_v19 }
 0x19c   : > { %1794 = vmatprep.subr.bf16.mxu0 %v1884_v49  ;;  %1783 = vmatpush3.bf16.msra.mxu1 %v1255_v26 }
 0x19f   : > { %1795 = vmatpush3.bf16.msra.mxu0 %v1354_v34  ;;  %1785 = vmatmul.mubr.msk.bf16.vlgmr.msra.gmra.mrb[12].mxu1 %vm376_vm4, %v1229_v5 }
 0x1a2   : > { %1797 = vmatmul.mubr.msk.bf16.vlgmr.msra.gmra.mrb[16].mxu0 %vm376_vm4, %v1328_v36  ;;  %vm1459_vm4 = vcmask 125952  }
 0x232   : > { %v418_v4 = vpop.f32.mrb[0].mxu0 }
 0x233   : > { %v1702_v9 = vpop.f32.mrb[1].mxu0  ;;  %v427_v24 = vcombine.high %v418_v4, %v418_v4  ;;  %v431_v41 = vadd.f32 %v418_v4, %v323_v42 }
 0x234   : > { %v421_v39 = vpop.f32.mrb[2].mxu0 }
 0x235   : > { %v1703_v11 = vpop.f32.mrb[3].mxu0  ;;  %v428_v12 = vcombine.high %v421_v39, %v421_v39  ;;  %v432_v10 = vadd.f32 %v427_v24, %v324_v30  ;;  %v433_v46 = vadd.f32 %v421_v39, %v325_v7 }
 0x237   : > { %v434_v51 = vadd.f32 %v428_v12, %v326_v43 }
 0x242   : > { %v616_v44 = vpop.f32.mrb[0].mxu1 }
 0x243   : > { %v625_v47 = vcombine.high %v616_v44, %v616_v44  ;;  %v629_v48 = vadd.f32 %v616_v44, %v431_v41  ;;  %v1714_v0 = vpop.f32.mrb[1].mxu1 }
 0x244   : > { %v619_v52 = vpop.f32.mrb[2].mxu1 }
 0x245   : > { %v742_v45 = vpop.f32.mrb[4].mxu0  ;;  %v630_v54 = vadd.f32 %v625_v47, %v432_v10  ;;  %v626_v55 = vcombine.high %v619_v52, %v619_v52  ;;  %v631_v56 = vadd.f32 %v619_v52, %v433_v46  ;;  %v1715_v61 = vpop.f32.mrb[3].mxu1 }
 0x246   : > { %v751_v40 = vcombine.high %v742_v45, %v742_v45  ;;  %v1726_v50 = vpop.f32.mrb[5].mxu0  ;;  %v755_v60 = vadd.f32 %v742_v45, %v629_v48 }
 0x247   : > { %v745_v53 = vpop.f32.mrb[6].mxu0  ;;  %v632_v1 = vadd.f32 %v626_v55, %v434_v51 }
 0x248   : > { %v1727_v38 = vpop.f32.mrb[7].mxu0  ;;  %v752_v62 = vcombine.high %v745_v53, %v745_v53  ;;  %v756_v59 = vadd.f32 %v751_v40, %v630_v54  ;;  %v757_v2 = vadd.f32 %v745_v53, %v631_v56  ;;  %v1887_v53 = vmov 1934713408  }
 0x249   : > { %v1426_v54 = vunpack.c.l.s4 %v1887_v53 }
 0x24a   : > { %v758_v6 = vadd.f32 %v752_v62, %v632_v1 }
 0x252   : > { %v846_v8 = vpop.f32.mrb[4].mxu1 }
 0x253   : > { %v855_v57 = vcombine.high %v846_v8, %v846_v8  ;;  %v859_v58 = vadd.f32 %v846_v8, %v755_v60  ;;  %v1738_v14 = vpop.f32.mrb[5].mxu1 }
 0x254   : > { %v849_v18 = vpop.f32.mrb[6].mxu1 }
 0x255   : > { %v971_v13 = vpop.f32.mrb[8].mxu0  ;;  %v860_v21 = vadd.f32 %v855_v57, %v756_v59  ;;  %v856_v23 = vcombine.high %v849_v18, %v849_v18  ;;  %v861_v37 = vadd.f32 %v849_v18, %v757_v2  ;;  %v1739_v25 = vpop.f32.mrb[7].mxu1  ;;  %v1427_v57 = vunpack.c.0.s8 %v1426_v54 }
 0x256   : > { %v980_v16 = vcombine.high %v971_v13, %v971_v13  ;;  %v1750_v17 = vpop.f32.mrb[9].mxu0  ;;  %v984_v27 = vadd.f32 %v971_v13, %v859_v58 }
 0x257   : > { %v974_v20 = vpop.f32.mrb[10].mxu0  ;;  %v862_v19 = vadd.f32 %v856_v23, %v758_v6  ;;  %v1430_v17 = vsub.s32 %v1427_v57, %v2011_v15 }
 0x258   : > { %v1751_v3 = vpop.f32.mrb[11].mxu0  ;;  %v981_v28 = vcombine.high %v974_v20, %v974_v20  ;;  %v985_v29 = vadd.f32 %v980_v16, %v860_v21  ;;  %v986_v32 = vadd.f32 %v974_v20, %v861_v37 }
 0x25a   : > { %v987_v31 = vadd.f32 %v981_v28, %v862_v19 }
 0x262   : > { %v1078_v63 = vpop.f32.mrb[8].mxu1 }
 0x263   : > { %v1087_v26 = vcombine.high %v1078_v63, %v1078_v63  ;;  %v1091_v34 = vadd.f32 %v1078_v63, %v984_v27  ;;  %v1762_v35 = vpop.f32.mrb[9].mxu1 }
 0x264   : > { %v1081_v4 = vpop.f32.mrb[10].mxu1 }
 0x265   : > { %v1174_v33 = vpop.f32.mrb[12].mxu0  ;;  %v1092_v39 = vadd.f32 %v1087_v26, %v985_v29  ;;  %v1088_v11 = vcombine.high %v1081_v4, %v1081_v4  ;;  %v1093_v42 = vadd.f32 %v1081_v4, %v986_v32  ;;  %v1763_v24 = vpop.f32.mrb[11].mxu1 }
 0x266   : > { %v1183_v5 = vcombine.high %v1174_v33, %v1174_v33  ;;  %v1774_v36 = vpop.f32.mrb[13].mxu0  ;;  %v1187_v30 = vadd.f32 %v1174_v33, %v1091_v34 }
 0x267   : > { %v1177_v9 = vpop.f32.mrb[14].mxu0  ;;  %v1094_v41 = vadd.f32 %v1088_v11, %v987_v31 }
 0x268   : > { %v1775_v7 = vpop.f32.mrb[15].mxu0  ;;  %v1184_v12 = vcombine.high %v1177_v9, %v1177_v9  ;;  %v1188_v43 = vadd.f32 %v1183_v5, %v1092_v39  ;;  %v1189_v10 = vadd.f32 %v1177_v9, %v1093_v42 }
 0x26a   : > { %v1190_v44 = vadd.f32 %v1184_v12, %v1094_v41 }
 0x272   : > { %v1291_v45 = vpop.f32.mrb[12].mxu1 }
 0x273   : > { %v1300_v47 = vcombine.high %v1291_v45, %v1291_v45  ;;  %v1304_v48 = vadd.f32 %v1291_v45, %v1187_v30  ;;  %v1786_v0 = vpop.f32.mrb[13].mxu1 }
 0x274   : > { %v1294_v51 = vpop.f32.mrb[14].mxu1 }
 0x275   : > { %v1390_v46 = vpop.f32.mrb[16].mxu0  ;;  %v1305_v55 = vadd.f32 %v1300_v47, %v1188_v43  ;;  %v1301_v56 = vcombine.high %v1294_v51, %v1294_v51  ;;  %v1306_v60 = vadd.f32 %v1294_v51, %v1189_v10  ;;  %v1787_v61 = vpop.f32.mrb[15].mxu1 }
 0x276   : > { %v1399_v40 = vcombine.high %v1390_v46, %v1390_v46  ;;  %v1798_v50 = vpop.f32.mrb[17].mxu0  ;;  %v1403_v38 = vadd.f32 %v1390_v46, %v1304_v48 }
 0x277   : > { %v1393_v52 = vpop.f32.mrb[18].mxu0  ;;  %v1307_v59 = vadd.f32 %v1301_v56, %v1190_v44 }
 0x278   : > { %v1799_v62 = vpop.f32.mrb[19].mxu0  ;;  %v1400_v1 = vcombine.high %v1393_v52, %v1393_v52  ;;  %v1404_v2 = vadd.f32 %v1399_v40, %v1305_v55  ;;  %v1405_v6 = vadd.f32 %v1393_v52, %v1306_v60 }
 0x27a   : > { %v1406_v8 = vadd.f32 %v1400_v1, %v1307_v59  ;;  %v1407_v13 = vcombine.low %v1403_v38, %v1405_v6 }
 0x27c   : > { %v1415_v58 = vcombine.low %v1404_v2, %v1406_v8  ;;  %v1414_v14 = vrot.slane %v1407_v13, %v2017_v22 }
 0x27e   : > { %v1422_v16 = vrot.slane %v1415_v58, %v2017_v22 }
 0x280   : > { %v1423_v18 = vcombine.low %v1414_v14, %v1422_v16  ;;  %v1424_v20 = vcombine.high %v1414_v14, %v1422_v16 }
 0x282   : > { %v1438_v21 = vrot.slane %v1424_v20, %v1430_v17  ;;  %v1431_v23 = vrot.slane %v1423_v18, %v1430_v17 }
 0x284   : > { %1446 = vrot.lane.b32.xlu1 %v1438_v21, %s1888_s25  ;;  %v1439_v37 = vcombine.high %v1431_v23, %v1884_v49  ;;  %v1440_v25 = vcombine.high %v1438_v21, %v1884_v49 }
 0x286   : > { %1442 = vrot.lane.b32.xlu0 %v1439_v37, %s1889_s26 }
 0x288   : > { %1450 = vrot.lane.b32.xlu1 %v1440_v25, %s1890_s27 }
 0x2f6   : > { %v1447_v27 = vpop.permute.xlu1 %1446 }
 0x2f8   : > { %v1443_v22 = vpop.permute.xlu0 %1442 }
 0x2f9   : > { %v1454_v15 = vsel %vm1453_vm1, %v1431_v23, %v1443_v22 }
 0x2fa   : > { %v1451_v3 = vpop.permute.xlu1 %1450  ;;  %v1456_v28 = vsel %vm1455_vm2, %v1454_v15, %v1447_v27 }
 0x2fb   : > { %v1458_v19 = vsel %vm1457_vm3, %v1456_v28, %v1451_v3 }
 0x2fc   : > { %1460 = vst.msk [vmem:[%s215_s5] sm:$0xf] %vm1459_vm4, %v1458_v19 }
 0x2fd PF: > { %s14_s15 = sadd.s32 1, %s1882_s15  }
 0x2fe   : > { %p11_p4 = scmp.ge.s32.totalorder %s14_s15, 4  }
 0x300   :  { %13 = sbr.rel (!%p11_p4) target bundleno = 1 (0x1), region = 77 }

</bundles_post_ra>
